<compile_context>
chip_gen: v5e
topology: v5e:2x2
jax: 0.10.0
libtpu: 0.0.40
codegen_flags: <defaults>
</compile_context>

<pallas_src>
import math
from functools import partial

import jax
import jax.numpy as jnp
from jax.experimental import pallas as pl
from jax.experimental.pallas import tpu as pltpu

LN_EPS = 1e-5                     # torch.nn.LayerNorm default eps
LOG_SIGMA_MIN = -5.0
LOG_SIGMA_MAX = 2.0
TANH_EPS = 1e-6
HALF_LOG_2PI = 0.5 * math.log(2.0 * math.pi)   # Python float -> not a traced constant
LANES = 128                       # TPU lane width
TB_MAX = 512                      # default batch tile (review: sweep 512-1024)


def _round_up(x: int, m: int) -> int:
    return ((x + m - 1) // m) * m


def _make_actor_kernel(max_action: float, action_dim: int, a_pad: int):
    max_action = float(max_action)

    def actor_kernel(state_ref, noise_ref,
                     w1_ref, b1_ref, w2_ref, b2_ref, w3_ref, b3_ref,
                     wh_ref, bh_ref,
                     act_ref, logp_ref):
        def lin_ln_relu(x, w_ref, b_ref):
            # bf16 (or f32) operands feed the MXU; accumulate + LN in f32.
            h = jnp.dot(x.astype(w_ref.dtype), w_ref[...],
                        preferred_element_type=jnp.float32) + b_ref[...]
            # Two-pass LayerNorm (centered variance) - bf16-safe statistics.
            mean = jnp.mean(h, axis=-1, keepdims=True)
            c = h - mean
            var = jnp.mean(c * c, axis=-1, keepdims=True)
            h = c * jax.lax.rsqrt(var + LN_EPS)
            return jnp.maximum(h, 0.0)

        h = lin_ln_relu(state_ref[...], w1_ref, b1_ref)
        h = lin_ln_relu(h, w2_ref, b2_ref)
        h = lin_ln_relu(h, w3_ref, b3_ref)

        # Fused mu / log_sigma head: one matmul, 128-lane-aligned split.
        head = jnp.dot(h.astype(wh_ref.dtype), wh_ref[...],
                       preferred_element_type=jnp.float32) + bh_ref[...]
        mu = head[:, :a_pad]                                   # cols [0:A] real, rest 0
        log_sigma = jnp.clip(head[:, a_pad:], LOG_SIGMA_MIN, LOG_SIGMA_MAX)
        sigma = jnp.exp(log_sigma)

        eps = noise_ref[...]                                   # padded lanes are 0
        action = mu + sigma * eps                              # rsample
        tanh_action = jnp.tanh(action)
        # Narrow (TB, A) store: 16x less HBM than a 128-lane-padded block.
        act_ref[...] = tanh_action[:, :action_dim] * max_action

        # Normal(mu, sigma).log_prob(action): (action - mu)/sigma == eps.
        normal_lp = -0.5 * eps * eps - log_sigma - HALF_LOG_2PI
        tanh_corr = jnp.log(1.0 - tanh_action * tanh_action + TANH_EPS)
        per_elem = normal_lp - tanh_corr                       # finite on padded lanes
        # Masked lane-reduction as a tiny MXU dot so the result lands lane-dense
        # as a (1, TB) row (avoids the old 128-wide log_prob broadcast).
        mask = (jax.lax.broadcasted_iota(jnp.int32, (8, a_pad), 1)
                < action_dim).astype(jnp.float32)
        logp_rows = jnp.dot(mask, per_elem.T, preferred_element_type=jnp.float32)
        logp_ref[...] = logp_rows[0:1, :]

    return actor_kernel


def pack_actor_params(params, weight_dtype=jnp.bfloat16, a_pad=LANES):
    """One-time prep (outside the per-call jit path): pack the mu / log_sigma
    heads into a lane-padded [H, 2*128] weight + [1, 2*128] bias and cast the
    matmul weights to `weight_dtype` (bf16 by default for the MXU).
    Padded head columns are exactly zero; biases stay f32."""
    H, A = params["wmu"].shape
    wh = jnp.zeros((H, 2 * a_pad), jnp.float32)
    wh = wh.at[:, :A].set(params["wmu"]).at[:, a_pad:a_pad + A].set(params["wls"])
    bh = jnp.zeros((1, 2 * a_pad), jnp.float32)
    bh = bh.at[:, :A].set(params["bmu"]).at[:, a_pad:a_pad + A].set(params["bls"])
    return {
        "w1": params["w1"].astype(weight_dtype), "b1": params["b1"],
        "w2": params["w2"].astype(weight_dtype), "b2": params["b2"],
        "w3": params["w3"].astype(weight_dtype), "b3": params["b3"],
        "wh": wh.astype(weight_dtype), "bh": bh,
    }


@partial(jax.jit, static_argnames=("max_action", "tb_max"))
def actor_forward(packed_params, state, noise, max_action=1.0, tb_max=TB_MAX):
    """Stochastic forward (deterministic=False, need_log_prob=True)."""
    B, S = state.shape
    A = noise.shape[1]
    H = packed_params["w1"].shape[1]
    a_pad = LANES
    assert A <= a_pad, "action_dim must be <= 128 for the lane-padded head"

    # Batch tile: as large as tb_max, kept a multiple of 128; prefer >= 2 grid
    # steps so v7x's two TensorCores both get work under ("parallel",).
    b128 = _round_up(B, 128)
    tb = min(tb_max, b128)
    if b128 // tb < 2 and b128 % 256 == 0:
        tb = min(tb, b128 // 2)
    b_pad = _round_up(B, tb)
    n_tiles = b_pad // tb

    # Single-op batch padding (padded rows are finite and discarded).
    state_p = jnp.pad(state, ((0, b_pad - B), (0, 0)))
    # TODO(synk): noise stays lane-padded to 128 (simplest robust layout); it could
    # be generated in-kernel via pltpu.prng_* to drop this HBM stream, but that
    # changes RNG reproducibility vs. the externally-supplied rsample noise.
    noise_p = jnp.pad(noise, ((0, b_pad - B), (0, a_pad - A)))

    w1, b1 = packed_params["w1"], packed_params["b1"]
    w2, b2 = packed_params["w2"], packed_params["b2"]
    w3, b3 = packed_params["w3"], packed_params["b3"]
    wh, bh = packed_params["wh"], packed_params["bh"]

    def batch_spec(shape):
        return pl.BlockSpec(shape, lambda i: (i, 0))

    def resident_spec(shape):
        # Constant index_map -> weight block is DMA'd once and stays VMEM-resident.
        return pl.BlockSpec(shape, lambda i: (0, 0))

    flops = 2 * b_pad * (S * H + 2 * H * H + H * 2 * a_pad)
    transcendentals = b_pad * (3 * a_pad + 3)            # exp/tanh/log + per-row rsqrt
    w_bytes = sum(int(a.size) * a.dtype.itemsize
                  for a in (w1, b1, w2, b2, w3, b3, wh, bh))
    io_bytes = 4 * (int(state_p.size) + int(noise_p.size) + b_pad * A + b_pad)
    cost = pl.CostEstimate(flops=int(flops),
                           transcendentals=int(transcendentals),
                           bytes_accessed=int(w_bytes + io_bytes))

    act_p, logp_row = pl.pallas_call(
        _make_actor_kernel(max_action, A, a_pad),
        out_shape=(
            jax.ShapeDtypeStruct((b_pad, A), jnp.float32),     # narrow action
            jax.ShapeDtypeStruct((1, b_pad), jnp.float32),     # lane-dense log_prob row
        ),
        grid_spec=pltpu.PrefetchScalarGridSpec(
            num_scalar_prefetch=0,
            grid=(n_tiles,),
            in_specs=[
                batch_spec((tb, S)),
                batch_spec((tb, a_pad)),
                resident_spec((S, H)), resident_spec((1, H)),
                resident_spec((H, H)), resident_spec((1, H)),
                resident_spec((H, H)), resident_spec((1, H)),
                resident_spec((H, 2 * a_pad)), resident_spec((1, 2 * a_pad)),
            ],
            out_specs=(
                pl.BlockSpec((tb, A), lambda i: (i, 0)),
                pl.BlockSpec((1, tb), lambda i: (0, i)),
            ),
        ),
        compiler_params=pltpu.CompilerParams(dimension_semantics=("parallel",)),
        cost_estimate=cost,
    )(state_p, noise_p, w1, b1, w2, b2, w3, b3, wh, bh)

    return act_p[:B], logp_row[0, :B]


def actor_forward_ref(params, state, noise, max_action=1.0, matmul_dtype=jnp.float32):
    """Pure-JAX reference mirroring the PyTorch forward.  `matmul_dtype` lets the
    reference use the same matmul-operand precision as the kernel (bf16 mode)."""
    def mm(x, w):
        return jnp.dot(x.astype(matmul_dtype), w.astype(matmul_dtype),
                       preferred_element_type=jnp.float32)

    def lin_ln_relu(x, w, b):
        h = mm(x, w) + b
        mean = h.mean(-1, keepdims=True)
        c = h - mean
        var = (c * c).mean(-1, keepdims=True)
        return jnp.maximum(c * jax.lax.rsqrt(var + LN_EPS), 0.0)

    h = lin_ln_relu(state, params["w1"], params["b1"])
    h = lin_ln_relu(h, params["w2"], params["b2"])
    h = lin_ln_relu(h, params["w3"], params["b3"])
    mu = mm(h, params["wmu"]) + params["bmu"]
    log_sigma = jnp.clip(mm(h, params["wls"]) + params["bls"],
                         LOG_SIGMA_MIN, LOG_SIGMA_MAX)
    sigma = jnp.exp(log_sigma)
    action = mu + sigma * noise
    tanh_action = jnp.tanh(action)
    normal_lp = -0.5 * noise * noise - log_sigma - HALF_LOG_2PI
    logp = normal_lp.sum(-1) - jnp.log(1.0 - tanh_action ** 2 + TANH_EPS).sum(-1)
    return tanh_action * max_action, logp


def init_actor_params(key, state_dim, hidden_dim, action_dim):
    """Deterministic init mirroring the PyTorch module's __init__."""
    ks = jax.random.split(key, 8)

    def linear_default(kw, fan_in, fan_out):
        bound = 1.0 / math.sqrt(fan_in)
        return jax.random.uniform(kw, (fan_in, fan_out), jnp.float32, -bound, bound)

    return {
        "w1": linear_default(ks[0], state_dim, hidden_dim),
        "b1": jnp.full((1, hidden_dim), 0.1, jnp.float32),
        "w2": linear_default(ks[1], hidden_dim, hidden_dim),
        "b2": jnp.full((1, hidden_dim), 0.1, jnp.float32),
        "w3": linear_default(ks[2], hidden_dim, hidden_dim),
        "b3": jnp.full((1, hidden_dim), 0.1, jnp.float32),
        "wmu": jax.random.uniform(ks[3], (hidden_dim, action_dim), jnp.float32, -1e-3, 1e-3),
        "bmu": jax.random.uniform(ks[4], (1, action_dim), jnp.float32, -1e-3, 1e-3),
        "wls": jax.random.uniform(ks[5], (hidden_dim, action_dim), jnp.float32, -1e-3, 1e-3),
        "bls": jax.random.uniform(ks[6], (1, action_dim), jnp.float32, -1e-3, 1e-3),
    }


if __name__ == "__main__":
    # Small demo shapes: batch 256 (=> 2 grid steps of 128), hidden 128, action 8.
    B, STATE_DIM, HIDDEN_DIM, ACTION_DIM = 256, 16, 128, 8
    MAX_ACTION = 1.0

    key = jax.random.PRNGKey(0)
    k_params, k_state, k_noise = jax.random.split(key, 3)

    params = init_actor_params(k_params, STATE_DIM, HIDDEN_DIM, ACTION_DIM)
    state = jax.random.normal(k_state, (B, STATE_DIM), jnp.float32)
    noise = jax.random.normal(k_noise, (B, ACTION_DIM), jnp.float32)

    ref_act, ref_logp = actor_forward_ref(params, state, noise, MAX_ACTION)

    # --- f32-weight path: tight match against the PyTorch-mirroring reference ---
    packed_f32 = pack_actor_params(params, weight_dtype=jnp.float32)
    act32, logp32 = actor_forward(packed_f32, state, noise, max_action=MAX_ACTION)
    jax.block_until_ready((act32, logp32))
    assert act32.shape == (B, ACTION_DIM) and logp32.shape == (B,)
    assert bool(jnp.all(jnp.isfinite(act32))) and bool(jnp.all(jnp.isfinite(logp32)))
    assert float(jnp.max(jnp.abs(act32 - ref_act))) < 5e-3
    assert float(jnp.max(jnp.abs(logp32 - ref_logp))) < 5e-3

    # --- bf16-weight path (default perf mode): validate vs a matched-precision
    #     reference; the tanh log-det amplifies any weight-quantization error at
    #     large |noise|, so the f32 reference is only used for the action check. ---
    packed_bf16 = pack_actor_params(params)   # bf16 matmul weights
    act16, logp16 = actor_forward(packed_bf16, state, noise, max_action=MAX_ACTION)
    jax.block_until_ready((act16, logp16))
    ref_act16, ref_logp16 = actor_forward_ref(params, state, noise, MAX_ACTION,
                                              matmul_dtype=jnp.bfloat16)
    assert bool(jnp.all(jnp.isfinite(act16))) and bool(jnp.all(jnp.isfinite(logp16)))
    assert float(jnp.max(jnp.abs(act16 - ref_act))) < 5e-3
    assert float(jnp.max(jnp.abs(logp16 - ref_logp16))) < 5e-3

    # TODO(synk): log_prob is the density of tanh(action) (pre max_action scale),
    # matching the PyTorch module; no change-of-variables term for max_action.
    print("KERNEL_OK")
</pallas_src>

<mosaic_0001>
module attributes {stable_mosaic.version = 11 : i64} {
  func.func @actor_kernel(%arg0: i32, %arg1: memref<128x16xf32, #tpu.memory_space<vmem>>, %arg2: memref<128x128xf32, #tpu.memory_space<vmem>>, %arg3: memref<16x128xf32, #tpu.memory_space<vmem>>, %arg4: memref<1x128xf32, #tpu.memory_space<vmem>>, %arg5: memref<128x128xf32, #tpu.memory_space<vmem>>, %arg6: memref<1x128xf32, #tpu.memory_space<vmem>>, %arg7: memref<128x128xf32, #tpu.memory_space<vmem>>, %arg8: memref<1x128xf32, #tpu.memory_space<vmem>>, %arg9: memref<128x256xf32, #tpu.memory_space<vmem>>, %arg10: memref<1x256xf32, #tpu.memory_space<vmem>>, %arg11: memref<128x8xf32, #tpu.memory_space<vmem>>, %arg12: memref<1x128xf32, #tpu.memory_space<vmem>>) attributes {dimension_semantics = [#tpu.dimension_semantics<parallel>], iteration_bounds = array<i64: 2>, scalar_prefetch = 0 : i64, scratch_operands = 0 : i64, tpu.core_type = #tpu.core_type<tc>, window_params = [{transform_indices = @transform_0, window_bounds = array<i64: 128, 16>}, {transform_indices = @transform_1, window_bounds = array<i64: 128, 128>}, {pipeline_mode = #tpu.pipeline_mode<synchronous>, transform_indices = @transform_2, window_bounds = array<i64: 16, 128>}, {pipeline_mode = #tpu.pipeline_mode<synchronous>, transform_indices = @transform_3, window_bounds = array<i64: 1, 128>}, {pipeline_mode = #tpu.pipeline_mode<synchronous>, transform_indices = @transform_4, window_bounds = array<i64: 128, 128>}, {pipeline_mode = #tpu.pipeline_mode<synchronous>, transform_indices = @transform_5, window_bounds = array<i64: 1, 128>}, {pipeline_mode = #tpu.pipeline_mode<synchronous>, transform_indices = @transform_6, window_bounds = array<i64: 128, 128>}, {pipeline_mode = #tpu.pipeline_mode<synchronous>, transform_indices = @transform_7, window_bounds = array<i64: 1, 128>}, {pipeline_mode = #tpu.pipeline_mode<synchronous>, transform_indices = @transform_8, window_bounds = array<i64: 128, 256>}, {pipeline_mode = #tpu.pipeline_mode<synchronous>, transform_indices = @transform_9, window_bounds = array<i64: 1, 256>}, {transform_indices = @transform_10, window_bounds = array<i64: 128, 8>}, {transform_indices = @transform_11, window_bounds = array<i64: 1, 128>}]} {
    %c0 = arith.constant 0 : index
    %c0_0 = arith.constant 0 : index
    %0 = vector.load %arg1[%c0, %c0_0] : memref<128x16xf32, #tpu.memory_space<vmem>>, vector<128x16xf32>
    %c0_1 = arith.constant 0 : index
    %c0_2 = arith.constant 0 : index
    %1 = vector.load %arg3[%c0_1, %c0_2] : memref<16x128xf32, #tpu.memory_space<vmem>>, vector<16x128xf32>
    %cst = arith.constant dense<0.000000e+00> : vector<128x128xf32>
    %2 = tpu.matmul %0, %1, %cst {dimension_numbers = #tpu.dot_dimension_numbers<[1], [0], [0], [1], [0, 0, 1, 1], [], []>} : vector<128x16xf32>, vector<16x128xf32>, vector<128x128xf32> -> vector<128x128xf32>
    %c0_3 = arith.constant 0 : index
    %c0_4 = arith.constant 0 : index
    %3 = vector.load %arg4[%c0_3, %c0_4] : memref<1x128xf32, #tpu.memory_space<vmem>>, vector<1x128xf32>
    %4 = vector.broadcast %3 : vector<1x128xf32> to vector<128x128xf32>
    %5 = arith.addf %2, %4 : vector<128x128xf32>
    %cst_5 = arith.constant dense<0.000000e+00> : vector<128xf32>
    %6 = vector.multi_reduction <add>, %5, %cst_5 [1] : vector<128x128xf32> to vector<128xf32>
    %7 = vector.shape_cast %6 : vector<128xf32> to vector<128x1xf32>
    %cst_6 = arith.constant 1.280000e+02 : f32
    %8 = vector.broadcast %cst_6 : f32 to vector<128x1xf32>
    %9 = arith.divf %7, %8 : vector<128x1xf32>
    %10 = vector.broadcast %9 : vector<128x1xf32> to vector<128x128xf32>
    %11 = arith.subf %5, %10 : vector<128x128xf32>
    %12 = arith.mulf %11, %11 : vector<128x128xf32>
    %cst_7 = arith.constant dense<0.000000e+00> : vector<128xf32>
    %13 = vector.multi_reduction <add>, %12, %cst_7 [1] : vector<128x128xf32> to vector<128xf32>
    %14 = vector.shape_cast %13 : vector<128xf32> to vector<128x1xf32>
    %cst_8 = arith.constant 1.280000e+02 : f32
    %15 = vector.broadcast %cst_8 : f32 to vector<128x1xf32>
    %16 = arith.divf %14, %15 : vector<128x1xf32>
    %cst_9 = arith.constant 9.99999974E-6 : f32
    %17 = vector.broadcast %cst_9 : f32 to vector<128x1xf32>
    %18 = arith.addf %16, %17 : vector<128x1xf32>
    %19 = math.rsqrt %18 : vector<128x1xf32>
    %20 = vector.broadcast %19 : vector<128x1xf32> to vector<128x128xf32>
    %21 = arith.mulf %11, %20 : vector<128x128xf32>
    %cst_10 = arith.constant 0.000000e+00 : f32
    %22 = vector.broadcast %cst_10 : f32 to vector<128x128xf32>
    %23 = arith.maximumf %21, %22 : vector<128x128xf32>
    %c0_11 = arith.constant 0 : index
    %c0_12 = arith.constant 0 : index
    %24 = vector.load %arg5[%c0_11, %c0_12] : memref<128x128xf32, #tpu.memory_space<vmem>>, vector<128x128xf32>
    %cst_13 = arith.constant dense<0.000000e+00> : vector<128x128xf32>
    %25 = tpu.matmul %23, %24, %cst_13 {dimension_numbers = #tpu.dot_dimension_numbers<[1], [0], [0], [1], [0, 0, 1, 1], [], []>} : vector<128x128xf32>, vector<128x128xf32>, vector<128x128xf32> -> vector<128x128xf32>
    %c0_14 = arith.constant 0 : index
    %c0_15 = arith.constant 0 : index
    %26 = vector.load %arg6[%c0_14, %c0_15] : memref<1x128xf32, #tpu.memory_space<vmem>>, vector<1x128xf32>
    %27 = vector.broadcast %26 : vector<1x128xf32> to vector<128x128xf32>
    %28 = arith.addf %25, %27 : vector<128x128xf32>
    %cst_16 = arith.constant dense<0.000000e+00> : vector<128xf32>
    %29 = vector.multi_reduction <add>, %28, %cst_16 [1] : vector<128x128xf32> to vector<128xf32>
    %30 = vector.shape_cast %29 : vector<128xf32> to vector<128x1xf32>
    %cst_17 = arith.constant 1.280000e+02 : f32
    %31 = vector.broadcast %cst_17 : f32 to vector<128x1xf32>
    %32 = arith.divf %30, %31 : vector<128x1xf32>
    %33 = vector.broadcast %32 : vector<128x1xf32> to vector<128x128xf32>
    %34 = arith.subf %28, %33 : vector<128x128xf32>
    %35 = arith.mulf %34, %34 : vector<128x128xf32>
    %cst_18 = arith.constant dense<0.000000e+00> : vector<128xf32>
    %36 = vector.multi_reduction <add>, %35, %cst_18 [1] : vector<128x128xf32> to vector<128xf32>
    %37 = vector.shape_cast %36 : vector<128xf32> to vector<128x1xf32>
    %cst_19 = arith.constant 1.280000e+02 : f32
    %38 = vector.broadcast %cst_19 : f32 to vector<128x1xf32>
    %39 = arith.divf %37, %38 : vector<128x1xf32>
    %cst_20 = arith.constant 9.99999974E-6 : f32
    %40 = vector.broadcast %cst_20 : f32 to vector<128x1xf32>
    %41 = arith.addf %39, %40 : vector<128x1xf32>
    %42 = math.rsqrt %41 : vector<128x1xf32>
    %43 = vector.broadcast %42 : vector<128x1xf32> to vector<128x128xf32>
    %44 = arith.mulf %34, %43 : vector<128x128xf32>
    %cst_21 = arith.constant 0.000000e+00 : f32
    %45 = vector.broadcast %cst_21 : f32 to vector<128x128xf32>
    %46 = arith.maximumf %44, %45 : vector<128x128xf32>
    %c0_22 = arith.constant 0 : index
    %c0_23 = arith.constant 0 : index
    %47 = vector.load %arg7[%c0_22, %c0_23] : memref<128x128xf32, #tpu.memory_space<vmem>>, vector<128x128xf32>
    %cst_24 = arith.constant dense<0.000000e+00> : vector<128x128xf32>
    %48 = tpu.matmul %46, %47, %cst_24 {dimension_numbers = #tpu.dot_dimension_numbers<[1], [0], [0], [1], [0, 0, 1, 1], [], []>} : vector<128x128xf32>, vector<128x128xf32>, vector<128x128xf32> -> vector<128x128xf32>
    %c0_25 = arith.constant 0 : index
    %c0_26 = arith.constant 0 : index
    %49 = vector.load %arg8[%c0_25, %c0_26] : memref<1x128xf32, #tpu.memory_space<vmem>>, vector<1x128xf32>
    %50 = vector.broadcast %49 : vector<1x128xf32> to vector<128x128xf32>
    %51 = arith.addf %48, %50 : vector<128x128xf32>
    %cst_27 = arith.constant dense<0.000000e+00> : vector<128xf32>
    %52 = vector.multi_reduction <add>, %51, %cst_27 [1] : vector<128x128xf32> to vector<128xf32>
    %53 = vector.shape_cast %52 : vector<128xf32> to vector<128x1xf32>
    %cst_28 = arith.constant 1.280000e+02 : f32
    %54 = vector.broadcast %cst_28 : f32 to vector<128x1xf32>
    %55 = arith.divf %53, %54 : vector<128x1xf32>
    %56 = vector.broadcast %55 : vector<128x1xf32> to vector<128x128xf32>
    %57 = arith.subf %51, %56 : vector<128x128xf32>
    %58 = arith.mulf %57, %57 : vector<128x128xf32>
    %cst_29 = arith.constant dense<0.000000e+00> : vector<128xf32>
    %59 = vector.multi_reduction <add>, %58, %cst_29 [1] : vector<128x128xf32> to vector<128xf32>
    %60 = vector.shape_cast %59 : vector<128xf32> to vector<128x1xf32>
    %cst_30 = arith.constant 1.280000e+02 : f32
    %61 = vector.broadcast %cst_30 : f32 to vector<128x1xf32>
    %62 = arith.divf %60, %61 : vector<128x1xf32>
    %cst_31 = arith.constant 9.99999974E-6 : f32
    %63 = vector.broadcast %cst_31 : f32 to vector<128x1xf32>
    %64 = arith.addf %62, %63 : vector<128x1xf32>
    %65 = math.rsqrt %64 : vector<128x1xf32>
    %66 = vector.broadcast %65 : vector<128x1xf32> to vector<128x128xf32>
    %67 = arith.mulf %57, %66 : vector<128x128xf32>
    %cst_32 = arith.constant 0.000000e+00 : f32
    %68 = vector.broadcast %cst_32 : f32 to vector<128x128xf32>
    %69 = arith.maximumf %67, %68 : vector<128x128xf32>
    %c0_33 = arith.constant 0 : index
    %c0_34 = arith.constant 0 : index
    %70 = vector.load %arg9[%c0_33, %c0_34] : memref<128x256xf32, #tpu.memory_space<vmem>>, vector<128x256xf32>
    %cst_35 = arith.constant dense<0.000000e+00> : vector<128x256xf32>
    %71 = tpu.matmul %69, %70, %cst_35 {dimension_numbers = #tpu.dot_dimension_numbers<[1], [0], [0], [1], [0, 0, 1, 1], [], []>} : vector<128x128xf32>, vector<128x256xf32>, vector<128x256xf32> -> vector<128x256xf32>
    %c0_36 = arith.constant 0 : index
    %c0_37 = arith.constant 0 : index
    %72 = vector.load %arg10[%c0_36, %c0_37] : memref<1x256xf32, #tpu.memory_space<vmem>>, vector<1x256xf32>
    %73 = vector.broadcast %72 : vector<1x256xf32> to vector<128x256xf32>
    %74 = arith.addf %71, %73 : vector<128x256xf32>
    %75 = vector.extract_strided_slice %74 {offsets = [0, 0], sizes = [128, 128], strides = [1, 1]} : vector<128x256xf32> to vector<128x128xf32>
    %76 = vector.extract_strided_slice %74 {offsets = [0, 128], sizes = [128, 128], strides = [1, 1]} : vector<128x256xf32> to vector<128x128xf32>
    %cst_38 = arith.constant -5.000000e+00 : f32
    %cst_39 = arith.constant 2.000000e+00 : f32
    %77 = vector.broadcast %cst_38 : f32 to vector<128x128xf32>
    %78 = arith.maximumf %77, %76 : vector<128x128xf32>
    %79 = vector.broadcast %cst_39 : f32 to vector<128x128xf32>
    %80 = arith.minimumf %79, %78 : vector<128x128xf32>
    %81 = math.exp %80 : vector<128x128xf32>
    %c0_40 = arith.constant 0 : index
    %c0_41 = arith.constant 0 : index
    %82 = vector.load %arg2[%c0_40, %c0_41] : memref<128x128xf32, #tpu.memory_space<vmem>>, vector<128x128xf32>
    %83 = arith.mulf %81, %82 : vector<128x128xf32>
    %84 = arith.addf %75, %83 : vector<128x128xf32>
    %85 = math.tanh %84 : vector<128x128xf32>
    %86 = vector.extract_strided_slice %85 {offsets = [0, 0], sizes = [128, 8], strides = [1, 1]} : vector<128x128xf32> to vector<128x8xf32>
    %cst_42 = arith.constant 1.000000e+00 : f32
    %87 = vector.broadcast %cst_42 : f32 to vector<128x8xf32>
    %88 = arith.mulf %86, %87 : vector<128x8xf32>
    %c0_43 = arith.constant 0 : index
    %c0_44 = arith.constant 0 : index
    %89 = vector.load %arg11[%c0_43, %c0_44] : memref<128x8xf32, #tpu.memory_space<vmem>>, vector<128x8xf32>
    tpu.vector_store %arg11[%c0_43, %c0_44], %88 {strides = array<i32>} : memref<128x8xf32, #tpu.memory_space<vmem>>, vector<128x8xf32>,
    %cst_45 = arith.constant -5.000000e-01 : f32
    %90 = vector.broadcast %cst_45 : f32 to vector<128x128xf32>
    %91 = arith.mulf %90, %82 : vector<128x128xf32>
    %92 = arith.mulf %91, %82 : vector<128x128xf32>
    %93 = arith.subf %92, %80 : vector<128x128xf32>
    %cst_46 = arith.constant 0.918938517 : f32
    %94 = vector.broadcast %cst_46 : f32 to vector<128x128xf32>
    %95 = arith.subf %93, %94 : vector<128x128xf32>
    %96 = arith.mulf %85, %85 : vector<128x128xf32>
    %cst_47 = arith.constant 1.000000e+00 : f32
    %97 = vector.broadcast %cst_47 : f32 to vector<128x128xf32>
    %98 = arith.subf %97, %96 : vector<128x128xf32>
    %cst_48 = arith.constant 9.99999997E-7 : f32
    %99 = vector.broadcast %cst_48 : f32 to vector<128x128xf32>
    %100 = arith.addf %98, %99 : vector<128x128xf32>
    %101 = math.log %100 : vector<128x128xf32>
    %102 = arith.subf %95, %101 : vector<128x128xf32>
    %103 = tpu.iota {dimensions = array<i32: 1>} : vector<8x128xi32>
    %c8_i32 = arith.constant 8 : i32
    %104 = vector.broadcast %c8_i32 : i32 to vector<8x128xi32>
    %105 = arith.cmpi slt, %103, %104 : vector<8x128xi32>
    %106 = arith.extui %105 : vector<8x128xi1> to vector<8x128xi32>
    %107 = arith.sitofp %106 : vector<8x128xi32> to vector<8x128xf32>
    %108 = tpu.transpose %102, [1, 0] : vector<128x128xf32> -> vector<128x128xf32>
    %cst_49 = arith.constant dense<0.000000e+00> : vector<8x128xf32>
    %109 = tpu.matmul %107, %108, %cst_49 {dimension_numbers = #tpu.dot_dimension_numbers<[1], [0], [0], [1], [0, 0, 1, 1], [], []>} : vector<8x128xf32>, vector<128x128xf32>, vector<8x128xf32> -> vector<8x128xf32>
    %110 = vector.extract_strided_slice %109 {offsets = [0, 0], sizes = [1, 128], strides = [1, 1]} : vector<8x128xf32> to vector<1x128xf32>
    %c0_50 = arith.constant 0 : index
    %c0_51 = arith.constant 0 : index
    %111 = vector.load %arg12[%c0_50, %c0_51] : memref<1x128xf32, #tpu.memory_space<vmem>>, vector<1x128xf32>
    tpu.vector_store %arg12[%c0_50, %c0_51], %110 {strides = array<i32>} : memref<1x128xf32, #tpu.memory_space<vmem>>, vector<1x128xf32>,
    return
  }
  func.func @transform_0(%arg0: i32) -> (i32, i32) {
    %c0_i32 = arith.constant 0 : i32
    %c0_i32_0 = arith.constant 0 : i32
    return %arg0, %c0_i32 : i32, i32
  }
  func.func @transform_1(%arg0: i32) -> (i32, i32) {
    %c0_i32 = arith.constant 0 : i32
    %c0_i32_0 = arith.constant 0 : i32
    return %arg0, %c0_i32 : i32, i32
  }
  func.func @transform_2(%arg0: i32) -> (i32, i32) {
    %c0_i32 = arith.constant 0 : i32
    %c0_i32_0 = arith.constant 0 : i32
    %c0_i32_1 = arith.constant 0 : i32
    return %c0_i32, %c0_i32_0 : i32, i32
  }
  func.func @transform_3(%arg0: i32) -> (i32, i32) {
    %c0_i32 = arith.constant 0 : i32
    %c0_i32_0 = arith.constant 0 : i32
    %c0_i32_1 = arith.constant 0 : i32
    return %c0_i32, %c0_i32_0 : i32, i32
  }
  func.func @transform_4(%arg0: i32) -> (i32, i32) {
    %c0_i32 = arith.constant 0 : i32
    %c0_i32_0 = arith.constant 0 : i32
    %c0_i32_1 = arith.constant 0 : i32
    return %c0_i32, %c0_i32_0 : i32, i32
  }
  func.func @transform_5(%arg0: i32) -> (i32, i32) {
    %c0_i32 = arith.constant 0 : i32
    %c0_i32_0 = arith.constant 0 : i32
    %c0_i32_1 = arith.constant 0 : i32
    return %c0_i32, %c0_i32_0 : i32, i32
  }
  func.func @transform_6(%arg0: i32) -> (i32, i32) {
    %c0_i32 = arith.constant 0 : i32
    %c0_i32_0 = arith.constant 0 : i32
    %c0_i32_1 = arith.constant 0 : i32
    return %c0_i32, %c0_i32_0 : i32, i32
  }
  func.func @transform_7(%arg0: i32) -> (i32, i32) {
    %c0_i32 = arith.constant 0 : i32
    %c0_i32_0 = arith.constant 0 : i32
    %c0_i32_1 = arith.constant 0 : i32
    return %c0_i32, %c0_i32_0 : i32, i32
  }
  func.func @transform_8(%arg0: i32) -> (i32, i32) {
    %c0_i32 = arith.constant 0 : i32
    %c0_i32_0 = arith.constant 0 : i32
    %c0_i32_1 = arith.constant 0 : i32
    return %c0_i32, %c0_i32_0 : i32, i32
  }
  func.func @transform_9(%arg0: i32) -> (i32, i32) {
    %c0_i32 = arith.constant 0 : i32
    %c0_i32_0 = arith.constant 0 : i32
    %c0_i32_1 = arith.constant 0 : i32
    return %c0_i32, %c0_i32_0 : i32, i32
  }
  func.func @transform_10(%arg0: i32) -> (i32, i32) {
    %c0_i32 = arith.constant 0 : i32
    %c0_i32_0 = arith.constant 0 : i32
    return %arg0, %c0_i32 : i32, i32
  }
  func.func @transform_11(%arg0: i32) -> (i32, i32) {
    %c0_i32 = arith.constant 0 : i32
    %c0_i32_0 = arith.constant 0 : i32
    return %c0_i32, %arg0 : i32, i32
  }
}

</mosaic_0001>

<bundles_post_ra>
// kernel: actor_forward.1
= control target key start
LH: loop header
LB: loop body
LE: loop exit
PB: predicated region body
PF: predicated region fallthrough
CT: control target
= control target key end

     0   :  { %s4083_s0 = inlined_call_operand.vmem [shape: f32[256,16], index: 0, kind: input, shape index: {}]   ;;  %s4084_s1 = inlined_call_operand.vmem [shape: f32[256,128], index: 1, kind: input, shape index: {}]   ;;  %s4085_s2 = inlined_call_operand.vmem [shape: f32[16,128], index: 2, kind: input, shape index: {}]   ;;  %s4086_s3 = inlined_call_operand.vmem [shape: f32[1,128], index: 3, kind: input, shape index: {}]   ;;  %s4087_s4 = inlined_call_operand.vmem [shape: f32[128,128], index: 4, kind: input, shape index: {}]   ;;  %s4088_s5 = inlined_call_operand.vmem [shape: f32[1,128], index: 5, kind: input, shape index: {}]   ;;  %s4089_s6 = inlined_call_operand.vmem [shape: f32[128,128], index: 6, kind: input, shape index: {}]   ;;  %s4090_s7 = inlined_call_operand.vmem [shape: f32[1,128], index: 7, kind: input, shape index: {}]   ;;  %s4091_s8 = inlined_call_operand.vmem [shape: f32[128,256], index: 8, kind: input, shape index: {}]   ;;  %s4092_s9 = inlined_call_operand.vmem [shape: f32[1,256], index: 9, kind: input, shape index: {}]   ;;  %s4093_s10 = inlined_call_operand.vmem [shape: f32[256,8], index: 10, kind: output, shape index: {0}]   ;;  %s4094_s11 = inlined_call_operand.hbm [shape: f32[1,256], index: 11, kind: output, shape index: {1}]  }
   0x1   :  { %4095 = sst [smem:[#allocation5_spill]] %s4083_s0 }
   0x2   :  { %4096 = sst [smem:[#allocation6_spill]] %s4084_s1 }
   0x3   :  { %17 = vsyncpa [#allocation3], 0 }
   0x4   :  { %19 = vsyncpa [#allocation3 + $0x1], 0  ;;  %s2770_s17 = smov 0   ;;  %s2772_s18 = smov 0  }
   0x5   :  { %s2774_s19 = smov 0   ;;  %s2776_s20 = smov 0  }
   0x6 LB: > { %s2791_s21 = sadd.s32 4294967295, %s2706_s20   ;;  %s2356_s22 = sadd.s32 4294967294, %s2706_s20   ;;  %s2706_s20 = sphi %s2776_s20, %s4104_s20   ;;  %s2702_s19 = sphi %s2774_s19, %s4103_s19   ;;  %s2698_s18 = sphi %s2772_s18, %s4102_s18   ;;  %s2694_s17 = sphi %s2770_s17, %s4101_s17  }
   0x7   : > { %s2795_s23 = sadd.s32 1, %s2706_s20   ;;  %s278_s24 = sadd.s32 1, %s2702_s19 }
   0x8   : > { %s275_s25 = ssub.s32 %s2706_s20, %s2795_s23  ;;  %p288_p0 = scmp.ne.s32.totalorder %s2702_s19, %s2698_s18 }
   0x9   : > { %p276_p1 = scmp.eq.s32.totalorder %s275_s25, 0  ;;  %p289_p2 = scmp.eq.s32.totalorder %s2791_s21, 1 }
   0xa   : > { %p294_p3 = scmp.ne.s32.totalorder %s2698_s18, %s2694_s17  ;;  %p295_p4 = scmp.eq.s32.totalorder %s2356_s22, 1 }
   0xb   : > { %s2806_s26 = scalar_select %p276_p1, %s2702_s19, %s278_s24  }
   0xc   : > { %p2808_p5 = por %p289_p2, %p288_p0  ;;  %p2812_p6 = por %p295_p4, %p294_p3 }
   0xd   : > { %p2359_p7 = scmp.ge.s32.totalorder %s2706_s20, 1  ;;  %p355_p8 = scmp.lt.s32.totalorder %s2706_s20, 3 }
   0xf   : > { %p356_p9 = pnand %p2359_p7, %p355_p8 }
  0x10   : > { %s2360_s14 = sshll.u32 (!%p356_p9), %s2791_s21, 4  ;;  %s4099_s0 = sld [smem:[#allocation5_spill]] (!%p356_p9) }
  0x11   : > { %359 = sbr.rel (%p356_p9) target bundleno = 1837 (0x72d), region = 60  ;;  %p405_p10 = scmp.lt.s32.totalorder (!%p356_p9), %s2360_s14, 31 }
  0x12   : > { %s4100_s1 = sld [smem:[#allocation6_spill]] (!%p356_p9)  ;;  %s2664_s12 = scalar_lea.hbm (!%p356_p9), %s4094_s11, 2 }
  0x16   : > { %v439_v0 = vld [vmem:[%s4085_s2 + $0x8] sm:$0xff]  ;;  %v438_v1 = vld [vmem:[%s4085_s2] sm:$0xff]  ;;  %s4106_s14 = smov (!%p405_p10, %s2360_s14), 31  ;;  %vm444_vm0 = vcmask 130048   ;;  %v2708_v31 = vmov 128.0   ;;  %v916_v57 = vld [vmem:[%s4087_s4 + $0x78] sm:$0xff] }
  0x17   : > { %507 = vmatpush.msra.mxu0 %v439_v0  ;;  %2402 = vmatpush.msra.mxu2 %v439_v0  ;;  %s2825_s15 = sshll.u32 %s4106_s14, 3  ;;  %v2862_v15 = vld [vmem:[%s4086_s3] ss:$0 sm:$0xff]  ;;  %2450 = vrcp.f32 %v2708_v31  ;;  %v915_v58 = vld [vmem:[%s4087_s4 + $0x70] sm:$0xff]  ;;  %v914_v62 = vld [vmem:[%s4087_s4 + $0x68] sm:$0xff]  ;;  %s2260_s14 = scalar_lea.hbm %s4094_s11, %s2791_s21 }
  0x18   : > { %2403 = vmatpush.msra.mxu3 %v439_v0  ;;  %s2831_s24 = scalar_lea.vmem %s4099_s0, %s2825_s15  ;;  %921 = vmatpush.msra.mxu1 %v916_v57  ;;  %v904_v31 = vld [vmem:[%s4087_s4 + $0x18] sm:$0xff]  ;;  %s3612_s0 = scalar_lea.vmem %s4100_s1, %s2825_s15 }
  0x19   : > { %508 = vmatpush.msra.mxu0 %v438_v1  ;;  %2404 = vmatpush.msra.mxu2 %v438_v1  ;;  %v422_v2 = vld [vmem:[%s2831_s24] sm:$0xff]  ;;  %v428_v3 = vld [vmem:[%s2831_s24 + $0x30] sm:$0xff]  ;;  %v423_v4 = vld [vmem:[%s2831_s24 + $0x8] sm:$0xff]  ;;  %s3704_s30 = scalar_lea.vmem %s4093_s10, %s2825_s15  ;;  %s402_s15 = sand.u32 1, %s2698_s18  }
  0x1a   : > { %2405 = vmatpush.msra.mxu3 %v438_v1  ;;  %2366 = vmatmul.msk.f32.vlgmr.msra.gmra.mxu0 %vm444_vm0, %v422_v2  ;;  %v429_v5 = vld [vmem:[%s2831_s24 + $0x38] sm:$0xff]  ;;  %v424_v6 = vld [vmem:[%s2831_s24 + $0x10] sm:$0xff]  ;;  %v426_v8 = vld [vmem:[%s2831_s24 + $0x20] sm:$0xff]  ;;  %s403_s16 = scalar_lea.vmem [#allocation2], %s402_s15  ;;  %s2264_s22 = sshll.u32 %s2260_s14, 4  ;;  %s2265_s22 = int_to_ptr.hbm [resolvable:$true] %s2264_s22 }
  0x1b   : > { %2372 = vmatmul.msk.f32.vlgmr.msra.gmra.mxu2 %vm444_vm0, %v428_v3  ;;  %v425_v7 = vld [vmem:[%s2831_s24 + $0x18] sm:$0xff]  ;;  %v427_v9 = vld [vmem:[%s2831_s24 + $0x28] sm:$0xff]  ;;  %v430_v10 = vld [vmem:[%s2831_s24 + $0x40] sm:$0xff]  ;;  %922 = vmatpush.msra.mxu1 %v915_v58  ;;  %s2658_s25 = sshra.s32 %s2265_s22, 4  ;;  %s2659_s25 = int_to_ptr.hbm [resolvable:$true] %s2658_s25 }
  0x1c   : > { %v431_v11 = vld [vmem:[%s2831_s24 + $0x48] sm:$0xff]  ;;  %v432_v12 = vld [vmem:[%s2831_s24 + $0x50] sm:$0xff]  ;;  %v433_v13 = vld [vmem:[%s2831_s24 + $0x58] sm:$0xff]  ;;  %s2660_s29 = scalar_lea.hbm %s2659_s25, 1  ;;  %p2665_p0 = scmp.lt.s32.totalorder %s2659_s25, %s4094_s11 }
  0x1d   : > { %2376 = vmatmul.msk.f32.vlgmr.msra.gmra.mxu3 %vm444_vm0, %v432_v12  ;;  %v434_v14 = vld [vmem:[%s2831_s24 + $0x60] sm:$0xff]  ;;  %v435_v18 = vld [vmem:[%s2831_s24 + $0x68] sm:$0xff]  ;;  %v436_v32 = vld [vmem:[%s2831_s24 + $0x70] sm:$0xff]  ;;  %v2451_v33 = vpop.eup %2450  ;;  %923 = vmatpush.msra.mxu1 %v914_v62  ;;  %p2661_p11 = scmp.ne.s32.totalorder %s2659_s25, %s2660_s29  ;;  %p2666_p1 = scmp.lt.s32.totalorder %s2664_s12, %s2660_s29 }
  0x1e   : > { %v591_v34 = vmul.f32 128.0, %v2451_v33  ;;  %v437_v36 = vld [vmem:[%s2831_s24 + $0x78] sm:$0xff]  ;;  %vm595_vm1 = vweird.f32 %v2451_v33  ;;  %s2248_s24 = scalar_lea.sflag [#allocation3], %s402_s15 }
  0x1f   : > { %p2662_p12 = pnand %p2661_p11, %p2808_p5  ;;  %p2667_p2 = por %p2666_p1, %p2665_p0 }
  0x20   : > { %v592_v35 = vsub.f32 1.0, %v591_v34  ;;  %v901_v34 = vld [vmem:[%s4087_s4] sm:$0xff] }
  0x21   : > { %p2663_p13 = pneg %p2662_p12 }
  0x22   : > { %2367 = vmatmul.msk.f32.gmra.mxu0 %vm444_vm0, %v423_v4  ;;  %v593_v37 = vmul.f32 %v2451_v33, %v592_v35 }
  0x23   : > { %2373 = vmatmul.msk.f32.gmra.mxu2 %vm444_vm0, %v429_v5  ;;  %p2668_p3 = pnand %p2667_p2, %p2663_p13 }
  0x24   : > { %v594_v38 = vadd.f32 %v2451_v33, %v593_v37 }
  0x25   : > { %2377 = vmatmul.msk.f32.gmra.mxu3 %vm444_vm0, %v433_v13 }
  0x26   : > { %v2883_v39 = vsel %vm595_vm1, %v2451_v33, %v594_v38  ;;  %v902_v33 = vld [vmem:[%s4087_s4 + $0x8] sm:$0xff] }
  0x2a   : > { %2368 = vmatmul.msk.f32.gmra.mxu0 %vm444_vm0, %v424_v6 }
  0x2b   : > { %2374 = vmatmul.msk.f32.gmra.mxu2 %vm444_vm0, %v430_v10 }
  0x2d   : > { %2378 = vmatmul.msk.f32.gmra.mxu3 %vm444_vm0, %v434_v14 }
  0x32   : > { %2369 = vmatmul.msk.f32.gmra.mxu0 %vm444_vm0, %v425_v7 }
  0x33   : > { %2375 = vmatmul.msk.f32.gmra.mxu2 %vm444_vm0, %v431_v11 }
  0x35   : > { %2379 = vmatmul.msk.f32.gmra.mxu3 %vm444_vm0, %v435_v18 }
  0x3a   : > { %2370 = vmatmul.msk.f32.gmra.mxu0 %vm444_vm0, %v426_v8 }
  0x3d   : > { %2380 = vmatmul.msk.f32.gmra.mxu3 %vm444_vm0, %v436_v32  ;;  %v903_v32 = vld [vmem:[%s4087_s4 + $0x10] sm:$0xff] }
  0x42   : > { %2371 = vmatmul.msk.f32.gmra.mxu0 %vm444_vm0, %v427_v9 }
  0x45   : > { %2381 = vmatmul.msk.f32.gmra.mxu3 %vm444_vm0, %v437_v36 }
  0x97   : > { %v510_v16 = vpop.f32.mrf.mxu0 }
  0x98   : > { %v511_v17 = vadd.f32 %v2862_v15, %v510_v16 }
  0x9a   : > { %558 = vadd.xlane.f32.xlu0 %v511_v17 }
  0x9e   : > { %v528_v25 = vpop.f32.mrf.mxu2 }
  0x9f   : > { %v513_v19 = vpop.f32.mrf.mxu0  ;;  %v2871_v26 = vadd.f32 %v2862_v15, %v528_v25  ;;  %v910_v25 = vld [vmem:[%s4087_s4 + $0x48] sm:$0xff] }
  0xa0   : > { %v514_v20 = vadd.f32 %v2862_v15, %v513_v19  ;;  %v540_v53 = vpop.f32.mrf.mxu3 }
  0xa1   : > { %v2928_v6 = vadd.f32 %v2862_v15, %v540_v53 }
  0xa2   : > { %560 = vadd.xlane.f32.xlu0 %v514_v20 }
  0xa6   : > { %v531_v43 = vpop.f32.mrf.mxu2 }
  0xa7   : > { %v516_v21 = vpop.f32.mrf.mxu0  ;;  %v2894_v48 = vadd.f32 %v2862_v15, %v531_v43 }
  0xa8   : > { %v517_v22 = vadd.f32 %v2862_v15, %v516_v21  ;;  %v543_v1 = vpop.f32.mrf.mxu3 }
  0xa9   : > { %v2944_v16 = vadd.f32 %v2862_v15, %v543_v1 }
  0xaa   : > { %562 = vadd.xlane.f32.xlu1 %v517_v22 }
  0xae   : > { %v534_v50 = vpop.f32.mrf.mxu2 }
  0xaf   : > { %v519_v23 = vpop.f32.mrf.mxu0  ;;  %v2903_v55 = vadd.f32 %v2862_v15, %v534_v50 }
  0xb0   : > { %v520_v24 = vadd.f32 %v2862_v15, %v519_v23  ;;  %v546_v10 = vpop.f32.mrf.mxu3  ;;  %v912_v23 = vld [vmem:[%s4087_s4 + $0x58] sm:$0xff] }
  0xb2   : > { %564 = vadd.xlane.f32.xlu1 %v520_v24 }
  0xb6   : > { %v537_v60 = vpop.f32.mrf.mxu2 }
  0xb7   : > { %v522_v27 = vpop.f32.mrf.mxu0  ;;  %v2921_v0 = vadd.f32 %v2862_v15, %v537_v60 }
  0xb8   : > { %v523_v28 = vadd.f32 %v2862_v15, %v522_v27  ;;  %v549_v19 = vpop.f32.mrf.mxu3  ;;  %v908_v27 = vld [vmem:[%s4087_s4 + $0x38] sm:$0xff] }
  0xb9   : > { %v2955_v21 = vadd.f32 %v2862_v15, %v549_v19 }
  0xba   : > { %566 = vadd.xlane.f32.xlu2 %v523_v28  ;;  %570 = vadd.xlane.f32.xlu1 %v2871_v26 }
  0xbf   : > { %v525_v29 = vpop.f32.mrf.mxu0 }
  0xc0   : > { %v2876_v30 = vadd.f32 %v2862_v15, %v525_v29  ;;  %v906_v29 = vld [vmem:[%s4087_s4 + $0x28] sm:$0xff] }
  0xc2   : > { %568 = vadd.xlane.f32.xlu2 %v2876_v30 }
 0x10d   : > { %v559_v40 = vpop.xlane.xlu0 %558 }
 0x10e   : > { %v597_v41 = vmul.f32 %v2883_v39, %v559_v40 }
 0x110   : > { %v2886_v42 = vsub.f32 %v511_v17, %v597_v41 }
 0x112   : > { %v629_v44 = vmul.f32 %v2886_v42, %v2886_v42 }
 0x114   : > { %645 = vadd.xlane.f32.xlu0 %v629_v44 }
 0x115   : > { %v561_v45 = vpop.xlane.xlu0 %560 }
 0x116   : > { %v598_v46 = vmul.f32 %v2883_v39, %v561_v45 }
 0x118   : > { %v2891_v47 = vsub.f32 %v514_v20, %v598_v46  ;;  %v2952_v20 = vadd.f32 %v2862_v15, %v546_v10 }
 0x11a   : > { %v630_v49 = vmul.f32 %v2891_v47, %v2891_v47 }
 0x11c   : > { %572 = vadd.xlane.f32.xlu0 %v2894_v48  ;;  %647 = vadd.xlane.f32.xlu2 %v630_v49 }
 0x11d   : > { %v563_v51 = vpop.xlane.xlu1 %562 }
 0x11e   : > { %v599_v52 = vmul.f32 %v2883_v39, %v563_v51  ;;  %v552_v51 = vpop.f32.mrf.mxu3 }
 0x11f   : > { %v3012_v1 = vadd.f32 %v2862_v15, %v552_v51 }
 0x120   : > { %v2900_v54 = vsub.f32 %v517_v22, %v599_v52  ;;  %v913_v22 = vld [vmem:[%s4087_s4 + $0x60] sm:$0xff] }
 0x121   : > { %924 = vmatpush.msra.mxu1 %v913_v22 }
 0x122   : > { %v631_v56 = vmul.f32 %v2900_v54, %v2900_v54 }
 0x123   : > { %925 = vmatpush.msra.mxu1 %v912_v23 }
 0x124   : > { %649 = vadd.xlane.f32.xlu1 %v631_v56  ;;  %574 = vadd.xlane.f32.xlu2 %v2903_v55 }
 0x125   : > { %v565_v59 = vpop.xlane.xlu1 %564 }
 0x126   : > { %v600_v61 = vmul.f32 %v2883_v39, %v565_v59 }
 0x128   : > { %v2918_v63 = vsub.f32 %v520_v24, %v600_v61  ;;  %v911_v24 = vld [vmem:[%s4087_s4 + $0x50] sm:$0xff] }
 0x129   : > { %926 = vmatpush.msra.mxu1 %v911_v24 }
 0x12a   : > { %v632_v2 = vmul.f32 %v2918_v63, %v2918_v63 }
 0x12b   : > { %927 = vmatpush.msra.mxu1 %v910_v25 }
 0x12c   : > { %576 = vadd.xlane.f32.xlu1 %v2921_v0  ;;  %651 = vadd.xlane.f32.xlu0 %v632_v2 }
 0x12d   : > { %v567_v3 = vpop.xlane.xlu2 %566  ;;  %v571_v5 = vpop.xlane.xlu1 %570 }
 0x12e   : > { %v601_v4 = vmul.f32 %v2883_v39, %v567_v3  ;;  %v603_v8 = vmul.f32 %v2883_v39, %v571_v5 }
 0x130   : > { %v2930_v7 = vsub.f32 %v523_v28, %v601_v4  ;;  %v2937_v12 = vsub.f32 %v2871_v26, %v603_v8  ;;  %v909_v26 = vld [vmem:[%s4087_s4 + $0x40] sm:$0xff]  ;;  %v907_v28 = vld [vmem:[%s4087_s4 + $0x30] sm:$0xff] }
 0x131   : > { %928 = vmatpush.msra.mxu1 %v909_v26 }
 0x132   : > { %v633_v9 = vmul.f32 %v2930_v7, %v2930_v7  ;;  %v635_v18 = vmul.f32 %v2937_v12, %v2937_v12 }
 0x133   : > { %929 = vmatpush.msra.mxu1 %v908_v27 }
 0x134   : > { %578 = vadd.xlane.f32.xlu0 %v2928_v6  ;;  %653 = vadd.xlane.f32.xlu2 %v633_v9 }
 0x135   : > { %v569_v11 = vpop.xlane.xlu2 %568  ;;  %930 = vmatpush.msra.mxu1 %v907_v28 }
 0x136   : > { %v602_v13 = vmul.f32 %v2883_v39, %v569_v11 }
 0x137   : > { %931 = vmatpush.msra.mxu1 %v906_v29 }
 0x138   : > { %v2941_v14 = vsub.f32 %v2876_v30, %v602_v13  ;;  %v905_v30 = vld [vmem:[%s4087_s4 + $0x20] sm:$0xff] }
 0x139   : > { %932 = vmatpush.msra.mxu1 %v905_v30 }
 0x13a   : > { %v634_v17 = vmul.f32 %v2941_v14, %v2941_v14 }
 0x13b   : > { %933 = vmatpush.msra.mxu1 %v904_v31 }
 0x13c   : > { %655 = vadd.xlane.f32.xlu1 %v634_v17  ;;  %657 = vadd.xlane.f32.xlu0 %v635_v18 }
 0x13d   : > { %580 = vadd.xlane.f32.xlu2 %v2944_v16  ;;  %934 = vmatpush.msra.mxu1 %v903_v32 }
 0x13f   : > { %935 = vmatpush.msra.mxu1 %v902_v33 }
 0x141   : > { %936 = vmatpush.msra.mxu1 %v901_v34 }
 0x144   : > { %582 = vadd.xlane.f32.xlu1 %v2952_v20  ;;  %584 = vadd.xlane.f32.xlu0 %v2955_v21 }
 0x187   : > { %v646_v35 = vpop.xlane.xlu0 %645 }
 0x188   : > { %v677_v36 = vmul.f32 %v646_v35, %v2883_v39 }
 0x18a   : > { %v693_v37 = vadd.f32 1e-05, %v677_v36 }
 0x18c   : > { %2452 = vrsqrt.f32 %v693_v37  ;;  %vm715_vm3 = vweird.f32 %v693_v37 }
 0x18f   : > { %v648_v38 = vpop.xlane.xlu2 %647  ;;  %v573_v40 = vpop.xlane.xlu0 %572 }
 0x190   : > { %v678_v41 = vmul.f32 %v648_v38, %v2883_v39  ;;  %v604_v43 = vmul.f32 %v2883_v39, %v573_v40 }
 0x192   : > { %v2453_v44 = vpop.eup %2452  ;;  %v694_v45 = vadd.f32 1e-05, %v678_v41  ;;  %v3002_v46 = vsub.f32 %v2894_v48, %v604_v43 }
 0x193   : > { %v710_v49 = vmul.f32 %v2453_v44, %v693_v37  ;;  %vm716_vm2 = vweird.f32 %v2453_v44 }
 0x194   : > { %2454 = vrsqrt.f32 %v694_v45  ;;  %v636_v50 = vmul.f32 %v3002_v46, %v3002_v46  ;;  %vm717_vm4 = vmor %vm715_vm3, %vm716_vm2  ;;  %vm725_vm6 = vweird.f32 %v694_v45 }
 0x195   : > { %v711_v52 = vmul.f32 %v2453_v44, %v710_v49 }
 0x196   : > { %659 = vadd.xlane.f32.xlu2 %v636_v50 }
 0x197   : > { %v712_v53 = vmul.f32 0.5, %v711_v52  ;;  %v650_v56 = vpop.xlane.xlu1 %649  ;;  %v575_v57 = vpop.xlane.xlu2 %574 }
 0x198   : > { %v679_v58 = vmul.f32 %v650_v56, %v2883_v39  ;;  %v605_v59 = vmul.f32 %v2883_v39, %v575_v57 }
 0x199   : > { %v713_v60 = vsub.f32 1.5, %v712_v53 }
 0x19a   : > { %v2455_v61 = vpop.eup %2454  ;;  %v695_v48 = vadd.f32 1e-05, %v679_v58  ;;  %v3009_v62 = vsub.f32 %v2903_v55, %v605_v59  ;;  %v555_v55 = vpop.f32.mrf.mxu3 }
 0x19b   : > { %v720_v2 = vmul.f32 %v2455_v61, %v694_v45  ;;  %v714_v3 = vmul.f32 %v2453_v44, %v713_v60  ;;  %vm726_vm5 = vweird.f32 %v2455_v61  ;;  %v3024_v26 = vadd.f32 %v2862_v15, %v555_v55 }
 0x19c   : > { %2456 = vrsqrt.f32 %v695_v48  ;;  %v637_v4 = vmul.f32 %v3009_v62, %v3009_v62  ;;  %vm727_vm7 = vmor %vm725_vm6, %vm726_vm5  ;;  %vm735_vm9 = vweird.f32 %v695_v48 }
 0x19d   : > { %v721_v5 = vmul.f32 %v2455_v61, %v720_v2  ;;  %v718_v8 = vsel %vm717_vm4, %v2453_v44, %v714_v3 }
 0x19e   : > { %661 = vadd.xlane.f32.xlu1 %v637_v4  ;;  %586 = vadd.xlane.f32.xlu2 %v3012_v1  ;;  %v869_v9 = vmul.f32 %v718_v8, %v2886_v42 }
 0x19f   : > { %v722_v10 = vmul.f32 0.5, %v721_v5  ;;  %v577_v11 = vpop.xlane.xlu1 %576  ;;  %v652_v13 = vpop.xlane.xlu0 %651 }
 0x1a0   : > { %v606_v17 = vmul.f32 %v2883_v39, %v577_v11  ;;  %v680_v18 = vmul.f32 %v652_v13, %v2883_v39  ;;  %v885_v19 = vmax.f32 %v869_v9, 0.0 }
 0x1a1   : > { %v723_v22 = vsub.f32 1.5, %v722_v10 }
 0x1a2   : > { %v2457_v23 = vpop.eup %2456  ;;  %v3021_v24 = vsub.f32 %v2921_v0, %v606_v17  ;;  %v696_v25 = vadd.f32 1e-05, %v680_v18  ;;  %937 = vmatmul.f32.vlgmr.msra.gmra.mxu1 %v885_v19 }
 0x1a3   : > { %v730_v42 = vmul.f32 %v2457_v23, %v695_v48  ;;  %v724_v27 = vmul.f32 %v2455_v61, %v723_v22  ;;  %vm736_vm8 = vweird.f32 %v2457_v23 }
 0x1a4   : > { %2458 = vrsqrt.f32 %v696_v25  ;;  %v638_v28 = vmul.f32 %v3021_v24, %v3021_v24  ;;  %vm737_vm10 = vmor %vm735_vm9, %vm736_vm8  ;;  %vm745_vm12 = vweird.f32 %v696_v25 }
 0x1a5   : > { %v731_v29 = vmul.f32 %v2457_v23, %v730_v42  ;;  %v728_v30 = vsel %vm727_vm7, %v2455_v61, %v724_v27 }
 0x1a6   : > { %663 = vadd.xlane.f32.xlu0 %v638_v28  ;;  %588 = vadd.xlane.f32.xlu1 %v3024_v26  ;;  %v870_v0 = vmul.f32 %v728_v30, %v2891_v47 }
 0x1a7   : > { %v732_v31 = vmul.f32 0.5, %v731_v29  ;;  %v654_v32 = vpop.xlane.xlu2 %653  ;;  %v579_v33 = vpop.xlane.xlu0 %578 }
 0x1a8   : > { %v681_v15 = vmul.f32 %v654_v32, %v2883_v39  ;;  %v607_v34 = vmul.f32 %v2883_v39, %v579_v33  ;;  %v886_v35 = vmax.f32 %v870_v0, 0.0 }
 0x1a9   : > { %v733_v36 = vsub.f32 1.5, %v732_v31 }
 0x1aa   : > { %v2459_v37 = vpop.eup %2458  ;;  %v697_v38 = vadd.f32 1e-05, %v681_v15  ;;  %v3033_v40 = vsub.f32 %v2928_v6, %v607_v34  ;;  %940 = vmatmul.f32.gmra.mxu1 %v886_v35 }
 0x1ab   : > { %v740_v41 = vmul.f32 %v2459_v37, %v696_v25  ;;  %v734_v43 = vmul.f32 %v2457_v23, %v733_v36  ;;  %vm746_vm11 = vweird.f32 %v2459_v37 }
 0x1ac   : > { %2460 = vrsqrt.f32 %v697_v38  ;;  %v639_v47 = vmul.f32 %v3033_v40, %v3033_v40  ;;  %vm747_vm13 = vmor %vm745_vm12, %vm746_vm11  ;;  %vm755_vm15 = vweird.f32 %v697_v38 }
 0x1ad   : > { %v741_v44 = vmul.f32 %v2459_v37, %v740_v41  ;;  %v738_v45 = vsel %vm737_vm10, %v2457_v23, %v734_v43 }
 0x1ae   : > { %665 = vadd.xlane.f32.xlu2 %v639_v47  ;;  %v871_v49 = vmul.f32 %v738_v45, %v2900_v54 }
 0x1af   : > { %v742_v50 = vmul.f32 0.5, %v741_v44  ;;  %v656_v51 = vpop.xlane.xlu1 %655  ;;  %v658_v52 = vpop.xlane.xlu0 %657 }
 0x1b0   : > { %v682_v6 = vmul.f32 %v656_v51, %v2883_v39  ;;  %v581_v53 = vpop.xlane.xlu2 %580  ;;  %v683_v56 = vmul.f32 %v658_v52, %v2883_v39  ;;  %v887_v57 = vmax.f32 %v871_v49, 0.0 }
 0x1b1   : > { %v743_v58 = vsub.f32 1.5, %v742_v50  ;;  %v608_v59 = vmul.f32 %v2883_v39, %v581_v53 }
 0x1b2   : > { %v2461_v60 = vpop.eup %2460  ;;  %v698_v61 = vadd.f32 1e-05, %v682_v6  ;;  %v699_v48 = vadd.f32 1e-05, %v683_v56  ;;  %943 = vmatmul.f32.gmra.mxu1 %v887_v57 }
 0x1b3   : > { %v750_v2 = vmul.f32 %v2461_v60, %v697_v38  ;;  %v3042_v54 = vsub.f32 %v2944_v16, %v608_v59  ;;  %v744_v3 = vmul.f32 %v2459_v37, %v743_v58  ;;  %vm756_vm14 = vweird.f32 %v2461_v60 }
 0x1b4   : > { %2462 = vrsqrt.f32 %v698_v61  ;;  %vm757_vm0 = vmor %vm755_vm15, %vm756_vm14  ;;  %vm765_vm2 = vweird.f32 %v698_v61  ;;  %vm775_vm5 = vweird.f32 %v699_v48 }
 0x1b5   : > { %v751_v4 = vmul.f32 %v2461_v60, %v750_v2  ;;  %2464 = vrsqrt.f32 %v699_v48  ;;  %v640_v5 = vmul.f32 %v3042_v54, %v3042_v54  ;;  %v748_v8 = vsel %vm747_vm13, %v2459_v37, %v744_v3 }
 0x1b6   : > { %v872_v9 = vmul.f32 %v748_v8, %v2918_v63  ;;  %v3078_v8 = vld [vmem:[%s4088_s5] ss:$0 sm:$0xff] }
 0x1b7   : > { %v752_v55 = vmul.f32 0.5, %v751_v4  ;;  %667 = vadd.xlane.f32.xlu0 %v640_v5  ;;  %v583_v10 = vpop.xlane.xlu1 %582  ;;  %v585_v11 = vpop.xlane.xlu0 %584 }
 0x1b8   : > { %v609_v13 = vmul.f32 %v2883_v39, %v583_v10  ;;  %v610_v16 = vmul.f32 %v2883_v39, %v585_v11  ;;  %v888_v17 = vmax.f32 %v872_v9, 0.0 }
 0x1b9   : > { %v753_v18 = vsub.f32 1.5, %v752_v55 }
 0x1ba   : > { %v2463_v19 = vpop.eup %2462  ;;  %v3050_v22 = vsub.f32 %v2952_v20, %v609_v13  ;;  %v3053_v23 = vsub.f32 %v2955_v21, %v610_v16  ;;  %946 = vmatmul.f32.gmra.mxu1 %v888_v17 }
 0x1bb   : > { %v2465_v63 = vpop.eup %2464  ;;  %v760_v25 = vmul.f32 %v2463_v19, %v698_v61  ;;  %v754_v42 = vmul.f32 %v2461_v60, %v753_v18  ;;  %vm766_vm1 = vweird.f32 %v2463_v19 }
 0x1bc   : > { %v770_v27 = vmul.f32 %v2465_v63, %v699_v48  ;;  %v641_v28 = vmul.f32 %v3050_v22, %v3050_v22  ;;  %v642_v29 = vmul.f32 %v3053_v23, %v3053_v23  ;;  %vm767_vm3 = vmor %vm765_vm2, %vm766_vm1  ;;  %vm776_vm4 = vweird.f32 %v2465_v63 }
 0x1bd   : > { %v761_v30 = vmul.f32 %v2463_v19, %v760_v25  ;;  %v758_v0 = vsel %vm757_vm0, %v2461_v60, %v754_v42  ;;  %vm777_vm6 = vmor %vm775_vm5, %vm776_vm4 }
 0x1be   : > { %v771_v20 = vmul.f32 %v2465_v63, %v770_v27  ;;  %669 = vadd.xlane.f32.xlu1 %v641_v28  ;;  %671 = vadd.xlane.f32.xlu2 %v642_v29  ;;  %v873_v21 = vmul.f32 %v758_v0, %v2930_v7 }
 0x1bf   : > { %v762_v31 = vmul.f32 0.5, %v761_v30 }
 0x1c0   : > { %v772_v32 = vmul.f32 0.5, %v771_v20  ;;  %v889_v33 = vmax.f32 %v873_v21, 0.0 }
 0x1c1   : > { %v763_v15 = vsub.f32 1.5, %v762_v31 }
 0x1c2   : > { %v773_v34 = vsub.f32 1.5, %v772_v32  ;;  %949 = vmatmul.f32.gmra.mxu1 %v889_v33 }
 0x1c3   : > { %v764_v35 = vmul.f32 %v2463_v19, %v763_v15 }
 0x1c4   : > { %v774_v37 = vmul.f32 %v2465_v63, %v773_v34 }
 0x1c5   : > { %v768_v36 = vsel %vm767_vm3, %v2463_v19, %v764_v35 }
 0x1c6   : > { %v874_v38 = vmul.f32 %v768_v36, %v2941_v14  ;;  %v778_v43 = vsel %vm777_vm6, %v2465_v63, %v774_v37 }
 0x1c7   : > { %v875_v7 = vmul.f32 %v778_v43, %v2937_v12 }
 0x1c8   : > { %v890_v41 = vmax.f32 %v874_v38, 0.0 }
 0x1c9   : > { %v891_v47 = vmax.f32 %v875_v7, 0.0 }
 0x1ca   : > { %952 = vmatmul.f32.gmra.mxu1 %v890_v41 }
 0x1d2   : > { %955 = vmatmul.f32.gmra.mxu1 %v891_v47 }
 0x209   : > { %v660_v44 = vpop.xlane.xlu2 %659 }
 0x20a   : > { %v684_v45 = vmul.f32 %v660_v44, %v2883_v39 }
 0x20c   : > { %v700_v49 = vadd.f32 1e-05, %v684_v45 }
 0x20e   : > { %2466 = vrsqrt.f32 %v700_v49  ;;  %vm785_vm8 = vweird.f32 %v700_v49 }
 0x211   : > { %v662_v50 = vpop.xlane.xlu1 %661  ;;  %v587_v51 = vpop.xlane.xlu2 %586 }
 0x212   : > { %v685_v52 = vmul.f32 %v662_v50, %v2883_v39  ;;  %v611_v14 = vmul.f32 %v2883_v39, %v587_v51 }
 0x214   : > { %v2467_v6 = vpop.eup %2466  ;;  %v701_v53 = vadd.f32 1e-05, %v685_v52  ;;  %v3066_v56 = vsub.f32 %v3012_v1, %v611_v14 }
 0x215   : > { %v780_v57 = vmul.f32 %v2467_v6, %v700_v49  ;;  %vm786_vm7 = vweird.f32 %v2467_v6 }
 0x216   : > { %2468 = vrsqrt.f32 %v701_v53  ;;  %v643_v12 = vmul.f32 %v3066_v56, %v3066_v56  ;;  %vm787_vm9 = vmor %vm785_vm8, %vm786_vm7  ;;  %vm795_vm11 = vweird.f32 %v701_v53 }
 0x217   : > { %v781_v58 = vmul.f32 %v2467_v6, %v780_v57 }
 0x218   : > { %673 = vadd.xlane.f32.xlu0 %v643_v12 }
 0x219   : > { %v782_v59 = vmul.f32 0.5, %v781_v58  ;;  %v589_v60 = vpop.xlane.xlu1 %588  ;;  %v664_v61 = vpop.xlane.xlu0 %663 }
 0x21a   : > { %v612_v48 = vmul.f32 %v2883_v39, %v589_v60  ;;  %v686_v2 = vmul.f32 %v664_v61, %v2883_v39 }
 0x21b   : > { %v783_v3 = vsub.f32 1.5, %v782_v59 }
 0x21c   : > { %v2469_v4 = vpop.eup %2468  ;;  %v3073_v1 = vsub.f32 %v3024_v26, %v612_v48  ;;  %v702_v5 = vadd.f32 1e-05, %v686_v2 }
 0x21d   : > { %v790_v9 = vmul.f32 %v2469_v4, %v701_v53  ;;  %v784_v55 = vmul.f32 %v2467_v6, %v783_v3  ;;  %vm796_vm10 = vweird.f32 %v2469_v4 }
 0x21e   : > { %2470 = vrsqrt.f32 %v702_v5  ;;  %v644_v10 = vmul.f32 %v3073_v1, %v3073_v1  ;;  %vm797_vm12 = vmor %vm795_vm11, %vm796_vm10  ;;  %vm805_vm14 = vweird.f32 %v702_v5 }
 0x21f   : > { %v791_v11 = vmul.f32 %v2469_v4, %v790_v9  ;;  %v938_v13 = vpop.f32.mrf.mxu1  ;;  %v788_v16 = vsel %vm787_vm9, %v2467_v6, %v784_v55 }
 0x220   : > { %v3083_v26 = vadd.f32 %v3078_v8, %v938_v13  ;;  %675 = vadd.xlane.f32.xlu1 %v644_v10  ;;  %v876_v17 = vmul.f32 %v788_v16, %v3002_v46 }
 0x221   : > { %v792_v18 = vmul.f32 0.5, %v791_v11  ;;  %v666_v19 = vpop.xlane.xlu2 %665 }
 0x222   : > { %v687_v63 = vmul.f32 %v666_v19, %v2883_v39  ;;  %986 = vadd.xlane.f32.xlu2 %v3083_v26  ;;  %v892_v25 = vmax.f32 %v876_v17, 0.0 }
 0x223   : > { %v793_v42 = vsub.f32 1.5, %v792_v18 }
 0x224   : > { %v2471_v27 = vpop.eup %2470  ;;  %v703_v28 = vadd.f32 1e-05, %v687_v63  ;;  %958 = vmatmul.f32.gmra.mxu1 %v892_v25 }
 0x225   : > { %v800_v29 = vmul.f32 %v2471_v27, %v702_v5  ;;  %v794_v30 = vmul.f32 %v2469_v4, %v793_v42  ;;  %vm806_vm13 = vweird.f32 %v2471_v27 }
 0x226   : > { %2472 = vrsqrt.f32 %v703_v28  ;;  %vm807_vm15 = vmor %vm805_vm14, %vm806_vm13  ;;  %vm815_vm1 = vweird.f32 %v703_v28 }
 0x227   : > { %v801_v0 = vmul.f32 %v2471_v27, %v800_v29  ;;  %v941_v20 = vpop.f32.mrf.mxu1  ;;  %v798_v46 = vsel %vm797_vm12, %v2469_v4, %v794_v30 }
 0x228   : > { %v3089_v21 = vadd.f32 %v3078_v8, %v941_v20  ;;  %v877_v31 = vmul.f32 %v798_v46, %v3009_v62 }
 0x229   : > { %v802_v32 = vmul.f32 0.5, %v801_v0 }
 0x22a   : > { %v668_v33 = vpop.xlane.xlu0 %667  ;;  %988 = vadd.xlane.f32.xlu0 %v3089_v21  ;;  %v893_v15 = vmax.f32 %v877_v31, 0.0 }
 0x22b   : > { %v803_v34 = vsub.f32 1.5, %v802_v32  ;;  %v688_v35 = vmul.f32 %v668_v33, %v2883_v39 }
 0x22c   : > { %v2473_v36 = vpop.eup %2472  ;;  %961 = vmatmul.f32.gmra.mxu1 %v893_v15 }
 0x22d   : > { %v810_v37 = vmul.f32 %v2473_v36, %v703_v28  ;;  %v704_v38 = vadd.f32 1e-05, %v688_v35  ;;  %v804_v41 = vmul.f32 %v2471_v27, %v803_v34  ;;  %vm816_vm0 = vweird.f32 %v2473_v36 }
 0x22e   : > { %vm817_vm2 = vmor %vm815_vm1, %vm816_vm0 }
 0x22f   : > { %v811_v43 = vmul.f32 %v2473_v36, %v810_v37  ;;  %2474 = vrsqrt.f32 %v704_v38  ;;  %v944_v7 = vpop.f32.mrf.mxu1  ;;  %v808_v62 = vsel %vm807_vm15, %v2471_v27, %v804_v41  ;;  %vm825_vm4 = vweird.f32 %v704_v38 }
 0x230   : > { %v3095_v47 = vadd.f32 %v3078_v8, %v944_v7  ;;  %v878_v44 = vmul.f32 %v808_v62, %v3021_v24 }
 0x231   : > { %v812_v45 = vmul.f32 0.5, %v811_v43  ;;  %v670_v49 = vpop.xlane.xlu1 %669  ;;  %v672_v50 = vpop.xlane.xlu2 %671 }
 0x232   : > { %v689_v51 = vmul.f32 %v670_v49, %v2883_v39  ;;  %v690_v52 = vmul.f32 %v672_v50, %v2883_v39  ;;  %990 = vadd.xlane.f32.xlu1 %v3095_v47  ;;  %v894_v14 = vmax.f32 %v878_v44, 0.0 }
 0x233   : > { %v813_v6 = vsub.f32 1.5, %v812_v45 }
 0x234   : > { %v705_v53 = vadd.f32 1e-05, %v689_v51  ;;  %v706_v57 = vadd.f32 1e-05, %v690_v52  ;;  %964 = vmatmul.f32.gmra.mxu1 %v894_v14 }
 0x235   : > { %v2475_v12 = vpop.eup %2474  ;;  %v814_v58 = vmul.f32 %v2473_v36, %v813_v6 }
 0x236   : > { %v820_v59 = vmul.f32 %v2475_v12, %v704_v38  ;;  %2476 = vrsqrt.f32 %v705_v53  ;;  %vm826_vm3 = vweird.f32 %v2475_v12  ;;  %vm835_vm7 = vweird.f32 %v705_v53 }
 0x237   : > { %2478 = vrsqrt.f32 %v706_v57  ;;  %v947_v24 = vpop.f32.mrf.mxu1  ;;  %v818_v60 = vsel %vm817_vm2, %v2473_v36, %v814_v58  ;;  %vm827_vm5 = vmor %vm825_vm4, %vm826_vm3  ;;  %vm845_vm10 = vweird.f32 %v706_v57 }
 0x238   : > { %v821_v61 = vmul.f32 %v2475_v12, %v820_v59  ;;  %v3102_v48 = vadd.f32 %v3078_v8, %v947_v24  ;;  %v879_v2 = vmul.f32 %v818_v60, %v3033_v40 }
 0x23a   : > { %v822_v3 = vmul.f32 0.5, %v821_v61  ;;  %992 = vadd.xlane.f32.xlu2 %v3102_v48  ;;  %v895_v4 = vmax.f32 %v879_v2, 0.0 }
 0x23c   : > { %v2477_v5 = vpop.eup %2476  ;;  %v823_v9 = vsub.f32 1.5, %v822_v3  ;;  %967 = vmatmul.f32.gmra.mxu1 %v895_v4 }
 0x23d   : > { %v2479_v55 = vpop.eup %2478  ;;  %v830_v10 = vmul.f32 %v2477_v5, %v705_v53  ;;  %vm836_vm6 = vweird.f32 %v2477_v5 }
 0x23e   : > { %v840_v11 = vmul.f32 %v2479_v55, %v706_v57  ;;  %v824_v13 = vmul.f32 %v2475_v12, %v823_v9  ;;  %vm837_vm8 = vmor %vm835_vm7, %vm836_vm6  ;;  %vm846_vm9 = vweird.f32 %v2479_v55 }
 0x23f   : > { %v831_v16 = vmul.f32 %v2477_v5, %v830_v10  ;;  %v950_v17 = vpop.f32.mrf.mxu1  ;;  %vm847_vm11 = vmor %vm845_vm10, %vm846_vm9 }
 0x240   : > { %v841_v18 = vmul.f32 %v2479_v55, %v840_v11  ;;  %v3107_v19 = vadd.f32 %v3078_v8, %v950_v17  ;;  %v828_v40 = vsel %vm827_vm5, %v2475_v12, %v824_v13 }
 0x241   : > { %v832_v63 = vmul.f32 0.5, %v831_v16  ;;  %v880_v25 = vmul.f32 %v828_v40, %v3042_v54 }
 0x242   : > { %v842_v42 = vmul.f32 0.5, %v841_v18  ;;  %994 = vadd.xlane.f32.xlu0 %v3107_v19 }
 0x243   : > { %v833_v27 = vsub.f32 1.5, %v832_v63  ;;  %v896_v28 = vmax.f32 %v880_v25, 0.0 }
 0x244   : > { %v843_v29 = vsub.f32 1.5, %v842_v42 }
 0x245   : > { %970 = vmatmul.f32.gmra.mxu1 %v896_v28  ;;  %v834_v30 = vmul.f32 %v2477_v5, %v833_v27 }
 0x246   : > { %v844_v32 = vmul.f32 %v2479_v55, %v843_v29  ;;  %v1337_v29 = vld [vmem:[%s4089_s6 + $0x78] sm:$0xff] }
 0x247   : > { %v953_v0 = vpop.f32.mrf.mxu1  ;;  %v838_v20 = vsel %vm837_vm8, %v2477_v5, %v834_v30  ;;  %1342 = vmatpush.msrb.mxu2 %v1337_v29 }
 0x248   : > { %v3112_v46 = vadd.f32 %v3078_v8, %v953_v0  ;;  %v881_v31 = vmul.f32 %v838_v20, %v3050_v22  ;;  %v848_v33 = vsel %vm847_vm11, %v2479_v55, %v844_v32  ;;  %v1335_v0 = vld [vmem:[%s4089_s6 + $0x68] sm:$0xff] }
 0x249   : > { %v882_v34 = vmul.f32 %v848_v33, %v3053_v23 }
 0x24a   : > { %996 = vadd.xlane.f32.xlu1 %v3112_v46  ;;  %v897_v54 = vmax.f32 %v881_v31, 0.0 }
 0x24b   : > { %v898_v36 = vmax.f32 %v882_v34, 0.0 }
 0x24d   : > { %973 = vmatmul.f32.gmra.mxu1 %v897_v54 }
 0x24f   : > { %v956_v15 = vpop.f32.mrf.mxu1 }
 0x250   : > { %v3118_v35 = vadd.f32 %v3078_v8, %v956_v15 }
 0x252   : > { %998 = vadd.xlane.f32.xlu0 %v3118_v35 }
 0x255   : > { %976 = vmatmul.f32.gmra.mxu1 %v898_v36 }
 0x28b   : > { %v674_v22 = vpop.xlane.xlu0 %673 }
 0x28c   : > { %v691_v37 = vmul.f32 %v674_v22, %v2883_v39 }
 0x28e   : > { %v707_v38 = vadd.f32 1e-05, %v691_v37 }
 0x290   : > { %2480 = vrsqrt.f32 %v707_v38  ;;  %vm855_vm13 = vweird.f32 %v707_v38 }
 0x293   : > { %v676_v41 = vpop.xlane.xlu1 %675 }
 0x294   : > { %v692_v43 = vmul.f32 %v676_v41, %v2883_v39 }
 0x295   : > { %v987_v7 = vpop.xlane.xlu2 %986 }
 0x296   : > { %v2481_v62 = vpop.eup %2480  ;;  %v708_v44 = vadd.f32 1e-05, %v692_v43  ;;  %v1018_v23 = vmul.f32 %v987_v7, %v2883_v39 }
 0x297   : > { %v850_v45 = vmul.f32 %v2481_v62, %v707_v38  ;;  %vm856_vm12 = vweird.f32 %v2481_v62 }
 0x298   : > { %2482 = vrsqrt.f32 %v708_v44  ;;  %v3125_v49 = vsub.f32 %v3083_v26, %v1018_v23  ;;  %vm857_vm14 = vmor %vm855_vm13, %vm856_vm12  ;;  %vm865_vm0 = vweird.f32 %v708_v44  ;;  %v1333_v23 = vld [vmem:[%s4089_s6 + $0x58] sm:$0xff] }
 0x299   : > { %v851_v50 = vmul.f32 %v2481_v62, %v850_v45  ;;  %v1332_v45 = vld [vmem:[%s4089_s6 + $0x50] sm:$0xff] }
 0x29a   : > { %v1050_v51 = vmul.f32 %v3125_v49, %v3125_v49 }
 0x29b   : > { %v852_v52 = vmul.f32 0.5, %v851_v50  ;;  %v1331_v50 = vld [vmem:[%s4089_s6 + $0x48] sm:$0xff] }
 0x29c   : > { %1066 = vadd.xlane.f32.xlu2 %v1050_v51  ;;  %v1330_v51 = vld [vmem:[%s4089_s6 + $0x40] sm:$0xff] }
 0x29d   : > { %v853_v14 = vsub.f32 1.5, %v852_v52  ;;  %v989_v6 = vpop.xlane.xlu0 %988  ;;  %v1329_v52 = vld [vmem:[%s4089_s6 + $0x38] sm:$0xff] }
 0x29e   : > { %v2483_v53 = vpop.eup %2482  ;;  %v1019_v57 = vmul.f32 %v989_v6, %v2883_v39  ;;  %v1327_v6 = vld [vmem:[%s4089_s6 + $0x28] sm:$0xff] }
 0x29f   : > { %v860_v12 = vmul.f32 %v2483_v53, %v708_v44  ;;  %v854_v58 = vmul.f32 %v2481_v62, %v853_v14  ;;  %vm866_vm15 = vweird.f32 %v2483_v53  ;;  %v1328_v14 = vld [vmem:[%s4089_s6 + $0x30] sm:$0xff] }
 0x2a0   : > { %v3131_v59 = vsub.f32 %v3089_v21, %v1019_v57  ;;  %vm867_vm1 = vmor %vm865_vm0, %vm866_vm15  ;;  %v1325_v57 = vld [vmem:[%s4089_s6 + $0x18] sm:$0xff] }
 0x2a1   : > { %v861_v26 = vmul.f32 %v2483_v53, %v860_v12  ;;  %v959_v24 = vpop.f32.mrf.mxu1  ;;  %v858_v60 = vsel %vm857_vm14, %v2481_v62, %v854_v58  ;;  %v1324_v12 = vld [vmem:[%s4089_s6 + $0x10] sm:$0xff]  ;;  %v1323_v58 = vld [vmem:[%s4089_s6 + $0x8] sm:$0xff] }
 0x2a2   : > { %v3134_v61 = vadd.f32 %v3078_v8, %v959_v24  ;;  %v1051_v2 = vmul.f32 %v3131_v59, %v3131_v59  ;;  %v883_v3 = vmul.f32 %v858_v60, %v3066_v56 }
 0x2a3   : > { %v862_v4 = vmul.f32 0.5, %v861_v26  ;;  %v1322_v26 = vld [vmem:[%s4089_s6] sm:$0xff] }
 0x2a4   : > { %1000 = vadd.xlane.f32.xlu2 %v3134_v61  ;;  %1068 = vadd.xlane.f32.xlu1 %v1051_v2  ;;  %v899_v5 = vmax.f32 %v883_v3, 0.0 }
 0x2a5   : > { %v863_v9 = vsub.f32 1.5, %v862_v4  ;;  %v991_v21 = vpop.xlane.xlu1 %990 }
 0x2a6   : > { %v1020_v55 = vmul.f32 %v991_v21, %v2883_v39  ;;  %979 = vmatmul.f32.gmra.mxu1 %v899_v5 }
 0x2a7   : > { %v864_v10 = vmul.f32 %v2483_v53, %v863_v9 }
 0x2a8   : > { %v3142_v11 = vsub.f32 %v3095_v47, %v1020_v55 }
 0x2a9   : > { %v962_v13 = vpop.f32.mrf.mxu1  ;;  %v868_v16 = vsel %vm867_vm1, %v2483_v53, %v864_v10  ;;  %v1326_v53 = vld [vmem:[%s4089_s6 + $0x20] sm:$0xff] }
 0x2aa   : > { %v3145_v56 = vadd.f32 %v3078_v8, %v962_v13  ;;  %v1052_v17 = vmul.f32 %v3142_v11, %v3142_v11  ;;  %v884_v18 = vmul.f32 %v868_v16, %v3073_v1 }
 0x2ac   : > { %1070 = vadd.xlane.f32.xlu0 %v1052_v17  ;;  %1002 = vadd.xlane.f32.xlu1 %v3145_v56  ;;  %v900_v40 = vmax.f32 %v884_v18, 0.0 }
 0x2ad   : > { %v993_v63 = vpop.xlane.xlu2 %992 }
 0x2ae   : > { %v1021_v25 = vmul.f32 %v993_v63, %v2883_v39  ;;  %982 = vmatmul.f32.gmra.mxu1 %v900_v40 }
 0x2b0   : > { %v3153_v47 = vsub.f32 %v3102_v48, %v1021_v25  ;;  %v1336_v48 = vld [vmem:[%s4089_s6 + $0x70] sm:$0xff] }
 0x2b1   : > { %v965_v42 = vpop.f32.mrf.mxu1  ;;  %1343 = vmatpush.msrb.mxu2 %v1336_v48 }
 0x2b2   : > { %v3156_v27 = vadd.f32 %v3078_v8, %v965_v42  ;;  %v1053_v28 = vmul.f32 %v3153_v47, %v3153_v47 }
 0x2b3   : > { %1344 = vmatpush.msrb.mxu2 %v1335_v0 }
 0x2b4   : > { %1072 = vadd.xlane.f32.xlu2 %v1053_v28  ;;  %1004 = vadd.xlane.f32.xlu0 %v3156_v27 }
 0x2b5   : > { %v995_v1 = vpop.xlane.xlu0 %994 }
 0x2b6   : > { %v1022_v30 = vmul.f32 %v995_v1, %v2883_v39 }
 0x2b8   : > { %v3172_v20 = vsub.f32 %v3107_v19, %v1022_v30 }
 0x2b9   : > { %v968_v31 = vpop.f32.mrf.mxu1 }
 0x2ba   : > { %v3175_v32 = vadd.f32 %v3078_v8, %v968_v31  ;;  %v1054_v54 = vmul.f32 %v3172_v20, %v3172_v20 }
 0x2bc   : > { %1006 = vadd.xlane.f32.xlu2 %v3175_v32  ;;  %1074 = vadd.xlane.f32.xlu1 %v1054_v54 }
 0x2bd   : > { %v997_v33 = vpop.xlane.xlu1 %996 }
 0x2be   : > { %v1023_v15 = vmul.f32 %v997_v33, %v2883_v39 }
 0x2c0   : > { %v3182_v34 = vsub.f32 %v3112_v46, %v1023_v15 }
 0x2c2   : > { %v971_v19 = vpop.f32.mrf.mxu1  ;;  %v1055_v36 = vmul.f32 %v3182_v34, %v3182_v34 }
 0x2c3   : > { %v3187_v22 = vadd.f32 %v3078_v8, %v971_v19 }
 0x2c4   : > { %1076 = vadd.xlane.f32.xlu0 %v1055_v36 }
 0x2c5   : > { %1008 = vadd.xlane.f32.xlu1 %v3187_v22  ;;  %v999_v37 = vpop.xlane.xlu0 %998 }
 0x2c6   : > { %v1024_v38 = vmul.f32 %v999_v37, %v2883_v39 }
 0x2c8   : > { %v3192_v41 = vsub.f32 %v3118_v35, %v1024_v38  ;;  %v1334_v35 = vld [vmem:[%s4089_s6 + $0x60] sm:$0xff] }
 0x2c9   : > { %1345 = vmatpush.msrb.mxu2 %v1334_v35 }
 0x2ca   : > { %v974_v43 = vpop.f32.mrf.mxu1  ;;  %v1056_v46 = vmul.f32 %v3192_v41, %v3192_v41 }
 0x2cb   : > { %v3197_v7 = vadd.f32 %v3078_v8, %v974_v43  ;;  %1346 = vmatpush.msrb.mxu2 %v1333_v23 }
 0x2cc   : > { %1078 = vadd.xlane.f32.xlu2 %v1056_v46 }
 0x2cd   : > { %1010 = vadd.xlane.f32.xlu0 %v3197_v7  ;;  %1347 = vmatpush.msrb.mxu2 %v1332_v45 }
 0x2cf   : > { %1348 = vmatpush.msrb.mxu2 %v1331_v50 }
 0x2d1   : > { %1349 = vmatpush.msrb.mxu2 %v1330_v51 }
 0x2d2   : > { %v977_v62 = vpop.f32.mrf.mxu1 }
 0x2d3   : > { %v3201_v44 = vadd.f32 %v3078_v8, %v977_v62  ;;  %1350 = vmatpush.msrb.mxu2 %v1329_v52 }
 0x2d5   : > { %1012 = vadd.xlane.f32.xlu2 %v3201_v44  ;;  %1351 = vmatpush.msrb.mxu2 %v1328_v14 }
 0x2d7   : > { %1352 = vmatpush.msrb.mxu2 %v1327_v6 }
 0x2d9   : > { %1353 = vmatpush.msrb.mxu2 %v1326_v53 }
 0x2db   : > { %1354 = vmatpush.msrb.mxu2 %v1325_v57 }
 0x2dd   : > { %1355 = vmatpush.msrb.mxu2 %v1324_v12 }
 0x2df   : > { %1356 = vmatpush.msrb.mxu2 %v1323_v58 }
 0x2e1   : > { %1357 = vmatpush.msrb.mxu2 %v1322_v26 }
 0x30f   : > { %v1067_v24 = vpop.xlane.xlu2 %1066 }
 0x310   : > { %v1098_v60 = vmul.f32 %v1067_v24, %v2883_v39 }
 0x312   : > { %v1114_v2 = vadd.f32 1e-05, %v1098_v60 }
 0x314   : > { %2484 = vrsqrt.f32 %v1114_v2  ;;  %vm1136_vm3 = vweird.f32 %v1114_v2 }
 0x317   : > { %v1001_v3 = vpop.xlane.xlu2 %1000  ;;  %v1069_v4 = vpop.xlane.xlu1 %1068 }
 0x318   : > { %v1025_v5 = vmul.f32 %v1001_v3, %v2883_v39  ;;  %v1099_v9 = vmul.f32 %v1069_v4, %v2883_v39 }
 0x31a   : > { %v2485_v21 = vpop.eup %2484  ;;  %v3247_v55 = vsub.f32 %v3134_v61, %v1025_v5  ;;  %v1115_v10 = vadd.f32 1e-05, %v1099_v9 }
 0x31b   : > { %v1131_v13 = vmul.f32 %v2485_v21, %v1114_v2  ;;  %vm1137_vm2 = vweird.f32 %v2485_v21 }
 0x31c   : > { %2486 = vrsqrt.f32 %v1115_v10  ;;  %v1057_v16 = vmul.f32 %v3247_v55, %v3247_v55  ;;  %vm1138_vm4 = vmor %vm1136_vm3, %vm1137_vm2  ;;  %vm1146_vm6 = vweird.f32 %v1115_v10 }
 0x31d   : > { %v1132_v17 = vmul.f32 %v2485_v21, %v1131_v13 }
 0x31e   : > { %1080 = vadd.xlane.f32.xlu1 %v1057_v16 }
 0x31f   : > { %v1133_v18 = vmul.f32 0.5, %v1132_v17  ;;  %v1003_v40 = vpop.xlane.xlu1 %1002  ;;  %v1071_v63 = vpop.xlane.xlu0 %1070 }
 0x320   : > { %v1026_v25 = vmul.f32 %v1003_v40, %v2883_v39  ;;  %v1100_v42 = vmul.f32 %v1071_v63, %v2883_v39 }
 0x321   : > { %v1134_v28 = vsub.f32 1.5, %v1133_v18 }
 0x322   : > { %v2487_v1 = vpop.eup %2486  ;;  %v3254_v61 = vsub.f32 %v3145_v56, %v1026_v25  ;;  %v1116_v29 = vadd.f32 1e-05, %v1100_v42 }
 0x323   : > { %v1141_v48 = vmul.f32 %v2487_v1, %v1115_v10  ;;  %v980_v30 = vpop.f32.mrf.mxu1  ;;  %v1135_v0 = vmul.f32 %v2485_v21, %v1134_v28  ;;  %vm1147_vm5 = vweird.f32 %v2487_v1 }
 0x324   : > { %2488 = vrsqrt.f32 %v1116_v29  ;;  %v3257_v31 = vadd.f32 %v3078_v8, %v980_v30  ;;  %v1058_v54 = vmul.f32 %v3254_v61, %v3254_v61  ;;  %vm1148_vm7 = vmor %vm1146_vm6, %vm1147_vm5  ;;  %vm1156_vm9 = vweird.f32 %v1116_v29 }
 0x325   : > { %v1142_v33 = vmul.f32 %v2487_v1, %v1141_v48  ;;  %v1139_v15 = vsel %vm1138_vm4, %v2485_v21, %v1135_v0 }
 0x326   : > { %1082 = vadd.xlane.f32.xlu0 %v1058_v54  ;;  %1014 = vadd.xlane.f32.xlu1 %v3257_v31  ;;  %v1290_v56 = vmul.f32 %v1139_v15, %v3125_v49 }
 0x327   : > { %v1143_v19 = vmul.f32 0.5, %v1142_v33  ;;  %v1073_v36 = vpop.xlane.xlu2 %1072  ;;  %v1005_v37 = vpop.xlane.xlu0 %1004 }
 0x328   : > { %v1101_v38 = vmul.f32 %v1073_v36, %v2883_v39  ;;  %v1027_v43 = vmul.f32 %v1005_v37, %v2883_v39  ;;  %v1306_v46 = vmax.f32 %v1290_v56, 0.0 }
 0x329   : > { %v1144_v62 = vsub.f32 1.5, %v1143_v19 }
 0x32a   : > { %v2489_v35 = vpop.eup %2488  ;;  %v1117_v23 = vadd.f32 1e-05, %v1101_v38  ;;  %v3266_v45 = vsub.f32 %v3156_v27, %v1027_v43  ;;  %1358 = vmatmul.f32.vlgmr.msrb.gmra.mxu2 %v1306_v46 }
 0x32b   : > { %v1151_v50 = vmul.f32 %v2489_v35, %v1116_v29  ;;  %v983_v51 = vpop.f32.mrf.mxu1  ;;  %v1145_v49 = vmul.f32 %v2487_v1, %v1144_v62  ;;  %vm1157_vm8 = vweird.f32 %v2489_v35 }
 0x32c   : > { %2490 = vrsqrt.f32 %v1117_v23  ;;  %v3269_v52 = vadd.f32 %v3078_v8, %v983_v51  ;;  %v1059_v14 = vmul.f32 %v3266_v45, %v3266_v45  ;;  %vm1158_vm10 = vmor %vm1156_vm9, %vm1157_vm8  ;;  %vm1166_vm12 = vweird.f32 %v1117_v23 }
 0x32d   : > { %v1152_v6 = vmul.f32 %v2489_v35, %v1151_v50  ;;  %v1149_v53 = vsel %vm1148_vm7, %v2487_v1, %v1145_v49 }
 0x32e   : > { %1016 = vadd.xlane.f32.xlu0 %v3269_v52  ;;  %1084 = vadd.xlane.f32.xlu2 %v1059_v14  ;;  %v1291_v27 = vmul.f32 %v1149_v53, %v3131_v59 }
 0x32f   : > { %v1153_v57 = vmul.f32 0.5, %v1152_v6  ;;  %v1007_v12 = vpop.xlane.xlu2 %1006  ;;  %v1075_v58 = vpop.xlane.xlu1 %1074 }
 0x330   : > { %v1028_v26 = vmul.f32 %v1007_v12, %v2883_v39  ;;  %v1102_v24 = vmul.f32 %v1075_v58, %v2883_v39  ;;  %v1307_v8 = vmax.f32 %v1291_v27, 0.0 }
 0x331   : > { %v1154_v60 = vsub.f32 1.5, %v1153_v57 }
 0x332   : > { %v2491_v2 = vpop.eup %2490  ;;  %v3278_v3 = vsub.f32 %v3175_v32, %v1028_v26  ;;  %v1118_v4 = vadd.f32 1e-05, %v1102_v24  ;;  %1361 = vmatmul.f32.gmra.mxu2 %v1307_v8 }
 0x333   : > { %v1161_v5 = vmul.f32 %v2491_v2, %v1117_v23  ;;  %v1155_v9 = vmul.f32 %v2489_v35, %v1154_v60  ;;  %vm1167_vm11 = vweird.f32 %v2491_v2 }
 0x334   : > { %2492 = vrsqrt.f32 %v1118_v4  ;;  %v1060_v59 = vmul.f32 %v3278_v3, %v3278_v3  ;;  %vm1168_vm13 = vmor %vm1166_vm12, %vm1167_vm11  ;;  %vm1176_vm15 = vweird.f32 %v1118_v4 }
 0x335   : > { %v1162_v21 = vmul.f32 %v2491_v2, %v1161_v5  ;;  %v1159_v10 = vsel %vm1158_vm10, %v2489_v35, %v1155_v9 }
 0x336   : > { %1086 = vadd.xlane.f32.xlu1 %v1060_v59  ;;  %v1292_v13 = vmul.f32 %v1159_v10, %v3142_v11 }
 0x337   : > { %v1163_v16 = vmul.f32 0.5, %v1162_v21  ;;  %v1077_v17 = vpop.xlane.xlu0 %1076 }
 0x338   : > { %v1009_v18 = vpop.xlane.xlu1 %1008  ;;  %v1103_v32 = vmul.f32 %v1077_v17, %v2883_v39  ;;  %v1308_v40 = vmax.f32 %v1292_v13, 0.0 }
 0x339   : > { %v1164_v63 = vsub.f32 1.5, %v1163_v16  ;;  %v1029_v25 = vmul.f32 %v1009_v18, %v2883_v39 }
 0x33a   : > { %v2493_v42 = vpop.eup %2492  ;;  %v1119_v28 = vadd.f32 1e-05, %v1103_v32  ;;  %1364 = vmatmul.f32.gmra.mxu2 %v1308_v40 }
 0x33b   : > { %v1171_v1 = vmul.f32 %v2493_v42, %v1118_v4  ;;  %v3286_v29 = vsub.f32 %v3187_v22, %v1029_v25  ;;  %v1165_v48 = vmul.f32 %v2491_v2, %v1164_v63  ;;  %vm1177_vm14 = vweird.f32 %v2493_v42 }
 0x33c   : > { %2494 = vrsqrt.f32 %v1119_v28  ;;  %vm1178_vm0 = vmor %vm1176_vm15, %vm1177_vm14  ;;  %vm1186_vm2 = vweird.f32 %v1119_v28 }
 0x33d   : > { %v1172_v11 = vmul.f32 %v2493_v42, %v1171_v1  ;;  %v1061_v30 = vmul.f32 %v3286_v29, %v3286_v29  ;;  %v1169_v0 = vsel %vm1168_vm13, %v2491_v2, %v1165_v48 }
 0x33e   : > { %v1293_v54 = vmul.f32 %v1169_v0, %v3153_v47 }
 0x33f   : > { %v1173_v33 = vmul.f32 0.5, %v1172_v11  ;;  %1088 = vadd.xlane.f32.xlu2 %v1061_v30  ;;  %v1079_v15 = vpop.xlane.xlu2 %1078 }
 0x340   : > { %v1104_v56 = vmul.f32 %v1079_v15, %v2883_v39  ;;  %v1011_v19 = vpop.xlane.xlu0 %1010  ;;  %v1309_v36 = vmax.f32 %v1293_v54, 0.0 }
 0x341   : > { %v1174_v37 = vsub.f32 1.5, %v1173_v33  ;;  %v1030_v22 = vmul.f32 %v1011_v19, %v2883_v39 }
 0x342   : > { %v2495_v38 = vpop.eup %2494  ;;  %v1120_v43 = vadd.f32 1e-05, %v1104_v56  ;;  %1367 = vmatmul.f32.gmra.mxu2 %v1309_v36 }
 0x343   : > { %v1181_v46 = vmul.f32 %v2495_v38, %v1119_v28  ;;  %v3294_v62 = vsub.f32 %v3197_v7, %v1030_v22  ;;  %v1175_v47 = vmul.f32 %v2493_v42, %v1174_v37  ;;  %vm1187_vm1 = vweird.f32 %v2495_v38 }
 0x344   : > { %2496 = vrsqrt.f32 %v1120_v43  ;;  %vm1188_vm3 = vmor %vm1186_vm2, %vm1187_vm1  ;;  %vm1196_vm5 = vweird.f32 %v1120_v43 }
 0x345   : > { %v1182_v35 = vmul.f32 %v2495_v38, %v1181_v46  ;;  %v1062_v23 = vmul.f32 %v3294_v62, %v3294_v62  ;;  %v1179_v50 = vsel %vm1178_vm0, %v2493_v42, %v1175_v47 }
 0x346   : > { %v1294_v51 = vmul.f32 %v1179_v50, %v3172_v20 }
 0x347   : > { %v1183_v49 = vmul.f32 0.5, %v1182_v35  ;;  %1090 = vadd.xlane.f32.xlu0 %v1062_v23 }
 0x348   : > { %v1013_v14 = vpop.xlane.xlu2 %1012  ;;  %v1310_v6 = vmax.f32 %v1294_v51, 0.0 }
 0x349   : > { %v1184_v53 = vsub.f32 1.5, %v1183_v49  ;;  %v1031_v27 = vmul.f32 %v1013_v14, %v2883_v39 }
 0x34a   : > { %v2497_v7 = vpop.eup %2496  ;;  %1370 = vmatmul.f32.gmra.mxu2 %v1310_v6 }
 0x34b   : > { %v1191_v57 = vmul.f32 %v2497_v7, %v1120_v43  ;;  %v3301_v12 = vsub.f32 %v3201_v44, %v1031_v27  ;;  %v1185_v58 = vmul.f32 %v2495_v38, %v1184_v53  ;;  %vm1197_vm4 = vweird.f32 %v2497_v7 }
 0x34c   : > { %vm1198_vm6 = vmor %vm1196_vm5, %vm1197_vm4 }
 0x34d   : > { %v1192_v26 = vmul.f32 %v2497_v7, %v1191_v57  ;;  %v1063_v20 = vmul.f32 %v3301_v12, %v3301_v12  ;;  %v1189_v24 = vsel %vm1188_vm3, %v2495_v38, %v1185_v58 }
 0x34e   : > { %v1295_v8 = vmul.f32 %v1189_v24, %v3182_v34 }
 0x34f   : > { %v1193_v60 = vmul.f32 0.5, %v1192_v26  ;;  %1092 = vadd.xlane.f32.xlu1 %v1063_v20 }
 0x350   : > { %v1311_v2 = vmax.f32 %v1295_v8, 0.0 }
 0x351   : > { %v1194_v4 = vsub.f32 1.5, %v1193_v60 }
 0x352   : > { %1373 = vmatmul.f32.gmra.mxu2 %v1311_v2 }
 0x353   : > { %v1195_v5 = vmul.f32 %v2497_v7, %v1194_v4 }
 0x355   : > { %v1199_v44 = vsel %vm1198_vm6, %v2497_v7, %v1195_v5 }
 0x356   : > { %v1296_v9 = vmul.f32 %v1199_v44, %v3192_v41 }
 0x358   : > { %v1312_v59 = vmax.f32 %v1296_v9, 0.0 }
 0x35a   : > { %1376 = vmatmul.f32.gmra.mxu2 %v1312_v59 }
 0x391   : > { %v1081_v21 = vpop.xlane.xlu1 %1080 }
 0x392   : > { %v1105_v10 = vmul.f32 %v1081_v21, %v2883_v39 }
 0x394   : > { %v1121_v13 = vadd.f32 1e-05, %v1105_v10 }
 0x396   : > { %2498 = vrsqrt.f32 %v1121_v13  ;;  %vm1206_vm8 = vweird.f32 %v1121_v13 }
 0x399   : > { %v1015_v34 = vpop.xlane.xlu1 %1014  ;;  %v1083_v16 = vpop.xlane.xlu0 %1082 }
 0x39a   : > { %v1032_v17 = vmul.f32 %v1015_v34, %v2883_v39  ;;  %v1106_v18 = vmul.f32 %v1083_v16, %v2883_v39 }
 0x39c   : > { %v2499_v32 = vpop.eup %2498  ;;  %v3311_v40 = vsub.f32 %v3257_v31, %v1032_v17  ;;  %v1122_v63 = vadd.f32 1e-05, %v1106_v18 }
 0x39d   : > { %v1201_v25 = vmul.f32 %v2499_v32, %v1121_v13  ;;  %vm1207_vm7 = vweird.f32 %v2499_v32 }
 0x39e   : > { %2500 = vrsqrt.f32 %v1122_v63  ;;  %v1064_v41 = vmul.f32 %v3311_v40, %v3311_v40  ;;  %vm1208_vm9 = vmor %vm1206_vm8, %vm1207_vm7  ;;  %vm1216_vm11 = vweird.f32 %v1122_v63 }
 0x39f   : > { %v1202_v42 = vmul.f32 %v2499_v32, %v1201_v25 }
 0x3a0   : > { %1094 = vadd.xlane.f32.xlu2 %v1064_v41 }
 0x3a1   : > { %v1203_v28 = vmul.f32 0.5, %v1202_v42  ;;  %v1085_v1 = vpop.xlane.xlu2 %1084  ;;  %v1017_v48 = vpop.xlane.xlu0 %1016 }
 0x3a2   : > { %v1107_v11 = vmul.f32 %v1085_v1, %v2883_v39  ;;  %v1033_v30 = vmul.f32 %v1017_v48, %v2883_v39 }
 0x3a3   : > { %v1204_v0 = vsub.f32 1.5, %v1203_v28 }
 0x3a4   : > { %v2501_v54 = vpop.eup %2500  ;;  %v1123_v31 = vadd.f32 1e-05, %v1107_v11  ;;  %v3318_v33 = vsub.f32 %v3269_v52, %v1033_v30  ;;  %v3327_v52 = vld [vmem:[%s4090_s7] ss:$0 sm:$0xff] }
 0x3a5   : > { %v1211_v15 = vmul.f32 %v2501_v54, %v1122_v63  ;;  %v1205_v56 = vmul.f32 %v2499_v32, %v1204_v0  ;;  %vm1217_vm10 = vweird.f32 %v2501_v54 }
 0x3a6   : > { %2502 = vrsqrt.f32 %v1123_v31  ;;  %v1065_v19 = vmul.f32 %v3318_v33, %v3318_v33  ;;  %vm1218_vm12 = vmor %vm1216_vm11, %vm1217_vm10  ;;  %vm1226_vm14 = vweird.f32 %v1123_v31 }
 0x3a7   : > { %v1212_v36 = vmul.f32 %v2501_v54, %v1211_v15  ;;  %v1209_v37 = vsel %vm1208_vm9, %v2499_v32, %v1205_v56 }
 0x3a8   : > { %1096 = vadd.xlane.f32.xlu0 %v1065_v19  ;;  %v1297_v22 = vmul.f32 %v1209_v37, %v3247_v55 }
 0x3a9   : > { %v1213_v38 = vmul.f32 0.5, %v1212_v36  ;;  %v1087_v43 = vpop.xlane.xlu1 %1086 }
 0x3aa   : > { %v1108_v46 = vmul.f32 %v1087_v43, %v2883_v39  ;;  %v1313_v47 = vmax.f32 %v1297_v22, 0.0 }
 0x3ab   : > { %v1214_v35 = vsub.f32 1.5, %v1213_v38 }
 0x3ac   : > { %v2503_v23 = vpop.eup %2502  ;;  %v1124_v50 = vadd.f32 1e-05, %v1108_v46  ;;  %1379 = vmatmul.f32.gmra.mxu2 %v1313_v47 }
 0x3ad   : > { %v1221_v51 = vmul.f32 %v2503_v23, %v1123_v31  ;;  %v1359_v49 = vpop.f32.mrf.mxu2  ;;  %v1215_v14 = vmul.f32 %v2501_v54, %v1214_v35  ;;  %vm1227_vm13 = vweird.f32 %v2503_v23 }
 0x3ae   : > { %2504 = vrsqrt.f32 %v1124_v50  ;;  %v3330_v55 = vadd.f32 %v3327_v52, %v1359_v49  ;;  %vm1228_vm15 = vmor %vm1226_vm14, %vm1227_vm13  ;;  %vm1236_vm1 = vweird.f32 %v1124_v50 }
 0x3af   : > { %v1222_v6 = vmul.f32 %v2503_v23, %v1221_v51  ;;  %v1219_v53 = vsel %vm1218_vm12, %v2501_v54, %v1215_v14 }
 0x3b0   : > { %1407 = vadd.xlane.f32.xlu1 %v3330_v55  ;;  %v1298_v27 = vmul.f32 %v1219_v53, %v3254_v61 }
 0x3b1   : > { %v1223_v7 = vmul.f32 0.5, %v1222_v6 }
 0x3b2   : > { %v1089_v57 = vpop.xlane.xlu2 %1088  ;;  %v1314_v58 = vmax.f32 %v1298_v27, 0.0 }
 0x3b3   : > { %v1224_v26 = vsub.f32 1.5, %v1223_v7  ;;  %v1109_v20 = vmul.f32 %v1089_v57, %v2883_v39 }
 0x3b4   : > { %v2505_v24 = vpop.eup %2504  ;;  %1382 = vmatmul.f32.gmra.mxu2 %v1314_v58 }
 0x3b5   : > { %v1231_v8 = vmul.f32 %v2505_v24, %v1124_v50  ;;  %v1125_v60 = vadd.f32 1e-05, %v1109_v20  ;;  %v1362_v2 = vpop.f32.mrf.mxu2  ;;  %v1225_v4 = vmul.f32 %v2503_v23, %v1224_v26  ;;  %vm1237_vm0 = vweird.f32 %v2505_v24 }
 0x3b6   : > { %v3336_v5 = vadd.f32 %v3327_v52, %v1362_v2  ;;  %vm1238_vm2 = vmor %vm1236_vm1, %vm1237_vm0 }
 0x3b7   : > { %v1232_v44 = vmul.f32 %v2505_v24, %v1231_v8  ;;  %2506 = vrsqrt.f32 %v1125_v60  ;;  %v1229_v61 = vsel %vm1228_vm15, %v2503_v23, %v1225_v4  ;;  %vm1246_vm4 = vweird.f32 %v1125_v60 }
 0x3b8   : > { %1409 = vadd.xlane.f32.xlu2 %v3336_v5  ;;  %v1299_v9 = vmul.f32 %v1229_v61, %v3266_v45 }
 0x3b9   : > { %v1233_v59 = vmul.f32 0.5, %v1232_v44 }
 0x3ba   : > { %v1091_v21 = vpop.xlane.xlu0 %1090  ;;  %v1315_v10 = vmax.f32 %v1299_v9, 0.0 }
 0x3bb   : > { %v1234_v13 = vsub.f32 1.5, %v1233_v59  ;;  %v1110_v34 = vmul.f32 %v1091_v21, %v2883_v39 }
 0x3bc   : > { %1385 = vmatmul.f32.gmra.mxu2 %v1315_v10 }
 0x3bd   : > { %v2507_v16 = vpop.eup %2506  ;;  %v1126_v17 = vadd.f32 1e-05, %v1110_v34  ;;  %v1365_v18 = vpop.f32.mrf.mxu2  ;;  %v1235_v32 = vmul.f32 %v2505_v24, %v1234_v13 }
 0x3be   : > { %v1241_v63 = vmul.f32 %v2507_v16, %v1125_v60  ;;  %v3342_v25 = vadd.f32 %v3327_v52, %v1365_v18  ;;  %vm1247_vm3 = vweird.f32 %v2507_v16 }
 0x3bf   : > { %2508 = vrsqrt.f32 %v1126_v17  ;;  %v1239_v45 = vsel %vm1238_vm2, %v2505_v24, %v1235_v32  ;;  %vm1248_vm5 = vmor %vm1246_vm4, %vm1247_vm3  ;;  %vm1256_vm7 = vweird.f32 %v1126_v17 }
 0x3c0   : > { %v1242_v41 = vmul.f32 %v2507_v16, %v1241_v63  ;;  %1411 = vadd.xlane.f32.xlu0 %v3342_v25  ;;  %v1300_v42 = vmul.f32 %v1239_v45, %v3278_v3 }
 0x3c2   : > { %v1243_v28 = vmul.f32 0.5, %v1242_v41  ;;  %v1093_v1 = vpop.xlane.xlu1 %1092  ;;  %v1316_v48 = vmax.f32 %v1300_v42, 0.0 }
 0x3c3   : > { %v1111_v11 = vmul.f32 %v1093_v1, %v2883_v39 }
 0x3c4   : > { %v1244_v30 = vsub.f32 1.5, %v1243_v28  ;;  %1388 = vmatmul.f32.gmra.mxu2 %v1316_v48 }
 0x3c5   : > { %v2509_v0 = vpop.eup %2508  ;;  %v1127_v54 = vadd.f32 1e-05, %v1111_v11  ;;  %v1368_v31 = vpop.f32.mrf.mxu2 }
 0x3c6   : > { %v1251_v15 = vmul.f32 %v2509_v0, %v1126_v17  ;;  %v3348_v56 = vadd.f32 %v3327_v52, %v1368_v31  ;;  %v1245_v19 = vmul.f32 %v2507_v16, %v1244_v30  ;;  %vm1257_vm6 = vweird.f32 %v2509_v0 }
 0x3c7   : > { %2510 = vrsqrt.f32 %v1127_v54  ;;  %vm1258_vm8 = vmor %vm1256_vm7, %vm1257_vm6  ;;  %vm1266_vm10 = vweird.f32 %v1127_v54 }
 0x3c8   : > { %v1252_v3 = vmul.f32 %v2509_v0, %v1251_v15  ;;  %1413 = vadd.xlane.f32.xlu1 %v3348_v56  ;;  %v1249_v36 = vsel %vm1248_vm5, %v2507_v16, %v1245_v19 }
 0x3c9   : > { %v1301_v37 = vmul.f32 %v1249_v36, %v3286_v29 }
 0x3ca   : > { %v1253_v22 = vmul.f32 0.5, %v1252_v3 }
 0x3cb   : > { %v1317_v38 = vmax.f32 %v1301_v37, 0.0 }
 0x3cc   : > { %v1254_v43 = vsub.f32 1.5, %v1253_v22 }
 0x3cd   : > { %v2511_v46 = vpop.eup %2510  ;;  %1391 = vmatmul.f32.gmra.mxu2 %v1317_v38  ;;  %v1371_v47 = vpop.f32.mrf.mxu2 }
 0x3ce   : > { %v1261_v35 = vmul.f32 %v2511_v46, %v1127_v54  ;;  %v3353_v23 = vadd.f32 %v3327_v52, %v1371_v47  ;;  %v1255_v50 = vmul.f32 %v2509_v0, %v1254_v43  ;;  %vm1267_vm9 = vweird.f32 %v2511_v46 }
 0x3cf   : > { %vm1268_vm11 = vmor %vm1266_vm10, %vm1267_vm9 }
 0x3d0   : > { %v1262_v51 = vmul.f32 %v2511_v46, %v1261_v35  ;;  %1415 = vadd.xlane.f32.xlu2 %v3353_v23  ;;  %v1259_v49 = vsel %vm1258_vm8, %v2509_v0, %v1255_v50 }
 0x3d1   : > { %v1302_v29 = vmul.f32 %v1259_v49, %v3294_v62  ;;  %v1773_v49 = vld [vmem:[%s4091_s8 + $0xf0] sm:$0xff] }
 0x3d2   : > { %v1263_v14 = vmul.f32 0.5, %v1262_v51  ;;  %1781 = vmatpush.msrb.mxu3 %v1773_v49 }
 0x3d3   : > { %v1318_v6 = vmax.f32 %v1302_v29, 0.0  ;;  %v1771_v29 = vld [vmem:[%s4091_s8 + $0xe0] sm:$0xff] }
 0x3d4   : > { %v1264_v53 = vsub.f32 1.5, %v1263_v14  ;;  %1782 = vmatpush.msrb.mxu3 %v1771_v29 }
 0x3d5   : > { %1394 = vmatmul.f32.gmra.mxu2 %v1318_v6  ;;  %v1374_v27 = vpop.f32.mrf.mxu2  ;;  %v1772_v6 = vld [vmem:[%s4091_s8 + $0xe8] sm:$0xff] }
 0x3d6   : > { %v3358_v7 = vadd.f32 %v3327_v52, %v1374_v27  ;;  %v1265_v57 = vmul.f32 %v2511_v46, %v1264_v53  ;;  %v1769_v53 = vld [vmem:[%s4091_s8 + $0xd0] sm:$0xff]  ;;  %v1770_v27 = vld [vmem:[%s4091_s8 + $0xd8] sm:$0xff] }
 0x3d7   : > { %1783 = vmatpush.msrb.mxu3 %v1769_v53 }
 0x3d8   : > { %1417 = vadd.xlane.f32.xlu0 %v3358_v7  ;;  %v1269_v58 = vsel %vm1268_vm11, %v2511_v46, %v1265_v57 }
 0x3d9   : > { %v1303_v26 = vmul.f32 %v1269_v58, %v3301_v12 }
 0x3db   : > { %v1319_v20 = vmax.f32 %v1303_v26, 0.0 }
 0x3dd   : > { %1397 = vmatmul.f32.gmra.mxu2 %v1319_v20  ;;  %v1377_v62 = vpop.f32.mrf.mxu2 }
 0x3de   : > { %v3363_v24 = vadd.f32 %v3327_v52, %v1377_v62 }
 0x3e0   : > { %1419 = vadd.xlane.f32.xlu2 %v3363_v24 }
 0x413   : > { %v1095_v8 = vpop.xlane.xlu2 %1094 }
 0x414   : > { %v1112_v60 = vmul.f32 %v1095_v8, %v2883_v39 }
 0x416   : > { %v1128_v2 = vadd.f32 1e-05, %v1112_v60 }
 0x418   : > { %2512 = vrsqrt.f32 %v1128_v2  ;;  %vm1276_vm13 = vweird.f32 %v1128_v2 }
 0x41b   : > { %v1097_v4 = vpop.xlane.xlu0 %1096 }
 0x41c   : > { %v1113_v44 = vmul.f32 %v1097_v4, %v2883_v39 }
 0x41e   : > { %v2513_v61 = vpop.eup %2512  ;;  %v1129_v9 = vadd.f32 1e-05, %v1113_v44 }
 0x41f   : > { %v1271_v59 = vmul.f32 %v2513_v61, %v1128_v2  ;;  %vm1277_vm12 = vweird.f32 %v2513_v61 }
 0x420   : > { %2514 = vrsqrt.f32 %v1129_v9  ;;  %vm1278_vm14 = vmor %vm1276_vm13, %vm1277_vm12  ;;  %vm1286_vm0 = vweird.f32 %v1129_v9 }
 0x421   : > { %v1272_v12 = vmul.f32 %v2513_v61, %v1271_v59 }
 0x423   : > { %v1273_v21 = vmul.f32 0.5, %v1272_v12  ;;  %v1408_v10 = vpop.xlane.xlu1 %1407 }
 0x424   : > { %v1439_v13 = vmul.f32 %v1408_v10, %v2883_v39 }
 0x425   : > { %v1274_v34 = vsub.f32 1.5, %v1273_v21 }
 0x426   : > { %v2515_v16 = vpop.eup %2514  ;;  %v3370_v17 = vsub.f32 %v3330_v55, %v1439_v13  ;;  %v1768_v13 = vld [vmem:[%s4091_s8 + $0xc8] sm:$0xff] }
 0x427   : > { %v1281_v18 = vmul.f32 %v2515_v16, %v1129_v9  ;;  %v1275_v32 = vmul.f32 %v2513_v61, %v1274_v34  ;;  %vm1287_vm15 = vweird.f32 %v2515_v16  ;;  %v1765_v34 = vld [vmem:[%s4091_s8 + $0xb0] sm:$0xff] }
 0x428   : > { %v1471_v63 = vmul.f32 %v3370_v17, %v3370_v17  ;;  %vm1288_vm1 = vmor %vm1286_vm0, %vm1287_vm15 }
 0x429   : > { %v1282_v45 = vmul.f32 %v2515_v16, %v1281_v18  ;;  %v1279_v41 = vsel %vm1278_vm14, %v2513_v61, %v1275_v32  ;;  %v1763_v18 = vld [vmem:[%s4091_s8 + $0xa0] sm:$0xff]  ;;  %v1764_v32 = vld [vmem:[%s4091_s8 + $0xa8] sm:$0xff] }
 0x42a   : > { %1487 = vadd.xlane.f32.xlu1 %v1471_v63  ;;  %v1304_v42 = vmul.f32 %v1279_v41, %v3311_v40  ;;  %v1761_v63 = vld [vmem:[%s4091_s8 + $0x90] sm:$0xff]  ;;  %v1759_v41 = vld [vmem:[%s4091_s8 + $0x80] sm:$0xff] }
 0x42b   : > { %v1283_v28 = vmul.f32 0.5, %v1282_v45  ;;  %v1410_v1 = vpop.xlane.xlu2 %1409  ;;  %v1762_v45 = vld [vmem:[%s4091_s8 + $0x98] sm:$0xff] }
 0x42c   : > { %v1440_v48 = vmul.f32 %v1410_v1, %v2883_v39  ;;  %v1320_v11 = vmax.f32 %v1304_v42, 0.0  ;;  %v1760_v42 = vld [vmem:[%s4091_s8 + $0x88] sm:$0xff]  ;;  %v1758_v1 = vld [vmem:[%s4091_s8 + $0x78] sm:$0xff] }
 0x42d   : > { %v1284_v30 = vsub.f32 1.5, %v1283_v28  ;;  %v1757_v28 = vld [vmem:[%s4091_s8 + $0x70] sm:$0xff] }
 0x42e   : > { %v3377_v55 = vsub.f32 %v3336_v5, %v1440_v48  ;;  %1400 = vmatmul.f32.gmra.mxu2 %v1320_v11  ;;  %v1755_v48 = vld [vmem:[%s4091_s8 + $0x60] sm:$0xff]  ;;  %v1756_v11 = vld [vmem:[%s4091_s8 + $0x68] sm:$0xff] }
 0x42f   : > { %v1380_v0 = vpop.f32.mrf.mxu2  ;;  %v1285_v54 = vmul.f32 %v2515_v16, %v1284_v30  ;;  %v1753_v30 = vld [vmem:[%s4091_s8 + $0x50] sm:$0xff] }
 0x430   : > { %v3380_v31 = vadd.f32 %v3327_v52, %v1380_v0  ;;  %v1472_v40 = vmul.f32 %v3377_v55, %v3377_v55  ;;  %v1754_v0 = vld [vmem:[%s4091_s8 + $0x58] sm:$0xff] }
 0x431   : > { %v1289_v15 = vsel %vm1288_vm1, %v2515_v16, %v1285_v54  ;;  %v1766_v16 = vld [vmem:[%s4091_s8 + $0xb8] sm:$0xff]  ;;  %v1751_v54 = vld [vmem:[%s4091_s8 + $0x40] sm:$0xff] }
 0x432   : > { %1421 = vadd.xlane.f32.xlu1 %v3380_v31  ;;  %1489 = vadd.xlane.f32.xlu0 %v1472_v40  ;;  %v1305_v19 = vmul.f32 %v1289_v15, %v3318_v33  ;;  %v1752_v40 = vld [vmem:[%s4091_s8 + $0x48] sm:$0xff]  ;;  %v1749_v15 = vld [vmem:[%s4091_s8 + $0x30] sm:$0xff] }
 0x433   : > { %v1412_v3 = vpop.xlane.xlu0 %1411 }
 0x434   : > { %v1441_v5 = vmul.f32 %v1412_v3, %v2883_v39  ;;  %v1321_v36 = vmax.f32 %v1305_v19, 0.0  ;;  %v1750_v19 = vld [vmem:[%s4091_s8 + $0x38] sm:$0xff]  ;;  %v1747_v3 = vld [vmem:[%s4091_s8 + $0x20] sm:$0xff] }
 0x436   : > { %v3388_v37 = vsub.f32 %v3342_v25, %v1441_v5  ;;  %1403 = vmatmul.f32.gmra.mxu2 %v1321_v36  ;;  %v1748_v5 = vld [vmem:[%s4091_s8 + $0x28] sm:$0xff]  ;;  %v1745_v36 = vld [vmem:[%s4091_s8 + $0x10] sm:$0xff] }
 0x437   : > { %v1383_v22 = vpop.f32.mrf.mxu2 }
 0x438   : > { %v3391_v38 = vadd.f32 %v3327_v52, %v1383_v22  ;;  %v1473_v43 = vmul.f32 %v3388_v37, %v3388_v37  ;;  %v1746_v22 = vld [vmem:[%s4091_s8 + $0x18] sm:$0xff] }
 0x43a   : > { %1423 = vadd.xlane.f32.xlu0 %v3391_v38  ;;  %1491 = vadd.xlane.f32.xlu2 %v1473_v43  ;;  %v1743_v43 = vld [vmem:[%s4091_s8] sm:$0xff] }
 0x43b   : > { %v1414_v46 = vpop.xlane.xlu1 %1413 }
 0x43c   : > { %v1442_v33 = vmul.f32 %v1414_v46, %v2883_v39  ;;  %v1744_v46 = vld [vmem:[%s4091_s8 + $0x8] sm:$0xff] }
 0x43e   : > { %v3398_v47 = vsub.f32 %v3348_v56, %v1442_v33  ;;  %v1774_v56 = vld [vmem:[%s4091_s8 + $0xf8] sm:$0xff] }
 0x43f   : > { %v1386_v35 = vpop.f32.mrf.mxu2  ;;  %1846 = vmatpush.msrb.mxu0 %v1774_v56 }
 0x440   : > { %v3401_v25 = vadd.f32 %v3327_v52, %v1386_v35  ;;  %v1474_v50 = vmul.f32 %v3398_v47, %v3398_v47 }
 0x441   : > { %1847 = vmatpush.msrb.mxu0 %v1772_v6 }
 0x442   : > { %1493 = vadd.xlane.f32.xlu1 %v1474_v50  ;;  %1425 = vadd.xlane.f32.xlu2 %v3401_v25 }
 0x443   : > { %v1416_v51 = vpop.xlane.xlu2 %1415  ;;  %1848 = vmatpush.msrb.mxu0 %v1770_v27 }
 0x444   : > { %v1443_v14 = vmul.f32 %v1416_v51, %v2883_v39 }
 0x445   : > { %1849 = vmatpush.msrb.mxu0 %v1768_v13 }
 0x446   : > { %v3426_v57 = vsub.f32 %v3353_v23, %v1443_v14 }
 0x447   : > { %v1389_v58 = vpop.f32.mrf.mxu2  ;;  %1850 = vmatpush.msrb.mxu0 %v1766_v16 }
 0x448   : > { %v3429_v26 = vadd.f32 %v3327_v52, %v1389_v58  ;;  %v1475_v20 = vmul.f32 %v3426_v57, %v3426_v57 }
 0x449   : > { %1851 = vmatpush.msrb.mxu0 %v1764_v32 }
 0x44a   : > { %1427 = vadd.xlane.f32.xlu1 %v3429_v26  ;;  %1495 = vadd.xlane.f32.xlu0 %v1475_v20 }
 0x44b   : > { %v1418_v62 = vpop.xlane.xlu0 %1417  ;;  %1852 = vmatpush.msrb.mxu0 %v1762_v45 }
 0x44c   : > { %v1444_v8 = vmul.f32 %v1418_v62, %v2883_v39 }
 0x44d   : > { %1853 = vmatpush.msrb.mxu0 %v1760_v42 }
 0x44e   : > { %v3436_v23 = vsub.f32 %v3358_v7, %v1444_v8 }
 0x44f   : > { %1854 = vmatpush.msrb.mxu0 %v1758_v1 }
 0x450   : > { %v1392_v60 = vpop.f32.mrf.mxu2  ;;  %v1476_v2 = vmul.f32 %v3436_v23, %v3436_v23 }
 0x451   : > { %v3441_v4 = vadd.f32 %v3327_v52, %v1392_v60  ;;  %1855 = vmatpush.msrb.mxu0 %v1756_v11 }
 0x452   : > { %1497 = vadd.xlane.f32.xlu2 %v1476_v2 }
 0x453   : > { %1429 = vadd.xlane.f32.xlu0 %v3441_v4  ;;  %v1420_v44 = vpop.xlane.xlu2 %1419  ;;  %1856 = vmatpush.msrb.mxu0 %v1754_v0 }
 0x454   : > { %v1445_v61 = vmul.f32 %v1420_v44, %v2883_v39 }
 0x455   : > { %1857 = vmatpush.msrb.mxu0 %v1752_v40 }
 0x456   : > { %v3446_v9 = vsub.f32 %v3363_v24, %v1445_v61  ;;  %v1767_v24 = vld [vmem:[%s4091_s8 + $0xc0] sm:$0xff] }
 0x457   : > { %1784 = vmatpush.msrb.mxu3 %v1767_v24  ;;  %1858 = vmatpush.msrb.mxu0 %v1750_v19 }
 0x458   : > { %v1395_v59 = vpop.f32.mrf.mxu2  ;;  %v1477_v7 = vmul.f32 %v3446_v9, %v3446_v9 }
 0x459   : > { %v3451_v12 = vadd.f32 %v3327_v52, %v1395_v59  ;;  %1785 = vmatpush.msrb.mxu3 %v1765_v34  ;;  %1859 = vmatpush.msrb.mxu0 %v1748_v5 }
 0x45a   : > { %1499 = vadd.xlane.f32.xlu1 %v1477_v7 }
 0x45b   : > { %1431 = vadd.xlane.f32.xlu2 %v3451_v12  ;;  %1786 = vmatpush.msrb.mxu3 %v1763_v18 }
 0x45c   : > { %1860 = vmatpush.msrb.mxu0 %v1746_v22 }
 0x45d   : > { %1787 = vmatpush.msrb.mxu3 %v1761_v63 }
 0x45e   : > { %1861 = vmatpush.msrb.mxu0 %v1744_v46 }
 0x45f   : > { %1788 = vmatpush.msrb.mxu3 %v1759_v41 }
 0x460   : > { %v1398_v21 = vpop.f32.mrf.mxu2 }
 0x461   : > { %v3455_v10 = vadd.f32 %v3327_v52, %v1398_v21  ;;  %1789 = vmatpush.msrb.mxu3 %v1757_v28 }
 0x463   : > { %1433 = vadd.xlane.f32.xlu1 %v3455_v10  ;;  %1790 = vmatpush.msrb.mxu3 %v1755_v48 }
 0x465   : > { %1791 = vmatpush.msrb.mxu3 %v1753_v30 }
 0x467   : > { %1792 = vmatpush.msrb.mxu3 %v1751_v54 }
 0x469   : > { %1793 = vmatpush.msrb.mxu3 %v1749_v15 }
 0x46b   : > { %1794 = vmatpush.msrb.mxu3 %v1747_v3 }
 0x46d   : > { %1795 = vmatpush.msrb.mxu3 %v1745_v36 }
 0x46f   : > { %1796 = vmatpush.msrb.mxu3 %v1743_v43 }
 0x49d   : > { %v1488_v33 = vpop.xlane.xlu1 %1487 }
 0x49e   : > { %v1519_v35 = vmul.f32 %v1488_v33, %v2883_v39 }
 0x4a0   : > { %v1535_v50 = vadd.f32 1e-05, %v1519_v35 }
 0x4a2   : > { %2516 = vrsqrt.f32 %v1535_v50  ;;  %vm1557_vm3 = vweird.f32 %v1535_v50 }
 0x4a5   : > { %v1422_v51 = vpop.xlane.xlu1 %1421  ;;  %v1490_v49 = vpop.xlane.xlu0 %1489 }
 0x4a6   : > { %v1446_v56 = vmul.f32 %v1422_v51, %v2883_v39  ;;  %v1520_v29 = vmul.f32 %v1490_v49, %v2883_v39 }
 0x4a8   : > { %v2517_v14 = vpop.eup %2516  ;;  %v3540_v6 = vsub.f32 %v3380_v31, %v1446_v56  ;;  %v1536_v53 = vadd.f32 1e-05, %v1520_v29 }
 0x4a9   : > { %v1552_v27 = vmul.f32 %v2517_v14, %v1535_v50  ;;  %vm1558_vm2 = vweird.f32 %v2517_v14 }
 0x4aa   : > { %2518 = vrsqrt.f32 %v1536_v53  ;;  %v1478_v58 = vmul.f32 %v3540_v6, %v3540_v6  ;;  %vm1559_vm4 = vmor %vm1557_vm3, %vm1558_vm2  ;;  %vm1567_vm6 = vweird.f32 %v1536_v53 }
 0x4ab   : > { %v1553_v20 = vmul.f32 %v2517_v14, %v1552_v27 }
 0x4ac   : > { %1501 = vadd.xlane.f32.xlu0 %v1478_v58 }
 0x4ad   : > { %v1554_v62 = vmul.f32 0.5, %v1553_v20  ;;  %v1492_v8 = vpop.xlane.xlu2 %1491  ;;  %v1424_v60 = vpop.xlane.xlu0 %1423 }
 0x4ae   : > { %v1521_v2 = vmul.f32 %v1492_v8, %v2883_v39  ;;  %v1447_v44 = vmul.f32 %v1424_v60, %v2883_v39 }
 0x4af   : > { %v1555_v61 = vsub.f32 1.5, %v1554_v62 }
 0x4b0   : > { %v2519_v59 = vpop.eup %2518  ;;  %v1537_v31 = vadd.f32 1e-05, %v1521_v2  ;;  %v3547_v7 = vsub.f32 %v3391_v38, %v1447_v44 }
 0x4b1   : > { %v1562_v21 = vmul.f32 %v2519_v59, %v1536_v53  ;;  %v1401_v24 = vpop.f32.mrf.mxu2  ;;  %v1556_v13 = vmul.f32 %v2517_v14, %v1555_v61  ;;  %vm1568_vm5 = vweird.f32 %v2519_v59 }
 0x4b2   : > { %2520 = vrsqrt.f32 %v1537_v31  ;;  %v3550_v34 = vadd.f32 %v3327_v52, %v1401_v24  ;;  %v1479_v16 = vmul.f32 %v3547_v7, %v3547_v7  ;;  %vm1569_vm7 = vmor %vm1567_vm6, %vm1568_vm5  ;;  %vm1577_vm9 = vweird.f32 %v1537_v31 }
 0x4b3   : > { %v1563_v18 = vmul.f32 %v2519_v59, %v1562_v21  ;;  %v1560_v32 = vsel %vm1559_vm4, %v2517_v14, %v1556_v13 }
 0x4b4   : > { %1435 = vadd.xlane.f32.xlu0 %v3550_v34  ;;  %1503 = vadd.xlane.f32.xlu2 %v1479_v16  ;;  %v1711_v38 = vmul.f32 %v1560_v32, %v3370_v17 }
 0x4b5   : > { %v1564_v63 = vmul.f32 0.5, %v1563_v18  ;;  %v1494_v45 = vpop.xlane.xlu1 %1493  ;;  %v1426_v41 = vpop.xlane.xlu2 %1425 }
 0x4b6   : > { %v1522_v42 = vmul.f32 %v1494_v45, %v2883_v39  ;;  %v1448_v28 = vmul.f32 %v1426_v41, %v2883_v39  ;;  %v1727_v1 = vmax.f32 %v1711_v38, 0.0 }
 0x4b7   : > { %v1565_v48 = vsub.f32 1.5, %v1564_v63 }
 0x4b8   : > { %v2521_v11 = vpop.eup %2520  ;;  %v1538_v30 = vadd.f32 1e-05, %v1522_v42  ;;  %v3559_v0 = vsub.f32 %v3401_v25, %v1448_v28  ;;  %1797 = vmatmul.f32.vlgmr.msrb.gmra.mxu3 %v1727_v1  ;;  %1862 = vmatmul.f32.vlgmr.msrb.gmra.mxu0 %v1727_v1 }
 0x4b9   : > { %v1572_v54 = vmul.f32 %v2521_v11, %v1537_v31  ;;  %v1404_v17 = vpop.f32.mrf.mxu2  ;;  %v1566_v40 = vmul.f32 %v2519_v59, %v1565_v48  ;;  %vm1578_vm8 = vweird.f32 %v2521_v11 }
 0x4ba   : > { %2522 = vrsqrt.f32 %v1538_v30  ;;  %v3562_v15 = vadd.f32 %v3327_v52, %v1404_v17  ;;  %v1480_v19 = vmul.f32 %v3559_v0, %v3559_v0  ;;  %vm1579_vm10 = vmor %vm1577_vm9, %vm1578_vm8  ;;  %vm1587_vm12 = vweird.f32 %v1538_v30 }
 0x4bb   : > { %v1573_v3 = vmul.f32 %v2521_v11, %v1572_v54  ;;  %v1570_v5 = vsel %vm1569_vm7, %v2519_v59, %v1566_v40 }
 0x4bc   : > { %1505 = vadd.xlane.f32.xlu1 %v1480_v19  ;;  %1437 = vadd.xlane.f32.xlu2 %v3562_v15  ;;  %v1712_v25 = vmul.f32 %v1570_v5, %v3377_v55 }
 0x4bd   : > { %v1574_v36 = vmul.f32 0.5, %v1573_v3  ;;  %v1428_v22 = vpop.xlane.xlu1 %1427  ;;  %v1496_v43 = vpop.xlane.xlu0 %1495 }
 0x4be   : > { %v1449_v46 = vmul.f32 %v1428_v22, %v2883_v39  ;;  %v1523_v33 = vmul.f32 %v1496_v43, %v2883_v39  ;;  %v1728_v52 = vmax.f32 %v1712_v25, 0.0 }
 0x4bf   : > { %v1575_v35 = vsub.f32 1.5, %v1574_v36 }
 0x4c0   : > { %v2523_v50 = vpop.eup %2522  ;;  %v3571_v51 = vsub.f32 %v3429_v26, %v1449_v46  ;;  %v1539_v49 = vadd.f32 1e-05, %v1523_v33  ;;  %1800 = vmatmul.f32.gmra.mxu3 %v1728_v52  ;;  %1865 = vmatmul.f32.gmra.mxu0 %v1728_v52 }
 0x4c1   : > { %v1582_v56 = vmul.f32 %v2523_v50, %v1538_v30  ;;  %v1576_v55 = vmul.f32 %v2521_v11, %v1575_v35  ;;  %vm1588_vm11 = vweird.f32 %v2523_v50 }
 0x4c2   : > { %2524 = vrsqrt.f32 %v1539_v49  ;;  %v1481_v29 = vmul.f32 %v3571_v51, %v3571_v51  ;;  %vm1589_vm13 = vmor %vm1587_vm12, %vm1588_vm11  ;;  %vm1597_vm15 = vweird.f32 %v1539_v49 }
 0x4c3   : > { %v1583_v14 = vmul.f32 %v2523_v50, %v1582_v56  ;;  %v1580_v53 = vsel %vm1579_vm10, %v2521_v11, %v1576_v55 }
 0x4c4   : > { %1507 = vadd.xlane.f32.xlu0 %v1481_v29  ;;  %v1713_v27 = vmul.f32 %v1580_v53, %v3388_v37 }
 0x4c5   : > { %v1584_v58 = vmul.f32 0.5, %v1583_v14  ;;  %v1498_v20 = vpop.xlane.xlu2 %1497 }
 0x4c6   : > { %v1524_v26 = vmul.f32 %v1498_v20, %v2883_v39  ;;  %v1430_v62 = vpop.xlane.xlu0 %1429  ;;  %v1729_v8 = vmax.f32 %v1713_v27, 0.0 }
 0x4c7   : > { %v1585_v60 = vsub.f32 1.5, %v1584_v58  ;;  %v1450_v2 = vmul.f32 %v1430_v62, %v2883_v39 }
 0x4c8   : > { %v2525_v44 = vpop.eup %2524  ;;  %v1540_v61 = vadd.f32 1e-05, %v1524_v26  ;;  %1803 = vmatmul.f32.gmra.mxu3 %v1729_v8  ;;  %1868 = vmatmul.f32.gmra.mxu0 %v1729_v8 }
 0x4c9   : > { %v1592_v59 = vmul.f32 %v2525_v44, %v1539_v49  ;;  %v3579_v31 = vsub.f32 %v3441_v4, %v1450_v2  ;;  %v1586_v37 = vmul.f32 %v2523_v50, %v1585_v60  ;;  %vm1598_vm14 = vweird.f32 %v2525_v44 }
 0x4ca   : > { %2526 = vrsqrt.f32 %v1540_v61  ;;  %vm1599_vm0 = vmor %vm1597_vm15, %vm1598_vm14  ;;  %vm1607_vm2 = vweird.f32 %v1540_v61 }
 0x4cb   : > { %v1593_v21 = vmul.f32 %v2525_v44, %v1592_v59  ;;  %v1482_v24 = vmul.f32 %v3579_v31, %v3579_v31  ;;  %v1590_v13 = vsel %vm1589_vm13, %v2523_v50, %v1586_v37 }
 0x4cc   : > { %v1714_v16 = vmul.f32 %v1590_v13, %v3398_v47 }
 0x4cd   : > { %v1594_v18 = vmul.f32 0.5, %v1593_v21  ;;  %1509 = vadd.xlane.f32.xlu1 %v1482_v24  ;;  %v1500_v32 = vpop.xlane.xlu1 %1499 }
 0x4ce   : > { %v1525_v38 = vmul.f32 %v1500_v32, %v2883_v39  ;;  %v1432_v63 = vpop.xlane.xlu2 %1431  ;;  %v1730_v45 = vmax.f32 %v1714_v16, 0.0  ;;  %v3620_v16 = vld [vmem:[%s3612_s0] sm:$0xff] }
 0x4cf   : > { %v1595_v41 = vsub.f32 1.5, %v1594_v18  ;;  %v1451_v4 = vmul.f32 %v1432_v63, %v2883_v39 }
 0x4d0   : > { %v2527_v42 = vpop.eup %2526  ;;  %v1541_v28 = vadd.f32 1e-05, %v1525_v38  ;;  %1806 = vmatmul.f32.gmra.mxu3 %v1730_v45  ;;  %1871 = vmatmul.f32.gmra.mxu0 %v1730_v45 }
 0x4d1   : > { %v1602_v1 = vmul.f32 %v2527_v42, %v1540_v61  ;;  %v3587_v48 = vsub.f32 %v3451_v12, %v1451_v4  ;;  %v1596_v47 = vmul.f32 %v2525_v44, %v1595_v41  ;;  %vm1608_vm1 = vweird.f32 %v2527_v42 }
 0x4d2   : > { %2528 = vrsqrt.f32 %v1541_v28  ;;  %vm1609_vm3 = vmor %vm1607_vm2, %vm1608_vm1  ;;  %vm1617_vm5 = vweird.f32 %v1541_v28  ;;  %v2056_v4 = vmul.f32 -0.5, %v3620_v16  ;;  %vm2039_vm2 = vcmask 64512  }
 0x4d3   : > { %v1603_v11 = vmul.f32 %v2527_v42, %v1602_v1  ;;  %v1483_v30 = vmul.f32 %v3587_v48, %v3587_v48  ;;  %v1600_v54 = vsel %vm1599_vm0, %v2525_v44, %v1596_v47 }
 0x4d4   : > { %v1715_v17 = vmul.f32 %v1600_v54, %v3426_v57 }
 0x4d5   : > { %v1604_v40 = vmul.f32 0.5, %v1603_v11  ;;  %1511 = vadd.xlane.f32.xlu2 %v1483_v30 }
 0x4d6   : > { %v1434_v19 = vpop.xlane.xlu1 %1433  ;;  %v1731_v3 = vmax.f32 %v1715_v17, 0.0 }
 0x4d7   : > { %v1605_v5 = vsub.f32 1.5, %v1604_v40  ;;  %v1452_v25 = vmul.f32 %v1434_v19, %v2883_v39  ;;  %v3636_v40 = vmul.f32 %v2056_v4, %v3620_v16 }
 0x4d8   : > { %v2529_v12 = vpop.eup %2528  ;;  %1809 = vmatmul.f32.gmra.mxu3 %v1731_v3  ;;  %1874 = vmatmul.f32.gmra.mxu0 %v1731_v3 }
 0x4d9   : > { %v1612_v36 = vmul.f32 %v2529_v12, %v1541_v28  ;;  %v3594_v22 = vsub.f32 %v3455_v10, %v1452_v25  ;;  %v1606_v43 = vmul.f32 %v2527_v42, %v1605_v5  ;;  %vm1618_vm4 = vweird.f32 %v2529_v12  ;;  %v3640_v25 = vld [vmem:[%s3612_s0 + $0x8] sm:$0xff] }
 0x4da   : > { %vm1619_vm6 = vmor %vm1617_vm5, %vm1618_vm4 }
 0x4db   : > { %v1613_v46 = vmul.f32 %v2529_v12, %v1612_v36  ;;  %v1484_v57 = vmul.f32 %v3594_v22, %v3594_v22  ;;  %v1610_v33 = vsel %vm1609_vm3, %v2527_v42, %v1606_v43 }
 0x4dc   : > { %v1716_v52 = vmul.f32 %v1610_v33, %v3436_v23 }
 0x4dd   : > { %v1614_v35 = vmul.f32 0.5, %v1613_v46  ;;  %1513 = vadd.xlane.f32.xlu0 %v1484_v57 }
 0x4de   : > { %v1732_v50 = vmax.f32 %v1716_v52, 0.0 }
 0x4df   : > { %v1615_v49 = vsub.f32 1.5, %v1614_v35  ;;  %v2057_v35 = vmul.f32 -0.5, %v3640_v25 }
 0x4e0   : > { %1812 = vmatmul.f32.gmra.mxu3 %v1732_v50  ;;  %1877 = vmatmul.f32.gmra.mxu0 %v1732_v50 }
 0x4e1   : > { %v1616_v56 = vmul.f32 %v2529_v12, %v1615_v49 }
 0x4e3   : > { %v1620_v10 = vsel %vm1619_vm6, %v2529_v12, %v1616_v56 }
 0x4e4   : > { %v1717_v55 = vmul.f32 %v1620_v10, %v3446_v9 }
 0x4e6   : > { %v1733_v29 = vmax.f32 %v1717_v55, 0.0 }
 0x4e8   : > { %1815 = vmatmul.f32.gmra.mxu3 %v1733_v29  ;;  %1880 = vmatmul.f32.gmra.mxu0 %v1733_v29 }
 0x51f   : > { %v1502_v14 = vpop.xlane.xlu0 %1501 }
 0x520   : > { %v1526_v23 = vmul.f32 %v1502_v14, %v2883_v39 }
 0x522   : > { %v1542_v53 = vadd.f32 1e-05, %v1526_v23  ;;  %v3655_v23 = vmul.f32 %v2057_v35, %v3640_v25 }
 0x524   : > { %2530 = vrsqrt.f32 %v1542_v53  ;;  %vm1627_vm8 = vweird.f32 %v1542_v53 }
 0x527   : > { %v1504_v27 = vpop.xlane.xlu2 %1503  ;;  %v1436_v58 = vpop.xlane.xlu0 %1435 }
 0x528   : > { %v1527_v20 = vmul.f32 %v1504_v27, %v2883_v39  ;;  %v1453_v26 = vmul.f32 %v1436_v58, %v2883_v39 }
 0x52a   : > { %v2531_v62 = vpop.eup %2530  ;;  %v1543_v8 = vadd.f32 1e-05, %v1527_v20  ;;  %v3604_v60 = vsub.f32 %v3550_v34, %v1453_v26  ;;  %v1775_v34 = vld [vmem:[%s4092_s9] sm:$0x3] }
 0x52b   : > { %v1622_v9 = vmul.f32 %v2531_v62, %v1542_v53  ;;  %vm1628_vm7 = vweird.f32 %v2531_v62  ;;  %v3627_v63 = vperm.slane %v1775_v34, 1  ;;  %v3657_v20 = vperm.slane %v1775_v34, 0 }
 0x52c   : > { %2532 = vrsqrt.f32 %v1543_v8  ;;  %v1485_v2 = vmul.f32 %v3604_v60, %v3604_v60  ;;  %vm1629_vm9 = vmor %vm1627_vm8, %vm1628_vm7  ;;  %vm1637_vm11 = vweird.f32 %v1543_v8 }
 0x52d   : > { %v1623_v44 = vmul.f32 %v2531_v62, %v1622_v9 }
 0x52e   : > { %1515 = vadd.xlane.f32.xlu1 %v1485_v2 }
 0x52f   : > { %v1624_v61 = vmul.f32 0.5, %v1623_v44  ;;  %v1506_v59 = vpop.xlane.xlu1 %1505  ;;  %v1438_v37 = vpop.xlane.xlu2 %1437 }
 0x530   : > { %v1528_v21 = vmul.f32 %v1506_v59, %v2883_v39  ;;  %v1454_v24 = vmul.f32 %v1438_v37, %v2883_v39 }
 0x531   : > { %v1625_v13 = vsub.f32 1.5, %v1624_v61 }
 0x532   : > { %v2533_v18 = vpop.eup %2532  ;;  %v3622_v32 = vadd.f32 1e-05, %v1528_v21  ;;  %v3625_v38 = vsub.f32 %v3562_v15, %v1454_v24 }
 0x533   : > { %v1632_v45 = vmul.f32 %v2533_v18, %v1543_v8  ;;  %v1626_v41 = vmul.f32 %v2531_v62, %v1625_v13  ;;  %vm1638_vm10 = vweird.f32 %v2533_v18 }
 0x534   : > { %2534 = vrsqrt.f32 %v3622_v32  ;;  %v1486_v42 = vmul.f32 %v3625_v38, %v3625_v38  ;;  %vm1639_vm12 = vmor %vm1637_vm11, %vm1638_vm10  ;;  %vm1647_vm14 = vweird.f32 %v3622_v32 }
 0x535   : > { %v1633_v28 = vmul.f32 %v2533_v18, %v1632_v45  ;;  %v1863_v1 = vpop.f32.mrf.mxu0  ;;  %v1630_v47 = vsel %vm1629_vm9, %v2531_v62, %v1626_v41  ;;  %v3661_v62 = vld [vmem:[%s3612_s0 + $0x10] sm:$0xff] }
 0x536   : > { %v1864_v15 = vadd.f32 %v1863_v1, %v3627_v63  ;;  %1517 = vadd.xlane.f32.xlu2 %v1486_v42  ;;  %v1718_v11 = vmul.f32 %v1630_v47, %v3540_v6  ;;  %v2058_v21 = vmul.f32 -0.5, %v3661_v62 }
 0x537   : > { %v1634_v30 = vmul.f32 0.5, %v1633_v28  ;;  %v1508_v54 = vpop.xlane.xlu0 %1507 }
 0x538   : > { %v1911_v17 = vmax.f32 %v1864_v15, -5.0  ;;  %v1529_v19 = vmul.f32 %v1508_v54, %v2883_v39  ;;  %v1734_v3 = vmax.f32 %v1718_v11, 0.0  ;;  %v3680_v47 = vmul.f32 %v2058_v21, %v3661_v62  ;;  %v3683_v11 = vld [vmem:[%s3612_s0 + $0x18] sm:$0xff] }
 0x539   : > { %v1635_v5 = vsub.f32 1.5, %v1634_v30 }
 0x53a   : > { %v2535_v12 = vpop.eup %2534  ;;  %v3642_v36 = vmin.f32 %v1911_v17, 2.0  ;;  %v3644_v43 = vadd.f32 1e-05, %v1529_v19  ;;  %1818 = vmatmul.f32.gmra.mxu3 %v1734_v3  ;;  %1883 = vmatmul.f32.gmra.mxu0 %v1734_v3 }
 0x53b   : > { %v1642_v6 = vmul.f32 %v2535_v12, %v3622_v32  ;;  %v1798_v46 = vpop.f32.mrf.mxu3  ;;  %v1636_v57 = vmul.f32 %v2533_v18, %v1635_v5  ;;  %vm1648_vm13 = vweird.f32 %v2535_v12  ;;  %v2059_v5 = vmul.f32 -0.5, %v3683_v11 }
 0x53c   : > { %v1943_v33 = vmul.f32 1.442695, %v3642_v36  ;;  %v2088_v52 = vsub.f32 %v3636_v40, %v3642_v36  ;;  %2536 = vrsqrt.f32 %v3644_v43  ;;  %v1799_v13 = vadd.f32 %v1798_v46, %v3657_v20  ;;  %vm1649_vm15 = vmor %vm1647_vm14, %vm1648_vm13 }
 0x53d   : > { %v1643_v50 = vmul.f32 %v2535_v12, %v1642_v6  ;;  %v1866_v49 = vpop.f32.mrf.mxu0  ;;  %v1640_v56 = vsel %vm1639_vm12, %v2533_v18, %v1636_v57  ;;  %vm1657_vm1 = vweird.f32 %v3644_v43 }
 0x53e   : > { %2538 = vpow2.f32 %v1943_v33  ;;  %v1867_v10 = vadd.f32 %v1866_v49, %v3627_v63  ;;  %v1719_v55 = vmul.f32 %v1640_v56, %v3547_v7 }
 0x53f   : > { %v1644_v29 = vmul.f32 0.5, %v1643_v50 }
 0x540   : > { %v1912_v14 = vmax.f32 %v1867_v10, -5.0  ;;  %v1510_v53 = vpop.xlane.xlu1 %1509  ;;  %v1735_v27 = vmax.f32 %v1719_v55, 0.0 }
 0x541   : > { %v1645_v58 = vsub.f32 1.5, %v1644_v29  ;;  %v1530_v26 = vmul.f32 %v1510_v53, %v2883_v39  ;;  %v3713_v53 = vmul.f32 %v2059_v5, %v3683_v11 }
 0x542   : > { %v2537_v8 = vpop.eup %2536  ;;  %v3663_v9 = vmin.f32 %v1912_v14, 2.0  ;;  %1821 = vmatmul.f32.gmra.mxu3 %v1735_v27  ;;  %1886 = vmatmul.f32.gmra.mxu0 %v1735_v27 }
 0x543   : > { %v1652_v7 = vmul.f32 %v2537_v8, %v3644_v43  ;;  %v3666_v2 = vadd.f32 1e-05, %v1530_v26  ;;  %v1801_v44 = vpop.f32.mrf.mxu3  ;;  %v1646_v61 = vmul.f32 %v2535_v12, %v1645_v58  ;;  %vm1658_vm0 = vweird.f32 %v2537_v8 }
 0x544   : > { %v2539_v59 = vpop.eup %2538  ;;  %v1945_v37 = vmul.f32 1.442695, %v3663_v9  ;;  %v2089_v34 = vsub.f32 %v3655_v23, %v3663_v9  ;;  %vm1659_vm3 = vmor %vm1657_vm1, %vm1658_vm0  ;;  %v1802_v43 = vadd.f32 %v1801_v44, %v3657_v20 }
 0x545   : > { %v1653_v24 = vmul.f32 %v2537_v8, %v1652_v7  ;;  %v1991_v18 = vmul.f32 %v2539_v59, %v3620_v16  ;;  %2540 = vrsqrt.f32 %v3666_v2  ;;  %v1869_v45 = vpop.f32.mrf.mxu0  ;;  %v1650_v41 = vsel %vm1649_vm15, %v2535_v12, %v1646_v61  ;;  %v3718_v7 = vld [vmem:[%s3612_s0 + $0x20] sm:$0xff] }
 0x546   : > { %2542 = vpow2.f32 %v1945_v37  ;;  %v1870_v32 = vadd.f32 %v1869_v45, %v3627_v63  ;;  %v1720_v28 = vmul.f32 %v1650_v41, %v3559_v0  ;;  %v2060_v21 = vmul.f32 -0.5, %v3718_v7 }
 0x547   : > { %v1654_v4 = vmul.f32 0.5, %v1653_v24  ;;  %v2007_v42 = vadd.f32 %v1991_v18, %v1799_v13  ;;  %vm1667_vm5 = vweird.f32 %v3666_v2 }
 0x548   : > { %v1913_v1 = vmax.f32 %v1870_v32, -5.0  ;;  %v1512_v15 = vpop.xlane.xlu2 %1511  ;;  %v1736_v54 = vmax.f32 %v1720_v28, 0.0 }
 0x549   : > { %v1655_v16 = vsub.f32 1.5, %v1654_v4  ;;  %2544 = vtanh.f32 %v2007_v42  ;;  %v1531_v30 = vmul.f32 %v1512_v15, %v2883_v39 }
 0x54a   : > { %v3686_v17 = vmin.f32 %v1913_v1, 2.0  ;;  %1824 = vmatmul.f32.gmra.mxu3 %v1736_v54  ;;  %1889 = vmatmul.f32.gmra.mxu0 %v1736_v54  ;;  %v3744_v54 = vmul.f32 %v2060_v21, %v3718_v7 }
 0x54b   : > { %v3688_v19 = vpop.eup %2540  ;;  %v3691_v0 = vadd.f32 1e-05, %v1531_v30  ;;  %v1804_v3 = vpop.f32.mrf.mxu3  ;;  %v1656_v12 = vmul.f32 %v2537_v8, %v1655_v16 }
 0x54c   : > { %v2543_v6 = vpop.eup %2542  ;;  %v1662_v46 = vmul.f32 %v3688_v19, %v3666_v2  ;;  %v1947_v57 = vmul.f32 1.442695, %v3686_v17  ;;  %v2090_v33 = vsub.f32 %v3680_v47, %v3686_v17  ;;  %vm1668_vm4 = vweird.f32 %v3688_v19 }
 0x54d   : > { %v1992_v35 = vmul.f32 %v2543_v6, %v3640_v25  ;;  %2546 = vrsqrt.f32 %v3691_v0  ;;  %v1872_v50 = vpop.f32.mrf.mxu0  ;;  %v1660_v49 = vsel %vm1659_vm3, %v2537_v8, %v1656_v12  ;;  %v1805_v4 = vadd.f32 %v1804_v3, %v3657_v20  ;;  %vm1669_vm6 = vmor %vm1667_vm5, %vm1668_vm4 }
 0x54e   : > { %v1663_v56 = vmul.f32 %v3688_v19, %v1662_v46  ;;  %2548 = vpow2.f32 %v1947_v57  ;;  %v1873_v10 = vadd.f32 %v1872_v50, %v3627_v63  ;;  %v1721_v55 = vmul.f32 %v1660_v49, %v3571_v51  ;;  %v3751_v46 = vld [vmem:[%s3612_s0 + $0x28] sm:$0xff] }
 0x54f   : > { %v2545_v29 = vpop.eup %2544  ;;  %v2008_v14 = vadd.f32 %v1992_v35, %v1802_v43  ;;  %vm1677_vm8 = vweird.f32 %v3691_v0 }
 0x550   : > { %2040 = vst.msk [vmem:[%s3704_s30] sm:$0xff] %vm2039_vm2, %v2545_v29  ;;  %v1664_v25 = vmul.f32 0.5, %v1663_v56  ;;  %v1914_v27 = vmax.f32 %v1873_v10, -5.0  ;;  %v1514_v58 = vpop.xlane.xlu0 %1513  ;;  %v1737_v26 = vmax.f32 %v1721_v55, 0.0  ;;  %v2120_v8 = vmul.f32 %v2545_v29, %v2545_v29 }
 0x551   : > { %2550 = vtanh.f32 %v2008_v14  ;;  %v1532_v44 = vmul.f32 %v1514_v58, %v2883_v39 }
 0x552   : > { %v1665_v61 = vsub.f32 1.5, %v1664_v25  ;;  %v3721_v59 = vmin.f32 %v1914_v27, 2.0  ;;  %1827 = vmatmul.f32.gmra.mxu3 %v1737_v26  ;;  %1892 = vmatmul.f32.gmra.mxu0 %v1737_v26  ;;  %v2136_v24 = vsub.f32 1.0, %v2120_v8 }
 0x553   : > { %v3723_v51 = vpop.eup %2546  ;;  %v3725_v37 = vadd.f32 1e-05, %v1532_v44  ;;  %v1807_v41 = vpop.f32.mrf.mxu3 }
 0x554   : > { %v2549_v13 = vpop.eup %2548  ;;  %v1672_v18 = vmul.f32 %v3723_v51, %v3691_v0  ;;  %v1949_v45 = vmul.f32 1.442695, %v3721_v59  ;;  %v2091_v32 = vsub.f32 %v3713_v53, %v3721_v59  ;;  %v1666_v2 = vmul.f32 %v3688_v19, %v1665_v61 }
 0x555   : > { %v1993_v42 = vmul.f32 %v2549_v13, %v3661_v62  ;;  %2552 = vrsqrt.f32 %v3725_v37  ;;  %v1875_v28 = vpop.f32.mrf.mxu0  ;;  %v2152_v3 = vadd.f32 1e-06, %v2136_v24  ;;  %vm1678_vm7 = vweird.f32 %v3723_v51 }
 0x556   : > { %v1673_v1 = vmul.f32 %v3723_v51, %v1672_v18  ;;  %2554 = vpow2.f32 %v1949_v45  ;;  %v1876_v15 = vadd.f32 %v1875_v28, %v3627_v63  ;;  %v1670_v62 = vsel %vm1669_vm6, %v3688_v19, %v1666_v2  ;;  %vm1679_vm9 = vmor %vm1677_vm8, %vm1678_vm7 }
 0x557   : > { %v2551_v16 = vpop.eup %2550  ;;  %v2009_v30 = vadd.f32 %v1993_v42, %v1805_v4  ;;  %v1722_v6 = vmul.f32 %v1670_v62, %v3579_v31  ;;  %v2061_v19 = vmul.f32 -0.5, %v3751_v46  ;;  %v1808_v14 = vadd.f32 %v1807_v41, %v3657_v20  ;;  %v3782_v4 = vld [vmem:[%s3612_s0 + $0x30] sm:$0xff] }
 0x558   : > { %2041 = vst.msk [vmem:[%s3704_s30 + $0x8] sm:$0xff] %vm2039_vm2, %v2551_v16  ;;  %v1674_v5 = vmul.f32 0.5, %v1673_v1  ;;  %v1915_v12 = vmax.f32 %v1876_v15, -5.0  ;;  %v2121_v57 = vmul.f32 %v2551_v16, %v2551_v16  ;;  %v3791_v16 = vadd.f32 -0.9189385, %v2088_v52 }
 0x559   : > { %2556 = vtanh.f32 %v2009_v30  ;;  %v1738_v50 = vmax.f32 %v1722_v6, 0.0  ;;  %vm1687_vm11 = vweird.f32 %v3725_v37 }
 0x55a   : > { %v1675_v43 = vsub.f32 1.5, %v1674_v5  ;;  %v3753_v35 = vmin.f32 %v1915_v12, 2.0  ;;  %v2137_v49 = vsub.f32 1.0, %v2121_v57  ;;  %2558 = vlog2.f32 %v2152_v3 }
 0x55b   : > { %v3755_v56 = vpop.eup %2552  ;;  %1830 = vmatmul.f32.gmra.mxu3 %v1738_v50  ;;  %1895 = vmatmul.f32.gmra.mxu0 %v1738_v50  ;;  %v1810_v44 = vpop.f32.mrf.mxu3  ;;  %v3811_v50 = vadd.f32 -0.9189385, %v2089_v34 }
 0x55c   : > { %v2555_v10 = vpop.eup %2554  ;;  %v1682_v31 = vmul.f32 %v3755_v56, %v3725_v37  ;;  %v1951_v55 = vmul.f32 1.442695, %v3753_v35  ;;  %v2092_v29 = vsub.f32 %v3744_v54, %v3753_v35  ;;  %v1676_v58 = vmul.f32 %v3723_v51, %v1675_v43 }
 0x55d   : > { %v1994_v25 = vmul.f32 %v2555_v10, %v3683_v11  ;;  %v1878_v27 = vpop.f32.mrf.mxu0  ;;  %v2153_v26 = vadd.f32 1e-06, %v2137_v49  ;;  %v3775_v11 = vmul.f32 %v2061_v19, %v3751_v46  ;;  %vm1688_vm10 = vweird.f32 %v3755_v56 }
 0x55e   : > { %v1683_v8 = vmul.f32 %v3755_v56, %v1682_v31  ;;  %2560 = vpow2.f32 %v1951_v55  ;;  %v1879_v61 = vadd.f32 %v1878_v27, %v3627_v63  ;;  %v1680_v13 = vsel %vm1679_vm9, %v3723_v51, %v1676_v58  ;;  %vm1689_vm12 = vmor %vm1687_vm11, %vm1688_vm10 }
 0x55f   : > { %v2557_v21 = vpop.eup %2556  ;;  %v2010_v24 = vadd.f32 %v1994_v25, %v1808_v14  ;;  %2562 = vlog2.f32 %v2153_v26  ;;  %v1723_v41 = vmul.f32 %v1680_v13, %v3587_v48  ;;  %v2062_v51 = vmul.f32 -0.5, %v3782_v4 }
 0x560   : > { %2042 = vst.msk [vmem:[%s3704_s30 + $0x10] sm:$0xff] %vm2039_vm2, %v2557_v21  ;;  %v1684_v18 = vmul.f32 0.5, %v1683_v8  ;;  %v1916_v45 = vmax.f32 %v1879_v61, -5.0  ;;  %v2122_v42 = vmul.f32 %v2557_v21, %v2557_v21  ;;  %v2559_v28 = vpop.eup %2558  ;;  %v1811_v40 = vadd.f32 %v1810_v44, %v3657_v20 }
 0x561   : > { %2564 = vtanh.f32 %v2010_v24  ;;  %v1739_v1 = vmax.f32 %v1723_v41, 0.0  ;;  %v3793_v48 = vmul.f32 0.6931472, %v2559_v28  ;;  %v2078_v14 = vmul.f32 %v2062_v51, %v3782_v4 }
 0x562   : > { %v1685_v0 = vsub.f32 1.5, %v1684_v18  ;;  %v3785_v2 = vmin.f32 %v1916_v45, 2.0  ;;  %v2138_v15 = vsub.f32 1.0, %v2122_v42  ;;  %v3826_v21 = vadd.f32 -0.9189385, %v2090_v33 }
 0x563   : > { %1833 = vmatmul.f32.gmra.mxu3 %v1739_v1  ;;  %1898 = vmatmul.f32.gmra.mxu0 %v1739_v1  ;;  %v2200_v6 = vsub.f32 %v3791_v16, %v3793_v48  ;;  %v1813_v31 = vpop.f32.mrf.mxu3  ;;  %v3839_v1 = vadd.f32 -0.9189385, %v2091_v32  ;;  %v3850_v53 = vadd.f32 -0.9189385, %v2092_v29 }
 0x564   : > { %v2561_v30 = vpop.eup %2560  ;;  %v1953_v62 = vmul.f32 1.442695, %v3785_v2  ;;  %v2093_v3 = vsub.f32 %v3775_v11, %v3785_v2  ;;  %v1686_v5 = vmul.f32 %v3755_v56, %v1685_v0  ;;  %v2154_v37 = vadd.f32 1e-06, %v2138_v15 }
 0x565   : > { %v2563_v12 = vpop.eup %2562  ;;  %v1995_v36 = vmul.f32 %v2561_v30, %v3718_v7  ;;  %v1881_v52 = vpop.f32.mrf.mxu0  ;;  %v1814_v44 = vadd.f32 %v1813_v31, %v3657_v20 }
 0x566   : > { %2566 = vpow2.f32 %v1953_v62  ;;  %v1882_v57 = vadd.f32 %v1881_v52, %v3627_v63  ;;  %v1690_v43 = vsel %vm1689_vm12, %v3755_v56, %v1686_v5  ;;  %v3814_v10 = vmul.f32 0.6931472, %v2563_v12 }
 0x567   : > { %v2565_v49 = vpop.eup %2564  ;;  %v2011_v7 = vadd.f32 %v1995_v36, %v1811_v40  ;;  %v1724_v19 = vmul.f32 %v1690_v43, %v3594_v22  ;;  %2568 = vlog2.f32 %v2154_v37 }
 0x568   : > { %2043 = vst.msk [vmem:[%s3704_s30 + $0x18] sm:$0xff] %vm2039_vm2, %v2565_v49  ;;  %v1917_v55 = vmax.f32 %v1882_v57, -5.0  ;;  %v2123_v25 = vmul.f32 %v2565_v49, %v2565_v49  ;;  %v2201_v23 = vsub.f32 %v3811_v50, %v3814_v10  ;;  %v3861_v49 = vadd.f32 -0.9189385, %v2093_v3 }
 0x569   : > { %2570 = vtanh.f32 %v2011_v7  ;;  %v1740_v56 = vmax.f32 %v1724_v19, 0.0 }
 0x56a   : > { %v1933_v9 = vmin.f32 %v1917_v55, 2.0  ;;  %v2139_v34 = vsub.f32 1.0, %v2123_v25 }
 0x56b   : > { %1836 = vmatmul.f32.gmra.mxu3 %v1740_v56  ;;  %1901 = vmatmul.f32.gmra.mxu0 %v1740_v56 }
 0x56c   : > { %v2567_v27 = vpop.eup %2566  ;;  %v1955_v22 = vmul.f32 1.442695, %v1933_v9  ;;  %v2094_v58 = vsub.f32 %v2078_v14, %v1933_v9  ;;  %v2155_v26 = vadd.f32 1e-06, %v2139_v34 }
 0x56d   : > { %v2569_v8 = vpop.eup %2568  ;;  %v1996_v61 = vmul.f32 %v2567_v27, %v3751_v46  ;;  %v1816_v46 = vpop.f32.mrf.mxu3 }
 0x56e   : > { %2572 = vpow2.f32 %v1955_v22  ;;  %v3828_v24 = vmul.f32 0.6931472, %v2569_v8  ;;  %v1817_v17 = vadd.f32 %v1816_v46, %v3657_v20  ;;  %v3867_v7 = vadd.f32 -0.9189385, %v2094_v58  ;;  %v1982_v58 = vld [vmem:[%s3612_s0 + $0x38] sm:$0xff] }
 0x56f   : > { %v2571_v13 = vpop.eup %2570  ;;  %v2012_v18 = vadd.f32 %v1996_v61, %v1814_v44  ;;  %2574 = vlog2.f32 %v2155_v26  ;;  %v2063_v61 = vmul.f32 -0.5, %v1982_v58 }
 0x570   : > { %2044 = vst.msk [vmem:[%s3704_s30 + $0x20] sm:$0xff] %vm2039_vm2, %v2571_v13  ;;  %v2124_v45 = vmul.f32 %v2571_v13, %v2571_v13  ;;  %v2202_v41 = vsub.f32 %v3826_v21, %v3828_v24 }
 0x571   : > { %2576 = vtanh.f32 %v2012_v18 }
 0x572   : > { %v2140_v42 = vsub.f32 1.0, %v2124_v45 }
 0x574   : > { %v2573_v28 = vpop.eup %2572  ;;  %v2156_v0 = vadd.f32 1e-06, %v2140_v42 }
 0x575   : > { %v2575_v47 = vpop.eup %2574  ;;  %v1997_v33 = vmul.f32 %v2573_v28, %v3782_v4 }
 0x576   : > { %2578 = vlog2.f32 %v2156_v0  ;;  %v3841_v15 = vmul.f32 0.6931472, %v2575_v47  ;;  %v3878_v0 = vmul.f32 %v2063_v61, %v1982_v58 }
 0x577   : > { %v2577_v51 = vpop.eup %2576  ;;  %v2013_v30 = vadd.f32 %v1997_v33, %v1817_v17  ;;  %v1983_v33 = vld [vmem:[%s3612_s0 + $0x40] sm:$0xff] }
 0x578   : > { %2045 = vst.msk [vmem:[%s3704_s30 + $0x28] sm:$0xff] %vm2039_vm2, %v2577_v51  ;;  %v2125_v62 = vmul.f32 %v2577_v51, %v2577_v51  ;;  %v2203_v5 = vsub.f32 %v3839_v1, %v3841_v15 }
 0x579   : > { %2580 = vtanh.f32 %v2013_v30 }
 0x57a   : > { %v2141_v12 = vsub.f32 1.0, %v2125_v62 }
 0x57c   : > { %v2579_v4 = vpop.eup %2578  ;;  %v2157_v40 = vadd.f32 1e-06, %v2141_v12 }
 0x57d   : > { %v3852_v59 = vmul.f32 0.6931472, %v2579_v4  ;;  %v2064_v4 = vmul.f32 -0.5, %v1983_v33 }
 0x57e   : > { %2582 = vlog2.f32 %v2157_v40 }
 0x57f   : > { %v2581_v32 = vpop.eup %2580  ;;  %v2204_v36 = vsub.f32 %v3850_v53, %v3852_v59  ;;  %v2709_v53 = vmov 1.0  }
 0x580   : > { %2046 = vst.msk [vmem:[%s3704_s30 + $0x30] sm:$0xff] %vm2039_vm2, %v2581_v32  ;;  %v2126_v52 = vmul.f32 %v2581_v32, %v2581_v32 }
 0x582   : > { %v2142_v37 = vsub.f32 1.0, %v2126_v52 }
 0x584   : > { %v2583_v57 = vpop.eup %2582  ;;  %v2158_v43 = vadd.f32 1e-06, %v2142_v37 }
 0x585   : > { %v3863_v54 = vmul.f32 0.6931472, %v2583_v57 }
 0x586   : > { %2584 = vlog2.f32 %v2158_v43  ;;  %v3888_v43 = vmul.f32 %v2064_v4, %v1983_v33 }
 0x587   : > { %v2205_v35 = vsub.f32 %v3861_v49, %v3863_v54 }
 0x58c   : > { %v2585_v29 = vpop.eup %2584 }
 0x58d   : > { %v3869_v19 = vmul.f32 0.6931472, %v2585_v29 }
 0x58f   : > { %v2206_v31 = vsub.f32 %v3867_v7, %v3869_v19 }
 0x5a1   : > { %v1516_v55 = vpop.xlane.xlu1 %1515 }
 0x5a2   : > { %v1533_v11 = vmul.f32 %v1516_v55, %v2883_v39 }
 0x5a4   : > { %v1549_v2 = vadd.f32 1e-05, %v1533_v11  ;;  %v1984_v11 = vld [vmem:[%s3612_s0 + $0x48] sm:$0xff] }
 0x5a6   : > { %2586 = vrsqrt.f32 %v1549_v2  ;;  %vm1697_vm14 = vweird.f32 %v1549_v2 }
 0x5a9   : > { %v1518_v3 = vpop.xlane.xlu2 %1517 }
 0x5aa   : > { %v1534_v14 = vmul.f32 %v1518_v3, %v2883_v39 }
 0x5ac   : > { %v2587_v25 = vpop.eup %2586  ;;  %v1550_v56 = vadd.f32 1e-05, %v1534_v14 }
 0x5ad   : > { %v1692_v9 = vmul.f32 %v2587_v25, %v1549_v2  ;;  %vm1698_vm13 = vweird.f32 %v2587_v25 }
 0x5ae   : > { %2588 = vrsqrt.f32 %v1550_v56  ;;  %vm1699_vm15 = vmor %vm1697_vm14, %vm1698_vm13  ;;  %vm1707_vm1 = vweird.f32 %v1550_v56 }
 0x5af   : > { %v1693_v34 = vmul.f32 %v2587_v25, %v1692_v9  ;;  %v2065_v9 = vmul.f32 -0.5, %v1984_v11 }
 0x5b1   : > { %v1694_v27 = vmul.f32 0.5, %v1693_v34 }
 0x5b3   : > { %v1695_v22 = vsub.f32 1.5, %v1694_v27 }
 0x5b4   : > { %v2589_v26 = vpop.eup %2588 }
 0x5b5   : > { %v1702_v8 = vmul.f32 %v2589_v26, %v1550_v56  ;;  %v1696_v44 = vmul.f32 %v2587_v25, %v1695_v22  ;;  %vm1708_vm0 = vweird.f32 %v2589_v26 }
 0x5b6   : > { %vm1709_vm3 = vmor %vm1707_vm1, %vm1708_vm0 }
 0x5b7   : > { %v1703_v13 = vmul.f32 %v2589_v26, %v1702_v8  ;;  %v1884_v18 = vpop.f32.mrf.mxu0  ;;  %v1700_v45 = vsel %vm1699_vm15, %v2587_v25, %v1696_v44  ;;  %v3898_v8 = vmul.f32 %v2065_v9, %v1984_v11  ;;  %v1985_v44 = vld [vmem:[%s3612_s0 + $0x50] sm:$0xff] }
 0x5b8   : > { %v1885_v39 = vadd.f32 %v1884_v18, %v3627_v63  ;;  %v1725_v46 = vmul.f32 %v1700_v45, %v3604_v60  ;;  %v2066_v45 = vmul.f32 -0.5, %v1985_v44 }
 0x5b9   : > { %v1704_v42 = vmul.f32 0.5, %v1703_v13 }
 0x5ba   : > { %v1918_v28 = vmax.f32 %v1885_v39, -5.0  ;;  %v1741_v47 = vmax.f32 %v1725_v46, 0.0  ;;  %v3910_v4 = vmul.f32 %v2066_v45, %v1985_v44  ;;  %v1987_v45 = vld [vmem:[%s3612_s0 + $0x60] sm:$0xff] }
 0x5bb   : > { %v1705_v17 = vsub.f32 1.5, %v1704_v42 }
 0x5bc   : > { %v3881_v51 = vmin.f32 %v1918_v28, 2.0  ;;  %1839 = vmatmul.f32.gmra.mxu3 %v1741_v47  ;;  %1904 = vmatmul.f32.gmra.mxu0 %v1741_v47 }
 0x5bd   : > { %v1819_v30 = vpop.f32.mrf.mxu3  ;;  %v1706_v62 = vmul.f32 %v2589_v26, %v1705_v17 }
 0x5be   : > { %v1957_v12 = vmul.f32 1.442695, %v3881_v51  ;;  %v2095_v60 = vsub.f32 %v3878_v0, %v3881_v51  ;;  %v1820_v56 = vadd.f32 %v1819_v30, %v3657_v20 }
 0x5bf   : > { %v1887_v40 = vpop.f32.mrf.mxu0  ;;  %v1710_v32 = vsel %vm1709_vm3, %v2589_v26, %v1706_v62 }
 0x5c0   : > { %2590 = vpow2.f32 %v1957_v12  ;;  %v1888_v52 = vadd.f32 %v1887_v40, %v3627_v63  ;;  %v1726_v37 = vmul.f32 %v1710_v32, %v3625_v38  ;;  %v1986_v32 = vld [vmem:[%s3612_s0 + $0x58] sm:$0xff] }
 0x5c2   : > { %v1919_v57 = vmax.f32 %v1888_v52, -5.0  ;;  %v1742_v29 = vmax.f32 %v1726_v37, 0.0 }
 0x5c4   : > { %v3890_v55 = vmin.f32 %v1919_v57, 2.0  ;;  %1842 = vmatmul.f32.gmra.mxu3 %v1742_v29  ;;  %1907 = vmatmul.f32.gmra.mxu0 %v1742_v29 }
 0x5c5   : > { %v1822_v2 = vpop.f32.mrf.mxu3 }
 0x5c6   : > { %v2591_v3 = vpop.eup %2590  ;;  %v1959_v14 = vmul.f32 1.442695, %v3890_v55  ;;  %v2096_v25 = vsub.f32 %v3888_v43, %v3890_v55  ;;  %v1823_v39 = vadd.f32 %v1822_v2, %v3657_v20 }
 0x5c7   : > { %v1998_v38 = vmul.f32 %v2591_v3, %v1982_v58  ;;  %v1890_v34 = vpop.f32.mrf.mxu0 }
 0x5c8   : > { %2592 = vpow2.f32 %v1959_v14  ;;  %v1891_v22 = vadd.f32 %v1890_v34, %v3627_v63 }
 0x5c9   : > { %v2014_v27 = vadd.f32 %v1998_v38, %v1820_v56  ;;  %v2067_v56 = vmul.f32 -0.5, %v1986_v32 }
 0x5ca   : > { %v1920_v26 = vmax.f32 %v1891_v22, -5.0 }
 0x5cb   : > { %2594 = vtanh.f32 %v2014_v27 }
 0x5cc   : > { %v3901_v61 = vmin.f32 %v1920_v26, 2.0 }
 0x5cd   : > { %v1825_v18 = vpop.f32.mrf.mxu3 }
 0x5ce   : > { %v2593_v13 = vpop.eup %2592  ;;  %v1961_v46 = vmul.f32 1.442695, %v3901_v61  ;;  %v2097_v42 = vsub.f32 %v3898_v8, %v3901_v61  ;;  %v1826_v2 = vadd.f32 %v1825_v18, %v3657_v20 }
 0x5cf   : > { %v1999_v58 = vmul.f32 %v2593_v13, %v1983_v33  ;;  %v1893_v28 = vpop.f32.mrf.mxu0  ;;  %v3922_v13 = vmul.f32 %v2067_v56, %v1986_v32 }
 0x5d0   : > { %2596 = vpow2.f32 %v1961_v46  ;;  %v1894_v30 = vadd.f32 %v1893_v28, %v3627_v63  ;;  %v2068_v28 = vmul.f32 -0.5, %v1987_v45 }
 0x5d1   : > { %v2595_v47 = vpop.eup %2594  ;;  %v2015_v17 = vadd.f32 %v1999_v58, %v1823_v39 }
 0x5d2   : > { %2047 = vst.msk [vmem:[%s3704_s30 + $0x38] sm:$0xff] %vm2039_vm2, %v2595_v47  ;;  %v2127_v62 = vmul.f32 %v2595_v47, %v2595_v47  ;;  %v1921_v12 = vmax.f32 %v1894_v30, -5.0  ;;  %v3930_v47 = vadd.f32 -0.9189385, %v2095_v60 }
 0x5d3   : > { %2598 = vtanh.f32 %v2015_v17 }
 0x5d4   : > { %v2143_v33 = vsub.f32 1.0, %v2127_v62  ;;  %v3912_v40 = vmin.f32 %v1921_v12, 2.0 }
 0x5d5   : > { %v1828_v14 = vpop.f32.mrf.mxu3 }
 0x5d6   : > { %v2159_v52 = vadd.f32 1e-06, %v2143_v33  ;;  %v2597_v37 = vpop.eup %2596  ;;  %v1963_v57 = vmul.f32 1.442695, %v3912_v40  ;;  %v2098_v29 = vsub.f32 %v3910_v4, %v3912_v40  ;;  %v1829_v30 = vadd.f32 %v1828_v14, %v3657_v20  ;;  %v1988_v14 = vld [vmem:[%s3612_s0 + $0x68] sm:$0xff] }
 0x5d7   : > { %v2000_v3 = vmul.f32 %v2597_v37, %v1984_v11 }
 0x5d8   : > { %2600 = vlog2.f32 %v2159_v52  ;;  %v1896_v9 = vpop.f32.mrf.mxu0 }
 0x5d9   : > { %v2599_v38 = vpop.eup %2598  ;;  %2602 = vpow2.f32 %v1963_v57  ;;  %v2016_v34 = vadd.f32 %v2000_v3, %v1826_v2  ;;  %v1897_v27 = vadd.f32 %v1896_v9, %v3627_v63  ;;  %v3943_v3 = vmul.f32 %v2068_v28, %v1987_v45 }
 0x5da   : > { %2048 = vst.msk [vmem:[%s3704_s30 + $0x40] sm:$0xff] %vm2039_vm2, %v2599_v38  ;;  %v2128_v22 = vmul.f32 %v2599_v38, %v2599_v38 }
 0x5db   : > { %2604 = vtanh.f32 %v2016_v34  ;;  %v1922_v26 = vmax.f32 %v1897_v27, -5.0  ;;  %v3951_v27 = vadd.f32 -0.9189385, %v2096_v25 }
 0x5dc   : > { %v2144_v39 = vsub.f32 1.0, %v2128_v22 }
 0x5dd   : > { %v3925_v11 = vmin.f32 %v1922_v26, 2.0 }
 0x5de   : > { %v2601_v18 = vpop.eup %2600  ;;  %v2160_v58 = vadd.f32 1e-06, %v2144_v39  ;;  %v1831_v51 = vpop.f32.mrf.mxu3 }
 0x5df   : > { %v2603_v46 = vpop.eup %2602  ;;  %v3932_v17 = vmul.f32 0.6931472, %v2601_v18  ;;  %v1965_v12 = vmul.f32 1.442695, %v3925_v11  ;;  %v2099_v33 = vsub.f32 %v3922_v13, %v3925_v11  ;;  %v2069_v18 = vmul.f32 -0.5, %v1988_v14 }
 0x5e0   : > { %v2001_v62 = vmul.f32 %v2603_v46, %v1985_v44  ;;  %v1899_v52 = vpop.f32.mrf.mxu0  ;;  %2606 = vlog2.f32 %v2160_v58  ;;  %v1832_v46 = vadd.f32 %v1831_v51, %v3657_v20 }
 0x5e1   : > { %v2207_v37 = vsub.f32 %v3930_v47, %v3932_v17  ;;  %v2605_v57 = vpop.eup %2604  ;;  %2608 = vpow2.f32 %v1965_v12  ;;  %v1900_v60 = vadd.f32 %v1899_v52, %v3627_v63  ;;  %v2216_v47 = vlaneseq }
 0x5e2   : > { %v2017_v0 = vadd.f32 %v2001_v62, %v1829_v30  ;;  %2049 = vst.msk [vmem:[%s3704_s30 + $0x48] sm:$0xff] %vm2039_vm2, %v2605_v57  ;;  %v2129_v44 = vmul.f32 %v2605_v57, %v2605_v57 }
 0x5e3   : > { %v1923_v2 = vmax.f32 %v1900_v60, -5.0  ;;  %v2217_v7 = vand.u32 127, %v2216_v47 }
 0x5e4   : > { %2610 = vtanh.f32 %v2017_v0  ;;  %v2145_v56 = vsub.f32 1.0, %v2129_v44  ;;  %v2085_v0 = vmul.f32 %v2069_v18, %v1988_v14 }
 0x5e5   : > { %v3946_v38 = vmin.f32 %v1923_v2, 2.0 }
 0x5e6   : > { %v2607_v9 = vpop.eup %2606  ;;  %v2161_v34 = vadd.f32 1e-06, %v2145_v56  ;;  %v1834_v52 = vpop.f32.mrf.mxu3 }
 0x5e7   : > { %v2609_v22 = vpop.eup %2608  ;;  %v1967_v26 = vmul.f32 1.442695, %v3946_v38  ;;  %v2100_v39 = vsub.f32 %v3943_v3, %v3946_v38  ;;  %v3956_v58 = vmul.f32 0.6931472, %v2607_v9 }
 0x5e8   : > { %v2002_v28 = vmul.f32 %v2609_v22, %v1986_v32  ;;  %v1902_v30 = vpop.f32.mrf.mxu0  ;;  %2612 = vlog2.f32 %v2161_v34  ;;  %v3967_v34 = vadd.f32 -0.9189385, %v2097_v42 }
 0x5e9   : > { %2614 = vpow2.f32 %v1967_v26  ;;  %v1903_v43 = vadd.f32 %v1902_v30, %v3627_v63  ;;  %v2208_v55 = vsub.f32 %v3951_v27, %v3956_v58  ;;  %v1835_v26 = vadd.f32 %v1834_v52, %v3657_v20 }
 0x5ea   : > { %v2611_v62 = vpop.eup %2610  ;;  %v2018_v25 = vadd.f32 %v2002_v28, %v1832_v46 }
 0x5eb   : > { %2050 = vst.msk [vmem:[%s3704_s30 + $0x50] sm:$0xff] %vm2039_vm2, %v2611_v62  ;;  %v2130_v12 = vmul.f32 %v2611_v62, %v2611_v62  ;;  %v1924_v57 = vmax.f32 %v1903_v43, -5.0 }
 0x5ec   : > { %2616 = vtanh.f32 %v2018_v25 }
 0x5ed   : > { %v2146_v60 = vsub.f32 1.0, %v2130_v12  ;;  %v1940_v32 = vmin.f32 %v1924_v57, 2.0 }
 0x5ee   : > { %v2613_v51 = vpop.eup %2612  ;;  %v1837_v8 = vpop.f32.mrf.mxu3 }
 0x5ef   : > { %v2162_v44 = vadd.f32 1e-06, %v2146_v60  ;;  %v2615_v2 = vpop.eup %2614  ;;  %v1969_v56 = vmul.f32 1.442695, %v1940_v32  ;;  %v2101_v9 = vsub.f32 %v2085_v0, %v1940_v32  ;;  %v3969_v22 = vmul.f32 0.6931472, %v2613_v51 }
 0x5f0   : > { %v2003_v46 = vmul.f32 %v2615_v2, %v1987_v45  ;;  %v3979_v45 = vadd.f32 -0.9189385, %v2098_v29  ;;  %v1838_v52 = vadd.f32 %v1837_v8, %v3657_v20  ;;  %v3991_v29 = vadd.f32 -0.9189385, %v2099_v33 }
 0x5f1   : > { %2618 = vlog2.f32 %v2162_v44  ;;  %v2209_v18 = vsub.f32 %v3967_v34, %v3969_v22  ;;  %v2395_v8 = vadd.f32 -0.9189385, %v2101_v9 }
 0x5f2   : > { %2620 = vpow2.f32 %v1969_v56  ;;  %v2617_v28 = vpop.eup %2616  ;;  %v2019_v30 = vadd.f32 %v2003_v46, %v1835_v26 }
 0x5f3   : > { %2051 = vst.msk [vmem:[%s3704_s30 + $0x58] sm:$0xff] %vm2039_vm2, %v2617_v28  ;;  %v2131_v62 = vmul.f32 %v2617_v28, %v2617_v28 }
 0x5f4   : > { %2622 = vtanh.f32 %v2019_v30 }
 0x5f5   : > { %v2147_v61 = vsub.f32 1.0, %v2131_v62  ;;  %v4002_v62 = vadd.f32 -0.9189385, %v2100_v39 }
 0x5f7   : > { %v2619_v42 = vpop.eup %2618  ;;  %v2163_v25 = vadd.f32 1e-06, %v2147_v61 }
 0x5f8   : > { %v2621_v43 = vpop.eup %2620  ;;  %v3981_v12 = vmul.f32 0.6931472, %v2619_v42 }
 0x5f9   : > { %v2004_v57 = vmul.f32 %v2621_v43, %v1988_v14  ;;  %2624 = vlog2.f32 %v2163_v25 }
 0x5fa   : > { %v2210_v0 = vsub.f32 %v3979_v45, %v3981_v12  ;;  %v2623_v60 = vpop.eup %2622 }
 0x5fb   : > { %v2020_v32 = vadd.f32 %v2004_v57, %v1838_v52  ;;  %2052 = vst.msk [vmem:[%s3704_s30 + $0x60] sm:$0xff] %vm2039_vm2, %v2623_v60  ;;  %v2132_v51 = vmul.f32 %v2623_v60, %v2623_v60 }
 0x5fd   : > { %2626 = vtanh.f32 %v2020_v32  ;;  %v2148_v44 = vsub.f32 1.0, %v2132_v51 }
 0x5ff   : > { %v2625_v4 = vpop.eup %2624  ;;  %v2164_v40 = vadd.f32 1e-06, %v2148_v44 }
 0x600   : > { %v3993_v14 = vmul.f32 0.6931472, %v2625_v4  ;;  %v1989_v4 = vld [vmem:[%s3612_s0 + $0x70] sm:$0xff] }
 0x601   : > { %2628 = vlog2.f32 %v2164_v40 }
 0x602   : > { %v2211_v56 = vsub.f32 %v3991_v29, %v3993_v14 }
 0x603   : > { %v2627_v2 = vpop.eup %2626 }
 0x604   : > { %2053 = vst.msk [vmem:[%s3704_s30 + $0x68] sm:$0xff] %vm2039_vm2, %v2627_v2  ;;  %v2133_v26 = vmul.f32 %v2627_v2, %v2627_v2 }
 0x606   : > { %v2149_v46 = vsub.f32 1.0, %v2133_v26 }
 0x607   : > { %v2629_v28 = vpop.eup %2628 }
 0x608   : > { %v2165_v30 = vadd.f32 1e-06, %v2149_v46  ;;  %v2193_v13 = vmul.f32 0.6931472, %v2629_v28 }
 0x60a   : > { %2630 = vlog2.f32 %v2165_v30  ;;  %v2212_v11 = vsub.f32 %v4002_v62, %v2193_v13  ;;  %v1990_v30 = vld [vmem:[%s3612_s0 + $0x78] sm:$0xff]  ;;  %s2262_s0 = sshll.u32 %s403_s16, 4  ;;  %s2263_s0 = int_to_ptr.vmem [resolvable:$true] %s2262_s0 }
 0x610   : > { %v2631_v33 = vpop.eup %2630 }
 0x611   : > { %v2195_v61 = vmul.f32 0.6931472, %v2631_v33 }
 0x613   : > { %v2213_v42 = vsub.f32 %v2395_v8, %v2195_v61 }
 0x639   : > { %v1905_v43 = vpop.f32.mrf.mxu0 }
 0x63a   : > { %v1906_v25 = vadd.f32 %v1905_v43, %v3627_v63 }
 0x63c   : > { %v1925_v52 = vmax.f32 %v1906_v25, -5.0 }
 0x63e   : > { %v1941_v57 = vmin.f32 %v1925_v52, 2.0  ;;  %v2071_v52 = vmul.f32 -0.5, %v1990_v30 }
 0x63f   : > { %v1840_v38 = vpop.f32.mrf.mxu3 }
 0x640   : > { %v1971_v60 = vmul.f32 1.442695, %v1941_v57  ;;  %v1841_v40 = vadd.f32 %v1840_v38, %v3657_v20  ;;  %v2070_v38 = vmul.f32 -0.5, %v1989_v4 }
 0x641   : > { %v1908_v32 = vpop.f32.mrf.mxu0 }
 0x642   : > { %2632 = vpow2.f32 %v1971_v60  ;;  %v1909_v3 = vadd.f32 %v1908_v32, %v3627_v63 }
 0x644   : > { %v1926_v39 = vmax.f32 %v1909_v3, -5.0 }
 0x646   : > { %v1942_v51 = vmin.f32 %v1926_v39, 2.0  ;;  %v2087_v39 = vmul.f32 %v2071_v52, %v1990_v30 }
 0x647   : > { %v1843_v46 = vpop.f32.mrf.mxu3 }
 0x648   : > { %v2633_v44 = vpop.eup %2632  ;;  %v1973_v9 = vmul.f32 1.442695, %v1942_v51  ;;  %v1844_v62 = vadd.f32 %v1843_v46, %v3657_v20  ;;  %v2086_v20 = vmul.f32 %v2070_v38, %v1989_v4 }
 0x649   : > { %v2005_v2 = vmul.f32 %v2633_v44, %v1989_v4  ;;  %v2103_v44 = vsub.f32 %v2087_v39, %v1942_v51 }
 0x64a   : > { %2634 = vpow2.f32 %v1973_v9 }
 0x64b   : > { %v2021_v26 = vadd.f32 %v2005_v2, %v1841_v40  ;;  %v2102_v2 = vsub.f32 %v2086_v20, %v1941_v57 }
 0x64d   : > { %2636 = vtanh.f32 %v2021_v26  ;;  %v2397_v26 = vadd.f32 -0.9189385, %v2103_v44 }
 0x650   : > { %v2635_v28 = vpop.eup %2634 }
 0x651   : > { %v2006_v63 = vmul.f32 %v2635_v28, %v1990_v30 }
 0x653   : > { %v2637_v13 = vpop.eup %2636  ;;  %v2022_v33 = vadd.f32 %v2006_v63, %v1844_v62  ;;  %v2396_v63 = vadd.f32 -0.9189385, %v2102_v2 }
 0x654   : > { %2054 = vst.msk [vmem:[%s3704_s30 + $0x70] sm:$0xff] %vm2039_vm2, %v2637_v13  ;;  %v2134_v8 = vmul.f32 %v2637_v13, %v2637_v13 }
 0x655   : > { %2638 = vtanh.f32 %v2022_v33 }
 0x656   : > { %v2150_v61 = vsub.f32 1.0, %v2134_v8 }
 0x658   : > { %v2166_v60 = vadd.f32 1e-06, %v2150_v61 }
 0x65a   : > { %2640 = vlog2.f32 %v2166_v60 }
 0x65b   : > { %v2639_v43 = vpop.eup %2638 }
 0x65c   : > { %2055 = vst.msk [vmem:[%s3704_s30 + $0x78] sm:$0xff] %vm2039_vm2, %v2639_v43  ;;  %v2135_v25 = vmul.f32 %v2639_v43, %v2639_v43  ;;  %vm2218_vm2 = vcmp.lt.s32.totalorder %v2217_v7, 8 }
 0x65e   : > { %v2151_v32 = vsub.f32 1.0, %v2135_v25 }
 0x660   : > { %v2167_v3 = vadd.f32 1e-06, %v2151_v32  ;;  %v2641_v9 = vpop.eup %2640 }
 0x661   : > { %v2197_v62 = vmul.f32 0.6931472, %v2641_v9 }
 0x662   : > { %2642 = vlog2.f32 %v2167_v3 }
 0x663   : > { %v2214_v13 = vsub.f32 %v2396_v63, %v2197_v62 }
 0x668   : > { %v2643_v40 = vpop.eup %2642 }
 0x669   : > { %v2199_v46 = vmul.f32 0.6931472, %v2643_v40 }
 0x66b   : > { %v2215_v28 = vsub.f32 %v2397_v26, %v2199_v46 }
 0x66d   : > { %2221 = vmatpush.xpose.msrb.mxu1 %v2215_v28 }
 0x671   : > { %2222 = vmatpush.xpose.msrb.mxu1 %v2214_v13 }
 0x675   : > { %2223 = vmatpush.xpose.msrb.mxu1 %v2213_v42 }
 0x679   : > { %2224 = vmatpush.xpose.msrb.mxu1 %v2212_v11 }
 0x67d   : > { %2225 = vmatpush.xpose.msrb.mxu1 %v2211_v56 }
 0x681   : > { %2226 = vmatpush.xpose.msrb.mxu1 %v2210_v0 }
 0x685   : > { %2227 = vmatpush.xpose.msrb.mxu1 %v2209_v18 }
 0x689   : > { %2228 = vmatpush.xpose.msrb.mxu1 %v2208_v55 }
 0x68d   : > { %2229 = vmatpush.xpose.msrb.mxu1 %v2207_v37 }
 0x691   : > { %2230 = vmatpush.xpose.msrb.mxu1 %v2206_v31 }
 0x695   : > { %2231 = vmatpush.xpose.msrb.mxu1 %v2205_v35 }
 0x699   : > { %2232 = vmatpush.xpose.msrb.mxu1 %v2204_v36 }
 0x69d   : > { %2233 = vmatpush.xpose.msrb.mxu1 %v2203_v5 }
 0x6a1   : > { %2234 = vmatpush.xpose.msrb.mxu1 %v2202_v41 }
 0x6a5   : > { %2235 = vmatpush.xpose.msrb.mxu1 %v2201_v23 }
 0x6a9   : > { %2236 = vmatpush.xpose.msrb.mxu1 %v2200_v6 }
 0x6ac   : > { %2399 = vmatmul.msk.f32.vlgmr.msrb.gmra.mxu1 %vm2218_vm2, %v2709_v53 }
 0x729   : > { %v2238_v50 = vpop.f32.mrf.mxu1 }
 0x72a   : > { %2241 = vst [vmem:[%s403_s16] sm:$0x1] %v2238_v50 }
 0x72b   : > { %2671 = shalt.err (!%p2668_p3)
}
 0x72c   : > { %2406 = dma.vmem_to_hbm [thread:$0]  (%p2808_p5), %s2263_s0, 16, %s2265_s22, %s2248_s24  }
 0x72d PF: > { %p2412_p4 = scmp.ge.s32.totalorder %s2706_s20, 2  ;;  %s2284_s15 = sand.u32 1, %s2694_s17  }
 0x72e   : > { %s2285_s1 = scalar_lea.sflag [#allocation3], %s2284_s15 }
 0x72f   : > { %p2409_p7 = pnand %p2412_p4, %p2812_p6 }
 0x731   : > { %p2410_p8 = pneg %p2409_p7 }
 0x733   : > { %2689 = dma.done.wait (%p2410_p8), %s2285_s1, 16  }
 0x734   : > { %2691 = vsyncadd (%p2410_p8), %s2285_s1, 4294967280  ;;  %p22_p9 = scmp.ge.s32.totalorder %s2795_s23, 4   ;;  %s4101_s17 = smov %s2698_s18 }
 0x735   : > { %s4102_s18 = smov %s2702_s19  ;;  %s4103_s19 = smov %s2806_s26 }
 0x736   : > { %s4104_s20 = smov %s2795_s23  ;;  %24 = sbr.rel (!%p22_p9) target bundleno = 6 (0x6), region = 110 }
 0x73b   :  { %2290 = vsyncpa [#allocation3], 1 }
 0x73c   :  { %2292 = vsyncpa [#allocation3 + $0x1], 1 }

</bundles_post_ra>
